<compile_context>
chip_gen: v7x
topology: tpu7x:2x2x1
jax: 0.10.0
libtpu: 0.0.40
codegen_flags: <defaults>
</compile_context>

<pallas_src>
import numpy as np
import jax
import jax.numpy as jnp
from jax.experimental import pallas as pl
from jax.experimental.pallas import tpu as pltpu

C_IN, C_OUT, H, W = 192, 48, 14, 14
HW = H * W                                   # 196 flat output pixels
LANES = 256                                  # lane-widened pixel axis (mult. of 128)
C140 = 384                                   # channels of x140
N_MID = 8                                    # x147 .. x196
C_TOTAL = C140 + N_MID * C_OUT + C_OUT + C_OUT   # 864
CONV_OFF = C140 + N_MID * C_OUT                  # 768 -> x203 (conv result)
X210_OFF = CONV_OFF + C_OUT                      # 816 -> x210
N_DMA = 1 + N_MID + 1 + 1                        # 10 pass-throughs + 1 conv result

# Tap enumeration (dy major) -- must match weight packing and mask table.
TAPS = tuple((dy, dx) for dy in (-1, 0, 1) for dx in (-1, 0, 1))


def _build_tap_masks():
    """0/1 validity mask per tap over the (lane-widened) flat pixel axis."""
    m = np.zeros((9, 1, LANES), np.float32)
    for t, (dy, dx) in enumerate(TAPS):
        for p in range(HW):
            y, x = divmod(p, W)
            if 0 <= y + dy < H and 0 <= x + dx < W:
                m[t, 0, p] = 1.0
    return m


def conv_cat_kernel(x_ref, w_ref, mask_ref, x140_hbm, m0, m1, m2, m3, m4, m5,
                    m6, m7, x210_hbm, o_hbm, conv_vmem, sems):
    """x_ref:     [192, 196]   conv input, flat HxW (VMEM, f32)
       w_ref:     [9, 48, 192] tap-major conv weight (VMEM, bf16)
       mask_ref:  [9, 1, 256]  per-tap validity masks (VMEM, f32)
       x140_hbm:  [384, 196]   pass-through (HBM)
       m0..m7:    [48, 196]    pass-throughs x147..x196 (HBM)
       x210_hbm:  [48, 196]    pass-through (HBM)
       o_hbm:     [864, 196]   concatenated output (HBM)
       conv_vmem: [48, 196]    VMEM scratch for the conv result
       sems:      (11,)        DMA semaphores
    """
    # --- 1) kick off pass-through concat copies HBM->HBM (overlap with conv) ---
    passthrough = [(x140_hbm, 0, C140)]
    for j, mref in enumerate((m0, m1, m2, m3, m4, m5, m6, m7)):
        passthrough.append((mref, C140 + j * C_OUT, C_OUT))
    passthrough.append((x210_hbm, X210_OFF, C_OUT))

    copies = []
    for i, (src, off, size) in enumerate(passthrough):
        cp = pltpu.make_async_copy(src, o_hbm.at[pl.ds(off, size)], sems.at[i])
        cp.start()
        copies.append(cp)

    # --- 2) 3x3 conv as 9 rolled taps, each its own MXU dot, accumulated f32 ---
    x = x_ref[...]                                              # [192, 196] f32
    x_wide = jnp.concatenate(
        [x, jnp.zeros((C_IN, LANES - HW), jnp.float32)], axis=1)   # [192, 256]

    acc = None
    for t, (dy, dx) in enumerate(TAPS):
        shift = (-(dy * W + dx)) % LANES
        tap = x_wide if shift == 0 else pltpu.roll(x_wide, shift=shift, axis=1)
        d = jnp.dot(w_ref[t], tap.astype(jnp.bfloat16),
                    preferred_element_type=jnp.float32)            # [48, 256]
        if dy == 0 and dx == 0:
            term = d                       # centre tap needs no masking
        else:
            term = d * mask_ref[t]         # (1,256) mask kills roll wrap-around
        acc = term if acc is None else acc + term

    # Valid pixels occupy lanes [0,196): aligned head slice, no lane compaction.
    conv_vmem[...] = acc[:, :HW]

    # --- 3) conv result VMEM->HBM, then drain all DMAs ---
    conv_cp = pltpu.make_async_copy(
        conv_vmem, o_hbm.at[pl.ds(CONV_OFF, C_OUT)], sems.at[len(passthrough)])
    conv_cp.start()
    copies.append(conv_cp)

    for cp in copies:
        cp.wait()


def preprocess_weight(weight):
    """PyTorch OIHW [48,192,3,3] -> tap-major bf16 [9,48,192] (done once)."""
    w9 = jnp.transpose(weight, (2, 3, 0, 1)).reshape(9, C_OUT, C_IN)
    return w9.astype(jnp.bfloat16)


def conv2d_cat(x202, w_tap, masks, x140, mids, x210):
    """x202 [1,192,14,14], w_tap [9,48,192] bf16, masks [9,1,256] f32,
       x140 [1,384,14,14], mids: 8 x [1,48,14,14], x210 [1,48,14,14]
       -> [1,864,14,14]."""
    # Free reshapes only (no pad, no transpose): channel-major [C, H*W].
    x202f = x202.reshape(C_IN, HW)
    x140f = x140.reshape(C140, HW)
    midfs = [m.reshape(C_OUT, HW) for m in mids]
    x210f = x210.reshape(C_OUT, HW)

    any_spec = pl.BlockSpec(memory_space=pl.ANY)
    out = pl.pallas_call(
        conv_cat_kernel,
        out_shape=jax.ShapeDtypeStruct((C_TOTAL, HW), jnp.float32),
        grid=(1,),
        in_specs=[
            pl.BlockSpec((C_IN, HW), lambda i: (0, 0)),          # conv input -> VMEM
            pl.BlockSpec((9, C_OUT, C_IN), lambda i: (0, 0, 0)),  # weight -> VMEM
            pl.BlockSpec((9, 1, LANES), lambda i: (0, 0, 0)),     # tap masks -> VMEM
            any_spec,                                             # x140 stays in HBM
        ] + [any_spec] * N_MID + [any_spec],                      # mids, x210 in HBM
        out_specs=any_spec,                                       # output stays in HBM
        scratch_shapes=[
            pltpu.VMEM((C_OUT, HW), jnp.float32),                 # conv result
            pltpu.SemaphoreType.DMA((N_DMA,)),                    # 11 DMA semaphores
        ],
        compiler_params=pltpu.CompilerParams(
            dimension_semantics=("arbitrary",)),
    )(x202f, w_tap, masks, x140f, *midfs, x210f)

    return out.reshape(1, C_TOTAL, H, W)


def _reference(x202, weight, x140, mids, x210):
    # Matched precision: bf16 MXU operands, f32 accumulation (same as kernel).
    x203 = jax.lax.conv_general_dilated(
        x202.astype(jnp.bfloat16), weight.astype(jnp.bfloat16),
        window_strides=(1, 1), padding=((1, 1), (1, 1)),
        dimension_numbers=("NCHW", "OIHW", "NCHW"),
        preferred_element_type=jnp.float32)
    return jnp.concatenate([x140] + list(mids) + [x203, x210], axis=1)


if __name__ == "__main__":
    key = jax.random.PRNGKey(0)
    keys = jax.random.split(key, 12)

    x202 = jax.random.normal(keys[0], (1, C_IN, H, W), jnp.float32)
    x140 = jax.random.normal(keys[1], (1, C140, H, W), jnp.float32)
    mids = [jax.random.normal(keys[2 + i], (1, C_OUT, H, W), jnp.float32)
            for i in range(N_MID)]
    x210 = jax.random.normal(keys[10], (1, C_OUT, H, W), jnp.float32)
    weight = jax.random.normal(keys[11], (C_OUT, C_IN, 3, 3), jnp.float32) * 0.05

    # Constants for inference: weight repack + tap masks hoisted out of the
    # per-call path.
    w_tap = jax.block_until_ready(preprocess_weight(weight))
    masks = jnp.asarray(_build_tap_masks())

    run = jax.jit(conv2d_cat)
    out = jax.block_until_ready(run(x202, w_tap, masks, x140, mids, x210))

    ref = _reference(x202, weight, x140, mids, x210)
    assert out.shape == (1, C_TOTAL, H, W), out.shape
    max_err = float(jnp.max(jnp.abs(out - ref)))
    assert jnp.allclose(out, ref, atol=1e-2, rtol=1e-2), max_err

    print("KERNEL_OK")
</pallas_src>

<mosaic_0001>
module attributes {stable_mosaic.version = 11 : i64} {
  func.func @conv_cat_kernel(%arg0: i32, %arg1: memref<192x196xf32, #tpu.memory_space<vmem>>, %arg2: memref<9x48x192xbf16, #tpu.memory_space<vmem>>, %arg3: memref<9x1x256xf32, #tpu.memory_space<vmem>>, %arg4: memref<384x196xf32, #tpu.memory_space<any>>, %arg5: memref<48x196xf32, #tpu.memory_space<any>>, %arg6: memref<48x196xf32, #tpu.memory_space<any>>, %arg7: memref<48x196xf32, #tpu.memory_space<any>>, %arg8: memref<48x196xf32, #tpu.memory_space<any>>, %arg9: memref<48x196xf32, #tpu.memory_space<any>>, %arg10: memref<48x196xf32, #tpu.memory_space<any>>, %arg11: memref<48x196xf32, #tpu.memory_space<any>>, %arg12: memref<48x196xf32, #tpu.memory_space<any>>, %arg13: memref<48x196xf32, #tpu.memory_space<any>>, %arg14: memref<864x196xf32, #tpu.memory_space<any>>, %arg15: memref<48x196xf32, #tpu.memory_space<vmem>>, %arg16: memref<11x!tpu.dma_semaphore, #tpu.memory_space<semaphore_mem>>) attributes {dimension_semantics = [#tpu.dimension_semantics<arbitrary>], iteration_bounds = array<i64: 1>, scalar_prefetch = 0 : i64, scratch_operands = 2 : i64, tpu.core_type = #tpu.core_type<tc>, window_params = [{pipeline_mode = #tpu.pipeline_mode<synchronous>, transform_indices = @transform_0, window_bounds = array<i64: 192, 196>}, {pipeline_mode = #tpu.pipeline_mode<synchronous>, transform_indices = @transform_1, window_bounds = array<i64: 9, 48, 192>}, {pipeline_mode = #tpu.pipeline_mode<synchronous>, transform_indices = @transform_2, window_bounds = array<i64: 9, 1, 256>}, {}, {}, {}, {}, {}, {}, {}, {}, {}, {}, {}]} {
    %c0_i32 = arith.constant 0 : i32
    %c0_i32_0 = arith.constant 0 : i32
    %c0_i32_1 = arith.constant 0 : i32
    %0 = tpu.memref_slice %arg14[%c0_i32_0, %c0_i32_1] : memref<864x196xf32, #tpu.memory_space<any>> -> memref<384x196xf32, #tpu.memory_space<any>>
    %1 = tpu.memref_slice %arg16[%c0_i32] : memref<11x!tpu.dma_semaphore, #tpu.memory_space<semaphore_mem>> -> memref<1x!tpu.dma_semaphore, #tpu.memory_space<semaphore_mem>>
    %2 = tpu.memref_squeeze %1 : memref<1x!tpu.dma_semaphore, #tpu.memory_space<semaphore_mem>> -> memref<!tpu.dma_semaphore, #tpu.memory_space<semaphore_mem>>
    tpu.enqueue_dma source(%arg4 : memref<384x196xf32, #tpu.memory_space<any>>) target(%0 : memref<384x196xf32, #tpu.memory_space<any>>) target_semaphore(%2 : memref<!tpu.dma_semaphore, #tpu.memory_space<semaphore_mem>>)
    %c1_i32 = arith.constant 1 : i32
    %c384_i32 = arith.constant 384 : i32
    %c0_i32_2 = arith.constant 0 : i32
    %3 = tpu.memref_slice %arg14[%c384_i32, %c0_i32_2] : memref<864x196xf32, #tpu.memory_space<any>> -> memref<48x196xf32, #tpu.memory_space<any>>
    %4 = tpu.memref_slice %arg16[%c1_i32] : memref<11x!tpu.dma_semaphore, #tpu.memory_space<semaphore_mem>> -> memref<1x!tpu.dma_semaphore, #tpu.memory_space<semaphore_mem>>
    %5 = tpu.memref_squeeze %4 : memref<1x!tpu.dma_semaphore, #tpu.memory_space<semaphore_mem>> -> memref<!tpu.dma_semaphore, #tpu.memory_space<semaphore_mem>>
    tpu.enqueue_dma source(%arg5 : memref<48x196xf32, #tpu.memory_space<any>>) target(%3 : memref<48x196xf32, #tpu.memory_space<any>>) target_semaphore(%5 : memref<!tpu.dma_semaphore, #tpu.memory_space<semaphore_mem>>)
    %c2_i32 = arith.constant 2 : i32
    %c432_i32 = arith.constant 432 : i32
    %c0_i32_3 = arith.constant 0 : i32
    %6 = tpu.memref_slice %arg14[%c432_i32, %c0_i32_3] : memref<864x196xf32, #tpu.memory_space<any>> -> memref<48x196xf32, #tpu.memory_space<any>>
    %7 = tpu.memref_slice %arg16[%c2_i32] : memref<11x!tpu.dma_semaphore, #tpu.memory_space<semaphore_mem>> -> memref<1x!tpu.dma_semaphore, #tpu.memory_space<semaphore_mem>>
    %8 = tpu.memref_squeeze %7 : memref<1x!tpu.dma_semaphore, #tpu.memory_space<semaphore_mem>> -> memref<!tpu.dma_semaphore, #tpu.memory_space<semaphore_mem>>
    tpu.enqueue_dma source(%arg6 : memref<48x196xf32, #tpu.memory_space<any>>) target(%6 : memref<48x196xf32, #tpu.memory_space<any>>) target_semaphore(%8 : memref<!tpu.dma_semaphore, #tpu.memory_space<semaphore_mem>>)
    %c3_i32 = arith.constant 3 : i32
    %c480_i32 = arith.constant 480 : i32
    %c0_i32_4 = arith.constant 0 : i32
    %9 = tpu.memref_slice %arg14[%c480_i32, %c0_i32_4] : memref<864x196xf32, #tpu.memory_space<any>> -> memref<48x196xf32, #tpu.memory_space<any>>
    %10 = tpu.memref_slice %arg16[%c3_i32] : memref<11x!tpu.dma_semaphore, #tpu.memory_space<semaphore_mem>> -> memref<1x!tpu.dma_semaphore, #tpu.memory_space<semaphore_mem>>
    %11 = tpu.memref_squeeze %10 : memref<1x!tpu.dma_semaphore, #tpu.memory_space<semaphore_mem>> -> memref<!tpu.dma_semaphore, #tpu.memory_space<semaphore_mem>>
    tpu.enqueue_dma source(%arg7 : memref<48x196xf32, #tpu.memory_space<any>>) target(%9 : memref<48x196xf32, #tpu.memory_space<any>>) target_semaphore(%11 : memref<!tpu.dma_semaphore, #tpu.memory_space<semaphore_mem>>)
    %c4_i32 = arith.constant 4 : i32
    %c528_i32 = arith.constant 528 : i32
    %c0_i32_5 = arith.constant 0 : i32
    %12 = tpu.memref_slice %arg14[%c528_i32, %c0_i32_5] : memref<864x196xf32, #tpu.memory_space<any>> -> memref<48x196xf32, #tpu.memory_space<any>>
    %13 = tpu.memref_slice %arg16[%c4_i32] : memref<11x!tpu.dma_semaphore, #tpu.memory_space<semaphore_mem>> -> memref<1x!tpu.dma_semaphore, #tpu.memory_space<semaphore_mem>>
    %14 = tpu.memref_squeeze %13 : memref<1x!tpu.dma_semaphore, #tpu.memory_space<semaphore_mem>> -> memref<!tpu.dma_semaphore, #tpu.memory_space<semaphore_mem>>
    tpu.enqueue_dma source(%arg8 : memref<48x196xf32, #tpu.memory_space<any>>) target(%12 : memref<48x196xf32, #tpu.memory_space<any>>) target_semaphore(%14 : memref<!tpu.dma_semaphore, #tpu.memory_space<semaphore_mem>>)
    %c5_i32 = arith.constant 5 : i32
    %c576_i32 = arith.constant 576 : i32
    %c0_i32_6 = arith.constant 0 : i32
    %15 = tpu.memref_slice %arg14[%c576_i32, %c0_i32_6] : memref<864x196xf32, #tpu.memory_space<any>> -> memref<48x196xf32, #tpu.memory_space<any>>
    %16 = tpu.memref_slice %arg16[%c5_i32] : memref<11x!tpu.dma_semaphore, #tpu.memory_space<semaphore_mem>> -> memref<1x!tpu.dma_semaphore, #tpu.memory_space<semaphore_mem>>
    %17 = tpu.memref_squeeze %16 : memref<1x!tpu.dma_semaphore, #tpu.memory_space<semaphore_mem>> -> memref<!tpu.dma_semaphore, #tpu.memory_space<semaphore_mem>>
    tpu.enqueue_dma source(%arg9 : memref<48x196xf32, #tpu.memory_space<any>>) target(%15 : memref<48x196xf32, #tpu.memory_space<any>>) target_semaphore(%17 : memref<!tpu.dma_semaphore, #tpu.memory_space<semaphore_mem>>)
    %c6_i32 = arith.constant 6 : i32
    %c624_i32 = arith.constant 624 : i32
    %c0_i32_7 = arith.constant 0 : i32
    %18 = tpu.memref_slice %arg14[%c624_i32, %c0_i32_7] : memref<864x196xf32, #tpu.memory_space<any>> -> memref<48x196xf32, #tpu.memory_space<any>>
    %19 = tpu.memref_slice %arg16[%c6_i32] : memref<11x!tpu.dma_semaphore, #tpu.memory_space<semaphore_mem>> -> memref<1x!tpu.dma_semaphore, #tpu.memory_space<semaphore_mem>>
    %20 = tpu.memref_squeeze %19 : memref<1x!tpu.dma_semaphore, #tpu.memory_space<semaphore_mem>> -> memref<!tpu.dma_semaphore, #tpu.memory_space<semaphore_mem>>
    tpu.enqueue_dma source(%arg10 : memref<48x196xf32, #tpu.memory_space<any>>) target(%18 : memref<48x196xf32, #tpu.memory_space<any>>) target_semaphore(%20 : memref<!tpu.dma_semaphore, #tpu.memory_space<semaphore_mem>>)
    %c7_i32 = arith.constant 7 : i32
    %c672_i32 = arith.constant 672 : i32
    %c0_i32_8 = arith.constant 0 : i32
    %21 = tpu.memref_slice %arg14[%c672_i32, %c0_i32_8] : memref<864x196xf32, #tpu.memory_space<any>> -> memref<48x196xf32, #tpu.memory_space<any>>
    %22 = tpu.memref_slice %arg16[%c7_i32] : memref<11x!tpu.dma_semaphore, #tpu.memory_space<semaphore_mem>> -> memref<1x!tpu.dma_semaphore, #tpu.memory_space<semaphore_mem>>
    %23 = tpu.memref_squeeze %22 : memref<1x!tpu.dma_semaphore, #tpu.memory_space<semaphore_mem>> -> memref<!tpu.dma_semaphore, #tpu.memory_space<semaphore_mem>>
    tpu.enqueue_dma source(%arg11 : memref<48x196xf32, #tpu.memory_space<any>>) target(%21 : memref<48x196xf32, #tpu.memory_space<any>>) target_semaphore(%23 : memref<!tpu.dma_semaphore, #tpu.memory_space<semaphore_mem>>)
    %c8_i32 = arith.constant 8 : i32
    %c720_i32 = arith.constant 720 : i32
    %c0_i32_9 = arith.constant 0 : i32
    %24 = tpu.memref_slice %arg14[%c720_i32, %c0_i32_9] : memref<864x196xf32, #tpu.memory_space<any>> -> memref<48x196xf32, #tpu.memory_space<any>>
    %25 = tpu.memref_slice %arg16[%c8_i32] : memref<11x!tpu.dma_semaphore, #tpu.memory_space<semaphore_mem>> -> memref<1x!tpu.dma_semaphore, #tpu.memory_space<semaphore_mem>>
    %26 = tpu.memref_squeeze %25 : memref<1x!tpu.dma_semaphore, #tpu.memory_space<semaphore_mem>> -> memref<!tpu.dma_semaphore, #tpu.memory_space<semaphore_mem>>
    tpu.enqueue_dma source(%arg12 : memref<48x196xf32, #tpu.memory_space<any>>) target(%24 : memref<48x196xf32, #tpu.memory_space<any>>) target_semaphore(%26 : memref<!tpu.dma_semaphore, #tpu.memory_space<semaphore_mem>>)
    %c9_i32 = arith.constant 9 : i32
    %c816_i32 = arith.constant 816 : i32
    %c0_i32_10 = arith.constant 0 : i32
    %27 = tpu.memref_slice %arg14[%c816_i32, %c0_i32_10] : memref<864x196xf32, #tpu.memory_space<any>> -> memref<48x196xf32, #tpu.memory_space<any>>
    %28 = tpu.memref_slice %arg16[%c9_i32] : memref<11x!tpu.dma_semaphore, #tpu.memory_space<semaphore_mem>> -> memref<1x!tpu.dma_semaphore, #tpu.memory_space<semaphore_mem>>
    %29 = tpu.memref_squeeze %28 : memref<1x!tpu.dma_semaphore, #tpu.memory_space<semaphore_mem>> -> memref<!tpu.dma_semaphore, #tpu.memory_space<semaphore_mem>>
    tpu.enqueue_dma source(%arg13 : memref<48x196xf32, #tpu.memory_space<any>>) target(%27 : memref<48x196xf32, #tpu.memory_space<any>>) target_semaphore(%29 : memref<!tpu.dma_semaphore, #tpu.memory_space<semaphore_mem>>)
    %c0 = arith.constant 0 : index
    %c0_11 = arith.constant 0 : index
    %30 = vector.load %arg1[%c0, %c0_11] : memref<192x196xf32, #tpu.memory_space<vmem>>, vector<192x196xf32>
    %cst = arith.constant 0.000000e+00 : f32
    %31 = vector.broadcast %cst : f32 to vector<192x60xf32>
    %32 = tpu.concatenate %30, %31 in 1 : vector<192x196xf32>, vector<192x60xf32> -> vector<192x256xf32>
    %c15_i32 = arith.constant 15 : i32
    %33 = tpu.dynamic_rotate %32 by %c15_i32 dim 1 : vector<192x256xf32>, i32 -> vector<192x256xf32>
    %c0_12 = arith.constant 0 : index
    %c0_13 = arith.constant 0 : index
    %c0_14 = arith.constant 0 : index
    %34 = vector.load %arg2[%c0_12, %c0_13, %c0_14] : memref<9x48x192xbf16, #tpu.memory_space<vmem>>, vector<1x48x192xbf16>
    %35 = vector.shape_cast %34 : vector<1x48x192xbf16> to vector<48x192xbf16>
    %36 = arith.truncf %33 : vector<192x256xf32> to vector<192x256xbf16>
    %cst_15 = arith.constant dense<0.000000e+00> : vector<48x256xf32>
    %37 = tpu.matmul %35, %36, %cst_15 {dimension_numbers = #tpu.dot_dimension_numbers<[1], [0], [0], [1], [0, 0, 1, 1], [], []>} : vector<48x192xbf16>, vector<192x256xbf16>, vector<48x256xf32> -> vector<48x256xf32>
    %c0_16 = arith.constant 0 : index
    %c0_17 = arith.constant 0 : index
    %c0_18 = arith.constant 0 : index
    %38 = vector.load %arg3[%c0_16, %c0_17, %c0_18] : memref<9x1x256xf32, #tpu.memory_space<vmem>>, vector<1x1x256xf32>
    %39 = vector.shape_cast %38 : vector<1x1x256xf32> to vector<1x256xf32>
    %40 = vector.broadcast %39 : vector<1x256xf32> to vector<48x256xf32>
    %41 = arith.mulf %37, %40 : vector<48x256xf32>
    %c14_i32 = arith.constant 14 : i32
    %42 = tpu.dynamic_rotate %32 by %c14_i32 dim 1 : vector<192x256xf32>, i32 -> vector<192x256xf32>
    %c1 = arith.constant 1 : index
    %c0_19 = arith.constant 0 : index
    %c0_20 = arith.constant 0 : index
    %43 = vector.load %arg2[%c1, %c0_19, %c0_20] : memref<9x48x192xbf16, #tpu.memory_space<vmem>>, vector<1x48x192xbf16>
    %44 = vector.shape_cast %43 : vector<1x48x192xbf16> to vector<48x192xbf16>
    %45 = arith.truncf %42 : vector<192x256xf32> to vector<192x256xbf16>
    %cst_21 = arith.constant dense<0.000000e+00> : vector<48x256xf32>
    %46 = tpu.matmul %44, %45, %cst_21 {dimension_numbers = #tpu.dot_dimension_numbers<[1], [0], [0], [1], [0, 0, 1, 1], [], []>} : vector<48x192xbf16>, vector<192x256xbf16>, vector<48x256xf32> -> vector<48x256xf32>
    %c1_22 = arith.constant 1 : index
    %c0_23 = arith.constant 0 : index
    %c0_24 = arith.constant 0 : index
    %47 = vector.load %arg3[%c1_22, %c0_23, %c0_24] : memref<9x1x256xf32, #tpu.memory_space<vmem>>, vector<1x1x256xf32>
    %48 = vector.shape_cast %47 : vector<1x1x256xf32> to vector<1x256xf32>
    %49 = vector.broadcast %48 : vector<1x256xf32> to vector<48x256xf32>
    %50 = arith.mulf %46, %49 : vector<48x256xf32>
    %51 = arith.addf %41, %50 : vector<48x256xf32>
    %c13_i32 = arith.constant 13 : i32
    %52 = tpu.dynamic_rotate %32 by %c13_i32 dim 1 : vector<192x256xf32>, i32 -> vector<192x256xf32>
    %c2 = arith.constant 2 : index
    %c0_25 = arith.constant 0 : index
    %c0_26 = arith.constant 0 : index
    %53 = vector.load %arg2[%c2, %c0_25, %c0_26] : memref<9x48x192xbf16, #tpu.memory_space<vmem>>, vector<1x48x192xbf16>
    %54 = vector.shape_cast %53 : vector<1x48x192xbf16> to vector<48x192xbf16>
    %55 = arith.truncf %52 : vector<192x256xf32> to vector<192x256xbf16>
    %cst_27 = arith.constant dense<0.000000e+00> : vector<48x256xf32>
    %56 = tpu.matmul %54, %55, %cst_27 {dimension_numbers = #tpu.dot_dimension_numbers<[1], [0], [0], [1], [0, 0, 1, 1], [], []>} : vector<48x192xbf16>, vector<192x256xbf16>, vector<48x256xf32> -> vector<48x256xf32>
    %c2_28 = arith.constant 2 : index
    %c0_29 = arith.constant 0 : index
    %c0_30 = arith.constant 0 : index
    %57 = vector.load %arg3[%c2_28, %c0_29, %c0_30] : memref<9x1x256xf32, #tpu.memory_space<vmem>>, vector<1x1x256xf32>
    %58 = vector.shape_cast %57 : vector<1x1x256xf32> to vector<1x256xf32>
    %59 = vector.broadcast %58 : vector<1x256xf32> to vector<48x256xf32>
    %60 = arith.mulf %56, %59 : vector<48x256xf32>
    %61 = arith.addf %51, %60 : vector<48x256xf32>
    %c1_i32_31 = arith.constant 1 : i32
    %62 = tpu.dynamic_rotate %32 by %c1_i32_31 dim 1 : vector<192x256xf32>, i32 -> vector<192x256xf32>
    %c3 = arith.constant 3 : index
    %c0_32 = arith.constant 0 : index
    %c0_33 = arith.constant 0 : index
    %63 = vector.load %arg2[%c3, %c0_32, %c0_33] : memref<9x48x192xbf16, #tpu.memory_space<vmem>>, vector<1x48x192xbf16>
    %64 = vector.shape_cast %63 : vector<1x48x192xbf16> to vector<48x192xbf16>
    %65 = arith.truncf %62 : vector<192x256xf32> to vector<192x256xbf16>
    %cst_34 = arith.constant dense<0.000000e+00> : vector<48x256xf32>
    %66 = tpu.matmul %64, %65, %cst_34 {dimension_numbers = #tpu.dot_dimension_numbers<[1], [0], [0], [1], [0, 0, 1, 1], [], []>} : vector<48x192xbf16>, vector<192x256xbf16>, vector<48x256xf32> -> vector<48x256xf32>
    %c3_35 = arith.constant 3 : index
    %c0_36 = arith.constant 0 : index
    %c0_37 = arith.constant 0 : index
    %67 = vector.load %arg3[%c3_35, %c0_36, %c0_37] : memref<9x1x256xf32, #tpu.memory_space<vmem>>, vector<1x1x256xf32>
    %68 = vector.shape_cast %67 : vector<1x1x256xf32> to vector<1x256xf32>
    %69 = vector.broadcast %68 : vector<1x256xf32> to vector<48x256xf32>
    %70 = arith.mulf %66, %69 : vector<48x256xf32>
    %71 = arith.addf %61, %70 : vector<48x256xf32>
    %c4 = arith.constant 4 : index
    %c0_38 = arith.constant 0 : index
    %c0_39 = arith.constant 0 : index
    %72 = vector.load %arg2[%c4, %c0_38, %c0_39] : memref<9x48x192xbf16, #tpu.memory_space<vmem>>, vector<1x48x192xbf16>
    %73 = vector.shape_cast %72 : vector<1x48x192xbf16> to vector<48x192xbf16>
    %74 = arith.truncf %32 : vector<192x256xf32> to vector<192x256xbf16>
    %cst_40 = arith.constant dense<0.000000e+00> : vector<48x256xf32>
    %75 = tpu.matmul %73, %74, %cst_40 {dimension_numbers = #tpu.dot_dimension_numbers<[1], [0], [0], [1], [0, 0, 1, 1], [], []>} : vector<48x192xbf16>, vector<192x256xbf16>, vector<48x256xf32> -> vector<48x256xf32>
    %76 = arith.addf %71, %75 : vector<48x256xf32>
    %c255_i32 = arith.constant 255 : i32
    %77 = tpu.dynamic_rotate %32 by %c255_i32 dim 1 : vector<192x256xf32>, i32 -> vector<192x256xf32>
    %c5 = arith.constant 5 : index
    %c0_41 = arith.constant 0 : index
    %c0_42 = arith.constant 0 : index
    %78 = vector.load %arg2[%c5, %c0_41, %c0_42] : memref<9x48x192xbf16, #tpu.memory_space<vmem>>, vector<1x48x192xbf16>
    %79 = vector.shape_cast %78 : vector<1x48x192xbf16> to vector<48x192xbf16>
    %80 = arith.truncf %77 : vector<192x256xf32> to vector<192x256xbf16>
    %cst_43 = arith.constant dense<0.000000e+00> : vector<48x256xf32>
    %81 = tpu.matmul %79, %80, %cst_43 {dimension_numbers = #tpu.dot_dimension_numbers<[1], [0], [0], [1], [0, 0, 1, 1], [], []>} : vector<48x192xbf16>, vector<192x256xbf16>, vector<48x256xf32> -> vector<48x256xf32>
    %c5_44 = arith.constant 5 : index
    %c0_45 = arith.constant 0 : index
    %c0_46 = arith.constant 0 : index
    %82 = vector.load %arg3[%c5_44, %c0_45, %c0_46] : memref<9x1x256xf32, #tpu.memory_space<vmem>>, vector<1x1x256xf32>
    %83 = vector.shape_cast %82 : vector<1x1x256xf32> to vector<1x256xf32>
    %84 = vector.broadcast %83 : vector<1x256xf32> to vector<48x256xf32>
    %85 = arith.mulf %81, %84 : vector<48x256xf32>
    %86 = arith.addf %76, %85 : vector<48x256xf32>
    %c243_i32 = arith.constant 243 : i32
    %87 = tpu.dynamic_rotate %32 by %c243_i32 dim 1 : vector<192x256xf32>, i32 -> vector<192x256xf32>
    %c6 = arith.constant 6 : index
    %c0_47 = arith.constant 0 : index
    %c0_48 = arith.constant 0 : index
    %88 = vector.load %arg2[%c6, %c0_47, %c0_48] : memref<9x48x192xbf16, #tpu.memory_space<vmem>>, vector<1x48x192xbf16>
    %89 = vector.shape_cast %88 : vector<1x48x192xbf16> to vector<48x192xbf16>
    %90 = arith.truncf %87 : vector<192x256xf32> to vector<192x256xbf16>
    %cst_49 = arith.constant dense<0.000000e+00> : vector<48x256xf32>
    %91 = tpu.matmul %89, %90, %cst_49 {dimension_numbers = #tpu.dot_dimension_numbers<[1], [0], [0], [1], [0, 0, 1, 1], [], []>} : vector<48x192xbf16>, vector<192x256xbf16>, vector<48x256xf32> -> vector<48x256xf32>
    %c6_50 = arith.constant 6 : index
    %c0_51 = arith.constant 0 : index
    %c0_52 = arith.constant 0 : index
    %92 = vector.load %arg3[%c6_50, %c0_51, %c0_52] : memref<9x1x256xf32, #tpu.memory_space<vmem>>, vector<1x1x256xf32>
    %93 = vector.shape_cast %92 : vector<1x1x256xf32> to vector<1x256xf32>
    %94 = vector.broadcast %93 : vector<1x256xf32> to vector<48x256xf32>
    %95 = arith.mulf %91, %94 : vector<48x256xf32>
    %96 = arith.addf %86, %95 : vector<48x256xf32>
    %c242_i32 = arith.constant 242 : i32
    %97 = tpu.dynamic_rotate %32 by %c242_i32 dim 1 : vector<192x256xf32>, i32 -> vector<192x256xf32>
    %c7 = arith.constant 7 : index
    %c0_53 = arith.constant 0 : index
    %c0_54 = arith.constant 0 : index
    %98 = vector.load %arg2[%c7, %c0_53, %c0_54] : memref<9x48x192xbf16, #tpu.memory_space<vmem>>, vector<1x48x192xbf16>
    %99 = vector.shape_cast %98 : vector<1x48x192xbf16> to vector<48x192xbf16>
    %100 = arith.truncf %97 : vector<192x256xf32> to vector<192x256xbf16>
    %cst_55 = arith.constant dense<0.000000e+00> : vector<48x256xf32>
    %101 = tpu.matmul %99, %100, %cst_55 {dimension_numbers = #tpu.dot_dimension_numbers<[1], [0], [0], [1], [0, 0, 1, 1], [], []>} : vector<48x192xbf16>, vector<192x256xbf16>, vector<48x256xf32> -> vector<48x256xf32>
    %c7_56 = arith.constant 7 : index
    %c0_57 = arith.constant 0 : index
    %c0_58 = arith.constant 0 : index
    %102 = vector.load %arg3[%c7_56, %c0_57, %c0_58] : memref<9x1x256xf32, #tpu.memory_space<vmem>>, vector<1x1x256xf32>
    %103 = vector.shape_cast %102 : vector<1x1x256xf32> to vector<1x256xf32>
    %104 = vector.broadcast %103 : vector<1x256xf32> to vector<48x256xf32>
    %105 = arith.mulf %101, %104 : vector<48x256xf32>
    %106 = arith.addf %96, %105 : vector<48x256xf32>
    %c241_i32 = arith.constant 241 : i32
    %107 = tpu.dynamic_rotate %32 by %c241_i32 dim 1 : vector<192x256xf32>, i32 -> vector<192x256xf32>
    %c8 = arith.constant 8 : index
    %c0_59 = arith.constant 0 : index
    %c0_60 = arith.constant 0 : index
    %108 = vector.load %arg2[%c8, %c0_59, %c0_60] : memref<9x48x192xbf16, #tpu.memory_space<vmem>>, vector<1x48x192xbf16>
    %109 = vector.shape_cast %108 : vector<1x48x192xbf16> to vector<48x192xbf16>
    %110 = arith.truncf %107 : vector<192x256xf32> to vector<192x256xbf16>
    %cst_61 = arith.constant dense<0.000000e+00> : vector<48x256xf32>
    %111 = tpu.matmul %109, %110, %cst_61 {dimension_numbers = #tpu.dot_dimension_numbers<[1], [0], [0], [1], [0, 0, 1, 1], [], []>} : vector<48x192xbf16>, vector<192x256xbf16>, vector<48x256xf32> -> vector<48x256xf32>
    %c8_62 = arith.constant 8 : index
    %c0_63 = arith.constant 0 : index
    %c0_64 = arith.constant 0 : index
    %112 = vector.load %arg3[%c8_62, %c0_63, %c0_64] : memref<9x1x256xf32, #tpu.memory_space<vmem>>, vector<1x1x256xf32>
    %113 = vector.shape_cast %112 : vector<1x1x256xf32> to vector<1x256xf32>
    %114 = vector.broadcast %113 : vector<1x256xf32> to vector<48x256xf32>
    %115 = arith.mulf %111, %114 : vector<48x256xf32>
    %116 = arith.addf %106, %115 : vector<48x256xf32>
    %117 = vector.extract_strided_slice %116 {offsets = [0, 0], sizes = [48, 196], strides = [1, 1]} : vector<48x256xf32> to vector<48x196xf32>
    %c0_65 = arith.constant 0 : index
    %c0_66 = arith.constant 0 : index
    %118 = vector.load %arg15[%c0_65, %c0_66] : memref<48x196xf32, #tpu.memory_space<vmem>>, vector<48x196xf32>
    tpu.vector_store %arg15[%c0_65, %c0_66], %117 {strides = array<i32>} : memref<48x196xf32, #tpu.memory_space<vmem>>, vector<48x196xf32>,
    %c10_i32 = arith.constant 10 : i32
    %c768_i32 = arith.constant 768 : i32
    %c0_i32_67 = arith.constant 0 : i32
    %119 = tpu.memref_slice %arg14[%c768_i32, %c0_i32_67] : memref<864x196xf32, #tpu.memory_space<any>> -> memref<48x196xf32, #tpu.memory_space<any>>
    %120 = tpu.memref_slice %arg16[%c10_i32] : memref<11x!tpu.dma_semaphore, #tpu.memory_space<semaphore_mem>> -> memref<1x!tpu.dma_semaphore, #tpu.memory_space<semaphore_mem>>
    %121 = tpu.memref_squeeze %120 : memref<1x!tpu.dma_semaphore, #tpu.memory_space<semaphore_mem>> -> memref<!tpu.dma_semaphore, #tpu.memory_space<semaphore_mem>>
    tpu.enqueue_dma source(%arg15 : memref<48x196xf32, #tpu.memory_space<vmem>>) target(%119 : memref<48x196xf32, #tpu.memory_space<any>>) target_semaphore(%121 : memref<!tpu.dma_semaphore, #tpu.memory_space<semaphore_mem>>)
    %c0_i32_68 = arith.constant 0 : i32
    %c0_i32_69 = arith.constant 0 : i32
    %c0_i32_70 = arith.constant 0 : i32
    %122 = tpu.memref_slice %arg14[%c0_i32_69, %c0_i32_70] : memref<864x196xf32, #tpu.memory_space<any>> -> memref<384x196xf32, #tpu.memory_space<any>>
    %123 = tpu.memref_slice %arg16[%c0_i32_68] : memref<11x!tpu.dma_semaphore, #tpu.memory_space<semaphore_mem>> -> memref<1x!tpu.dma_semaphore, #tpu.memory_space<semaphore_mem>>
    %124 = tpu.memref_squeeze %123 : memref<1x!tpu.dma_semaphore, #tpu.memory_space<semaphore_mem>> -> memref<!tpu.dma_semaphore, #tpu.memory_space<semaphore_mem>>
    tpu.wait_dma2 semaphore(%124 : memref<!tpu.dma_semaphore, #tpu.memory_space<semaphore_mem>>) src(%arg4 : memref<384x196xf32, #tpu.memory_space<any>>) dst(%122 : memref<384x196xf32, #tpu.memory_space<any>>)
    %c1_i32_71 = arith.constant 1 : i32
    %c384_i32_72 = arith.constant 384 : i32
    %c0_i32_73 = arith.constant 0 : i32
    %125 = tpu.memref_slice %arg14[%c384_i32_72, %c0_i32_73] : memref<864x196xf32, #tpu.memory_space<any>> -> memref<48x196xf32, #tpu.memory_space<any>>
    %126 = tpu.memref_slice %arg16[%c1_i32_71] : memref<11x!tpu.dma_semaphore, #tpu.memory_space<semaphore_mem>> -> memref<1x!tpu.dma_semaphore, #tpu.memory_space<semaphore_mem>>
    %127 = tpu.memref_squeeze %126 : memref<1x!tpu.dma_semaphore, #tpu.memory_space<semaphore_mem>> -> memref<!tpu.dma_semaphore, #tpu.memory_space<semaphore_mem>>
    tpu.wait_dma2 semaphore(%127 : memref<!tpu.dma_semaphore, #tpu.memory_space<semaphore_mem>>) src(%arg5 : memref<48x196xf32, #tpu.memory_space<any>>) dst(%125 : memref<48x196xf32, #tpu.memory_space<any>>)
    %c2_i32_74 = arith.constant 2 : i32
    %c432_i32_75 = arith.constant 432 : i32
    %c0_i32_76 = arith.constant 0 : i32
    %128 = tpu.memref_slice %arg14[%c432_i32_75, %c0_i32_76] : memref<864x196xf32, #tpu.memory_space<any>> -> memref<48x196xf32, #tpu.memory_space<any>>
    %129 = tpu.memref_slice %arg16[%c2_i32_74] : memref<11x!tpu.dma_semaphore, #tpu.memory_space<semaphore_mem>> -> memref<1x!tpu.dma_semaphore, #tpu.memory_space<semaphore_mem>>
    %130 = tpu.memref_squeeze %129 : memref<1x!tpu.dma_semaphore, #tpu.memory_space<semaphore_mem>> -> memref<!tpu.dma_semaphore, #tpu.memory_space<semaphore_mem>>
    tpu.wait_dma2 semaphore(%130 : memref<!tpu.dma_semaphore, #tpu.memory_space<semaphore_mem>>) src(%arg6 : memref<48x196xf32, #tpu.memory_space<any>>) dst(%128 : memref<48x196xf32, #tpu.memory_space<any>>)
    %c3_i32_77 = arith.constant 3 : i32
    %c480_i32_78 = arith.constant 480 : i32
    %c0_i32_79 = arith.constant 0 : i32
    %131 = tpu.memref_slice %arg14[%c480_i32_78, %c0_i32_79] : memref<864x196xf32, #tpu.memory_space<any>> -> memref<48x196xf32, #tpu.memory_space<any>>
    %132 = tpu.memref_slice %arg16[%c3_i32_77] : memref<11x!tpu.dma_semaphore, #tpu.memory_space<semaphore_mem>> -> memref<1x!tpu.dma_semaphore, #tpu.memory_space<semaphore_mem>>
    %133 = tpu.memref_squeeze %132 : memref<1x!tpu.dma_semaphore, #tpu.memory_space<semaphore_mem>> -> memref<!tpu.dma_semaphore, #tpu.memory_space<semaphore_mem>>
    tpu.wait_dma2 semaphore(%133 : memref<!tpu.dma_semaphore, #tpu.memory_space<semaphore_mem>>) src(%arg7 : memref<48x196xf32, #tpu.memory_space<any>>) dst(%131 : memref<48x196xf32, #tpu.memory_space<any>>)
    %c4_i32_80 = arith.constant 4 : i32
    %c528_i32_81 = arith.constant 528 : i32
    %c0_i32_82 = arith.constant 0 : i32
    %134 = tpu.memref_slice %arg14[%c528_i32_81, %c0_i32_82] : memref<864x196xf32, #tpu.memory_space<any>> -> memref<48x196xf32, #tpu.memory_space<any>>
    %135 = tpu.memref_slice %arg16[%c4_i32_80] : memref<11x!tpu.dma_semaphore, #tpu.memory_space<semaphore_mem>> -> memref<1x!tpu.dma_semaphore, #tpu.memory_space<semaphore_mem>>
    %136 = tpu.memref_squeeze %135 : memref<1x!tpu.dma_semaphore, #tpu.memory_space<semaphore_mem>> -> memref<!tpu.dma_semaphore, #tpu.memory_space<semaphore_mem>>
    tpu.wait_dma2 semaphore(%136 : memref<!tpu.dma_semaphore, #tpu.memory_space<semaphore_mem>>) src(%arg8 : memref<48x196xf32, #tpu.memory_space<any>>) dst(%134 : memref<48x196xf32, #tpu.memory_space<any>>)
    %c5_i32_83 = arith.constant 5 : i32
    %c576_i32_84 = arith.constant 576 : i32
    %c0_i32_85 = arith.constant 0 : i32
    %137 = tpu.memref_slice %arg14[%c576_i32_84, %c0_i32_85] : memref<864x196xf32, #tpu.memory_space<any>> -> memref<48x196xf32, #tpu.memory_space<any>>
    %138 = tpu.memref_slice %arg16[%c5_i32_83] : memref<11x!tpu.dma_semaphore, #tpu.memory_space<semaphore_mem>> -> memref<1x!tpu.dma_semaphore, #tpu.memory_space<semaphore_mem>>
    %139 = tpu.memref_squeeze %138 : memref<1x!tpu.dma_semaphore, #tpu.memory_space<semaphore_mem>> -> memref<!tpu.dma_semaphore, #tpu.memory_space<semaphore_mem>>
    tpu.wait_dma2 semaphore(%139 : memref<!tpu.dma_semaphore, #tpu.memory_space<semaphore_mem>>) src(%arg9 : memref<48x196xf32, #tpu.memory_space<any>>) dst(%137 : memref<48x196xf32, #tpu.memory_space<any>>)
    %c6_i32_86 = arith.constant 6 : i32
    %c624_i32_87 = arith.constant 624 : i32
    %c0_i32_88 = arith.constant 0 : i32
    %140 = tpu.memref_slice %arg14[%c624_i32_87, %c0_i32_88] : memref<864x196xf32, #tpu.memory_space<any>> -> memref<48x196xf32, #tpu.memory_space<any>>
    %141 = tpu.memref_slice %arg16[%c6_i32_86] : memref<11x!tpu.dma_semaphore, #tpu.memory_space<semaphore_mem>> -> memref<1x!tpu.dma_semaphore, #tpu.memory_space<semaphore_mem>>
    %142 = tpu.memref_squeeze %141 : memref<1x!tpu.dma_semaphore, #tpu.memory_space<semaphore_mem>> -> memref<!tpu.dma_semaphore, #tpu.memory_space<semaphore_mem>>
    tpu.wait_dma2 semaphore(%142 : memref<!tpu.dma_semaphore, #tpu.memory_space<semaphore_mem>>) src(%arg10 : memref<48x196xf32, #tpu.memory_space<any>>) dst(%140 : memref<48x196xf32, #tpu.memory_space<any>>)
    %c7_i32_89 = arith.constant 7 : i32
    %c672_i32_90 = arith.constant 672 : i32
    %c0_i32_91 = arith.constant 0 : i32
    %143 = tpu.memref_slice %arg14[%c672_i32_90, %c0_i32_91] : memref<864x196xf32, #tpu.memory_space<any>> -> memref<48x196xf32, #tpu.memory_space<any>>
    %144 = tpu.memref_slice %arg16[%c7_i32_89] : memref<11x!tpu.dma_semaphore, #tpu.memory_space<semaphore_mem>> -> memref<1x!tpu.dma_semaphore, #tpu.memory_space<semaphore_mem>>
    %145 = tpu.memref_squeeze %144 : memref<1x!tpu.dma_semaphore, #tpu.memory_space<semaphore_mem>> -> memref<!tpu.dma_semaphore, #tpu.memory_space<semaphore_mem>>
    tpu.wait_dma2 semaphore(%145 : memref<!tpu.dma_semaphore, #tpu.memory_space<semaphore_mem>>) src(%arg11 : memref<48x196xf32, #tpu.memory_space<any>>) dst(%143 : memref<48x196xf32, #tpu.memory_space<any>>)
    %c8_i32_92 = arith.constant 8 : i32
    %c720_i32_93 = arith.constant 720 : i32
    %c0_i32_94 = arith.constant 0 : i32
    %146 = tpu.memref_slice %arg14[%c720_i32_93, %c0_i32_94] : memref<864x196xf32, #tpu.memory_space<any>> -> memref<48x196xf32, #tpu.memory_space<any>>
    %147 = tpu.memref_slice %arg16[%c8_i32_92] : memref<11x!tpu.dma_semaphore, #tpu.memory_space<semaphore_mem>> -> memref<1x!tpu.dma_semaphore, #tpu.memory_space<semaphore_mem>>
    %148 = tpu.memref_squeeze %147 : memref<1x!tpu.dma_semaphore, #tpu.memory_space<semaphore_mem>> -> memref<!tpu.dma_semaphore, #tpu.memory_space<semaphore_mem>>
    tpu.wait_dma2 semaphore(%148 : memref<!tpu.dma_semaphore, #tpu.memory_space<semaphore_mem>>) src(%arg12 : memref<48x196xf32, #tpu.memory_space<any>>) dst(%146 : memref<48x196xf32, #tpu.memory_space<any>>)
    %c9_i32_95 = arith.constant 9 : i32
    %c816_i32_96 = arith.constant 816 : i32
    %c0_i32_97 = arith.constant 0 : i32
    %149 = tpu.memref_slice %arg14[%c816_i32_96, %c0_i32_97] : memref<864x196xf32, #tpu.memory_space<any>> -> memref<48x196xf32, #tpu.memory_space<any>>
    %150 = tpu.memref_slice %arg16[%c9_i32_95] : memref<11x!tpu.dma_semaphore, #tpu.memory_space<semaphore_mem>> -> memref<1x!tpu.dma_semaphore, #tpu.memory_space<semaphore_mem>>
    %151 = tpu.memref_squeeze %150 : memref<1x!tpu.dma_semaphore, #tpu.memory_space<semaphore_mem>> -> memref<!tpu.dma_semaphore, #tpu.memory_space<semaphore_mem>>
    tpu.wait_dma2 semaphore(%151 : memref<!tpu.dma_semaphore, #tpu.memory_space<semaphore_mem>>) src(%arg13 : memref<48x196xf32, #tpu.memory_space<any>>) dst(%149 : memref<48x196xf32, #tpu.memory_space<any>>)
    %c10_i32_98 = arith.constant 10 : i32
    %c768_i32_99 = arith.constant 768 : i32
    %c0_i32_100 = arith.constant 0 : i32
    %152 = tpu.memref_slice %arg14[%c768_i32_99, %c0_i32_100] : memref<864x196xf32, #tpu.memory_space<any>> -> memref<48x196xf32, #tpu.memory_space<any>>
    %153 = tpu.memref_slice %arg16[%c10_i32_98] : memref<11x!tpu.dma_semaphore, #tpu.memory_space<semaphore_mem>> -> memref<1x!tpu.dma_semaphore, #tpu.memory_space<semaphore_mem>>
    %154 = tpu.memref_squeeze %153 : memref<1x!tpu.dma_semaphore, #tpu.memory_space<semaphore_mem>> -> memref<!tpu.dma_semaphore, #tpu.memory_space<semaphore_mem>>
    tpu.wait_dma2 semaphore(%154 : memref<!tpu.dma_semaphore, #tpu.memory_space<semaphore_mem>>) src(%arg15 : memref<48x196xf32, #tpu.memory_space<vmem>>) dst(%152 : memref<48x196xf32, #tpu.memory_space<any>>)
    return
  }
  func.func @transform_0(%arg0: i32) -> (i32, i32) {
    %c0_i32 = arith.constant 0 : i32
    %c0_i32_0 = arith.constant 0 : i32
    %c0_i32_1 = arith.constant 0 : i32
    return %c0_i32, %c0_i32_0 : i32, i32
  }
  func.func @transform_1(%arg0: i32) -> (i32, i32, i32) {
    %c0_i32 = arith.constant 0 : i32
    %c0_i32_0 = arith.constant 0 : i32
    %c0_i32_1 = arith.constant 0 : i32
    %c0_i32_2 = arith.constant 0 : i32
    return %c0_i32, %c0_i32_0, %c0_i32_1 : i32, i32, i32
  }
  func.func @transform_2(%arg0: i32) -> (i32, i32, i32) {
    %c0_i32 = arith.constant 0 : i32
    %c0_i32_0 = arith.constant 0 : i32
    %c0_i32_1 = arith.constant 0 : i32
    %c0_i32_2 = arith.constant 0 : i32
    return %c0_i32, %c0_i32_0, %c0_i32_1 : i32, i32, i32
  }
}

</mosaic_0001>

<bundles_post_ra>
// kernel: conv2d_cat.1
= control target key start
LH: loop header
LB: loop body
LE: loop exit
PB: predicated region body
PF: predicated region fallthrough
CT: control target
= control target key end

     0   :  { %s9019_s0 = inlined_call_operand.vmem [shape: f32[192,196], index: 0, kind: input, shape index: {}]   ;;  %s9020_s1 = inlined_call_operand.vmem [shape: bf16[9,48,192], index: 1, kind: input, shape index: {}]   ;;  %s9021_s2 = inlined_call_operand.vmem [shape: f32[9,1,256], index: 2, kind: input, shape index: {}]   ;;  %s9022_s3 = inlined_call_operand.vmem [shape: f32[384,196], index: 3, kind: input, shape index: {}]   ;;  %s9023_s4 = inlined_call_operand.vmem [shape: f32[48,196], index: 4, kind: input, shape index: {}]   ;;  %s9024_s5 = inlined_call_operand.vmem [shape: f32[48,196], index: 5, kind: input, shape index: {}]   ;;  %s9025_s6 = inlined_call_operand.vmem [shape: f32[48,196], index: 6, kind: input, shape index: {}]   ;;  %s9026_s7 = inlined_call_operand.vmem [shape: f32[48,196], index: 7, kind: input, shape index: {}]   ;;  %s9027_s8 = inlined_call_operand.vmem [shape: f32[48,196], index: 8, kind: input, shape index: {}]   ;;  %s9028_s9 = inlined_call_operand.vmem [shape: f32[48,196], index: 9, kind: input, shape index: {}]   ;;  %s9029_s10 = inlined_call_operand.vmem [shape: f32[48,196], index: 10, kind: input, shape index: {}]   ;;  %s9030_s11 = inlined_call_operand.vmem [shape: f32[48,196], index: 11, kind: input, shape index: {}]   ;;  %s9031_s12 = inlined_call_operand.vmem [shape: f32[48,196], index: 12, kind: input, shape index: {}]   ;;  %s9032_s13 = inlined_call_operand.vmem [shape: f32[864,196], index: 13, kind: output, shape index: {}]  }
   0x1   :  { %v57_v0 = vld [vmem:[%s9022_s3] sm:$0xff]  ;;  %v59_v1 = vld [vmem:[%s9022_s3 + $0x8] sm:$0xff]  ;;  %v61_v2 = vld [vmem:[%s9022_s3 + $0x10] sm:$0xff] }
   0x2   :  { %58 = vst [vmem:[%s9032_s13] sm:$0xff] %v57_v0  ;;  %60 = vst [vmem:[%s9032_s13 + $0x8] sm:$0xff] %v59_v1  ;;  %v63_v3 = vld [vmem:[%s9022_s3 + $0x18] sm:$0xff]  ;;  %v65_v4 = vld [vmem:[%s9022_s3 + $0x20] sm:$0xff] }
   0x3   :  { %62 = vst [vmem:[%s9032_s13 + $0x10] sm:$0xff] %v61_v2  ;;  %v67_v5 = vld [vmem:[%s9022_s3 + $0x28] sm:$0xff]  ;;  %64 = vst [vmem:[%s9032_s13 + $0x18] sm:$0xff] %v63_v3  ;;  %v69_v6 = vld [vmem:[%s9022_s3 + $0x30] sm:$0xff] }
   0x4   :  { %66 = vst [vmem:[%s9032_s13 + $0x20] sm:$0xff] %v65_v4  ;;  %68 = vst [vmem:[%s9032_s13 + $0x28] sm:$0xff] %v67_v5  ;;  %v71_v7 = vld [vmem:[%s9022_s3 + $0x38] sm:$0xff]  ;;  %v73_v8 = vld [vmem:[%s9022_s3 + $0x40] sm:$0xff] }
   0x5   :  { %70 = vst [vmem:[%s9032_s13 + $0x30] sm:$0xff] %v69_v6  ;;  %72 = vst [vmem:[%s9032_s13 + $0x38] sm:$0xff] %v71_v7  ;;  %v75_v9 = vld [vmem:[%s9022_s3 + $0x48] sm:$0xff]  ;;  %v77_v10 = vld [vmem:[%s9022_s3 + $0x50] sm:$0xff] }
   0x6   :  { %74 = vst [vmem:[%s9032_s13 + $0x40] sm:$0xff] %v73_v8  ;;  %v79_v11 = vld [vmem:[%s9022_s3 + $0x58] sm:$0xff]  ;;  %76 = vst [vmem:[%s9032_s13 + $0x48] sm:$0xff] %v75_v9  ;;  %v81_v12 = vld [vmem:[%s9022_s3 + $0x60] sm:$0xff] }
   0x7   :  { %78 = vst [vmem:[%s9032_s13 + $0x50] sm:$0xff] %v77_v10  ;;  %80 = vst [vmem:[%s9032_s13 + $0x58] sm:$0xff] %v79_v11  ;;  %v83_v13 = vld [vmem:[%s9022_s3 + $0x68] sm:$0xff]  ;;  %v85_v14 = vld [vmem:[%s9022_s3 + $0x70] sm:$0xff] }
   0x8   :  { %82 = vst [vmem:[%s9032_s13 + $0x60] sm:$0xff] %v81_v12  ;;  %84 = vst [vmem:[%s9032_s13 + $0x68] sm:$0xff] %v83_v13  ;;  %v87_v15 = vld [vmem:[%s9022_s3 + $0x78] sm:$0xff]  ;;  %v89_v16 = vld [vmem:[%s9022_s3 + $0x80] sm:$0xff] }
   0x9   :  { %86 = vst [vmem:[%s9032_s13 + $0x70] sm:$0xff] %v85_v14  ;;  %v91_v17 = vld [vmem:[%s9022_s3 + $0x88] sm:$0xff]  ;;  %88 = vst [vmem:[%s9032_s13 + $0x78] sm:$0xff] %v87_v15  ;;  %v93_v18 = vld [vmem:[%s9022_s3 + $0x90] sm:$0xff] }
   0xa   :  { %90 = vst [vmem:[%s9032_s13 + $0x80] sm:$0xff] %v89_v16  ;;  %92 = vst [vmem:[%s9032_s13 + $0x88] sm:$0xff] %v91_v17  ;;  %v95_v19 = vld [vmem:[%s9022_s3 + $0x98] sm:$0xff]  ;;  %v97_v20 = vld [vmem:[%s9022_s3 + $0xa0] sm:$0xff] }
   0xb   :  { %94 = vst [vmem:[%s9032_s13 + $0x90] sm:$0xff] %v93_v18  ;;  %96 = vst [vmem:[%s9032_s13 + $0x98] sm:$0xff] %v95_v19  ;;  %v99_v21 = vld [vmem:[%s9022_s3 + $0xa8] sm:$0xff]  ;;  %v101_v22 = vld [vmem:[%s9022_s3 + $0xb0] sm:$0xff] }
   0xc   :  { %98 = vst [vmem:[%s9032_s13 + $0xa0] sm:$0xff] %v97_v20  ;;  %v103_v23 = vld [vmem:[%s9022_s3 + $0xb8] sm:$0xff]  ;;  %100 = vst [vmem:[%s9032_s13 + $0xa8] sm:$0xff] %v99_v21  ;;  %v105_v24 = vld [vmem:[%s9022_s3 + $0xc0] sm:$0xff] }
   0xd   :  { %102 = vst [vmem:[%s9032_s13 + $0xb0] sm:$0xff] %v101_v22  ;;  %104 = vst [vmem:[%s9032_s13 + $0xb8] sm:$0xff] %v103_v23  ;;  %v107_v25 = vld [vmem:[%s9022_s3 + $0xc8] sm:$0xff]  ;;  %v109_v26 = vld [vmem:[%s9022_s3 + $0xd0] sm:$0xff] }
   0xe   :  { %106 = vst [vmem:[%s9032_s13 + $0xc0] sm:$0xff] %v105_v24  ;;  %108 = vst [vmem:[%s9032_s13 + $0xc8] sm:$0xff] %v107_v25  ;;  %v111_v27 = vld [vmem:[%s9022_s3 + $0xd8] sm:$0xff]  ;;  %v113_v28 = vld [vmem:[%s9022_s3 + $0xe0] sm:$0xff] }
   0xf   :  { %110 = vst [vmem:[%s9032_s13 + $0xd0] sm:$0xff] %v109_v26  ;;  %v115_v29 = vld [vmem:[%s9022_s3 + $0xe8] sm:$0xff]  ;;  %112 = vst [vmem:[%s9032_s13 + $0xd8] sm:$0xff] %v111_v27  ;;  %v117_v30 = vld [vmem:[%s9022_s3 + $0xf0] sm:$0xff] }
  0x10   :  { %114 = vst [vmem:[%s9032_s13 + $0xe0] sm:$0xff] %v113_v28  ;;  %116 = vst [vmem:[%s9032_s13 + $0xe8] sm:$0xff] %v115_v29  ;;  %v119_v31 = vld [vmem:[%s9022_s3 + $0xf8] sm:$0xff]  ;;  %v121_v32 = vld [vmem:[%s9022_s3 + $0x100] sm:$0xff] }
  0x11   :  { %118 = vst [vmem:[%s9032_s13 + $0xf0] sm:$0xff] %v117_v30  ;;  %120 = vst [vmem:[%s9032_s13 + $0xf8] sm:$0xff] %v119_v31  ;;  %v123_v33 = vld [vmem:[%s9022_s3 + $0x108] sm:$0xff]  ;;  %v125_v34 = vld [vmem:[%s9022_s3 + $0x110] sm:$0xff] }
  0x12   :  { %122 = vst [vmem:[%s9032_s13 + $0x100] sm:$0xff] %v121_v32  ;;  %v127_v35 = vld [vmem:[%s9022_s3 + $0x118] sm:$0xff]  ;;  %124 = vst [vmem:[%s9032_s13 + $0x108] sm:$0xff] %v123_v33  ;;  %v129_v36 = vld [vmem:[%s9022_s3 + $0x120] sm:$0xff] }
  0x13   :  { %126 = vst [vmem:[%s9032_s13 + $0x110] sm:$0xff] %v125_v34  ;;  %128 = vst [vmem:[%s9032_s13 + $0x118] sm:$0xff] %v127_v35  ;;  %v131_v37 = vld [vmem:[%s9022_s3 + $0x128] sm:$0xff]  ;;  %v133_v38 = vld [vmem:[%s9022_s3 + $0x130] sm:$0xff] }
  0x14   :  { %130 = vst [vmem:[%s9032_s13 + $0x120] sm:$0xff] %v129_v36  ;;  %132 = vst [vmem:[%s9032_s13 + $0x128] sm:$0xff] %v131_v37  ;;  %v135_v39 = vld [vmem:[%s9022_s3 + $0x138] sm:$0xff]  ;;  %v137_v40 = vld [vmem:[%s9022_s3 + $0x140] sm:$0xff] }
  0x15   :  { %134 = vst [vmem:[%s9032_s13 + $0x130] sm:$0xff] %v133_v38  ;;  %v139_v41 = vld [vmem:[%s9022_s3 + $0x148] sm:$0xff]  ;;  %136 = vst [vmem:[%s9032_s13 + $0x138] sm:$0xff] %v135_v39  ;;  %v141_v42 = vld [vmem:[%s9022_s3 + $0x150] sm:$0xff] }
  0x16   :  { %138 = vst [vmem:[%s9032_s13 + $0x140] sm:$0xff] %v137_v40  ;;  %140 = vst [vmem:[%s9032_s13 + $0x148] sm:$0xff] %v139_v41  ;;  %v143_v43 = vld [vmem:[%s9022_s3 + $0x158] sm:$0xff]  ;;  %v145_v44 = vld [vmem:[%s9022_s3 + $0x160] sm:$0xff] }
  0x17   :  { %142 = vst [vmem:[%s9032_s13 + $0x150] sm:$0xff] %v141_v42  ;;  %144 = vst [vmem:[%s9032_s13 + $0x158] sm:$0xff] %v143_v43  ;;  %v147_v45 = vld [vmem:[%s9022_s3 + $0x168] sm:$0xff]  ;;  %v149_v46 = vld [vmem:[%s9022_s3 + $0x170] sm:$0xff] }
  0x18   :  { %146 = vst [vmem:[%s9032_s13 + $0x160] sm:$0xff] %v145_v44  ;;  %v151_v47 = vld [vmem:[%s9022_s3 + $0x178] sm:$0xff]  ;;  %148 = vst [vmem:[%s9032_s13 + $0x168] sm:$0xff] %v147_v45  ;;  %v153_v48 = vld [vmem:[%s9022_s3 + $0x180] sm:$0xff] }
  0x19   :  { %150 = vst [vmem:[%s9032_s13 + $0x170] sm:$0xff] %v149_v46  ;;  %152 = vst [vmem:[%s9032_s13 + $0x178] sm:$0xff] %v151_v47  ;;  %v155_v49 = vld [vmem:[%s9022_s3 + $0x188] sm:$0xff]  ;;  %v157_v50 = vld [vmem:[%s9022_s3 + $0x190] sm:$0xff] }
  0x1a   :  { %154 = vst [vmem:[%s9032_s13 + $0x180] sm:$0xff] %v153_v48  ;;  %156 = vst [vmem:[%s9032_s13 + $0x188] sm:$0xff] %v155_v49  ;;  %v159_v51 = vld [vmem:[%s9022_s3 + $0x198] sm:$0xff]  ;;  %v161_v52 = vld [vmem:[%s9022_s3 + $0x1a0] sm:$0xff] }
  0x1b   :  { %158 = vst [vmem:[%s9032_s13 + $0x190] sm:$0xff] %v157_v50  ;;  %v163_v53 = vld [vmem:[%s9022_s3 + $0x1a8] sm:$0xff]  ;;  %160 = vst [vmem:[%s9032_s13 + $0x198] sm:$0xff] %v159_v51  ;;  %v165_v54 = vld [vmem:[%s9022_s3 + $0x1b0] sm:$0xff] }
  0x1c   :  { %162 = vst [vmem:[%s9032_s13 + $0x1a0] sm:$0xff] %v161_v52  ;;  %164 = vst [vmem:[%s9032_s13 + $0x1a8] sm:$0xff] %v163_v53  ;;  %v167_v55 = vld [vmem:[%s9022_s3 + $0x1b8] sm:$0xff]  ;;  %v169_v56 = vld [vmem:[%s9022_s3 + $0x1c0] sm:$0xff] }
  0x1d   :  { %166 = vst [vmem:[%s9032_s13 + $0x1b0] sm:$0xff] %v165_v54  ;;  %168 = vst [vmem:[%s9032_s13 + $0x1b8] sm:$0xff] %v167_v55  ;;  %v171_v57 = vld [vmem:[%s9022_s3 + $0x1c8] sm:$0xff]  ;;  %v173_v58 = vld [vmem:[%s9022_s3 + $0x1d0] sm:$0xff] }
  0x1e   :  { %170 = vst [vmem:[%s9032_s13 + $0x1c0] sm:$0xff] %v169_v56  ;;  %v175_v59 = vld [vmem:[%s9022_s3 + $0x1d8] sm:$0xff]  ;;  %172 = vst [vmem:[%s9032_s13 + $0x1c8] sm:$0xff] %v171_v57  ;;  %v177_v60 = vld [vmem:[%s9022_s3 + $0x1e0] sm:$0xff] }
  0x1f   :  { %174 = vst [vmem:[%s9032_s13 + $0x1d0] sm:$0xff] %v173_v58  ;;  %176 = vst [vmem:[%s9032_s13 + $0x1d8] sm:$0xff] %v175_v59  ;;  %v179_v61 = vld [vmem:[%s9022_s3 + $0x1e8] sm:$0xff]  ;;  %v181_v62 = vld [vmem:[%s9022_s3 + $0x1f0] sm:$0xff] }
  0x20   :  { %178 = vst [vmem:[%s9032_s13 + $0x1e0] sm:$0xff] %v177_v60  ;;  %180 = vst [vmem:[%s9032_s13 + $0x1e8] sm:$0xff] %v179_v61  ;;  %v183_v63 = vld [vmem:[%s9022_s3 + $0x1f8] sm:$0xff]  ;;  %v185_v0 = vld [vmem:[%s9022_s3 + $0x200] sm:$0xff] }
  0x21   :  { %182 = vst [vmem:[%s9032_s13 + $0x1f0] sm:$0xff] %v181_v62  ;;  %v187_v1 = vld [vmem:[%s9022_s3 + $0x208] sm:$0xff]  ;;  %184 = vst [vmem:[%s9032_s13 + $0x1f8] sm:$0xff] %v183_v63  ;;  %v189_v2 = vld [vmem:[%s9022_s3 + $0x210] sm:$0xff] }
  0x22   :  { %186 = vst [vmem:[%s9032_s13 + $0x200] sm:$0xff] %v185_v0  ;;  %188 = vst [vmem:[%s9032_s13 + $0x208] sm:$0xff] %v187_v1  ;;  %v191_v3 = vld [vmem:[%s9022_s3 + $0x218] sm:$0xff]  ;;  %v193_v4 = vld [vmem:[%s9022_s3 + $0x220] sm:$0xff] }
  0x23   :  { %190 = vst [vmem:[%s9032_s13 + $0x210] sm:$0xff] %v189_v2  ;;  %192 = vst [vmem:[%s9032_s13 + $0x218] sm:$0xff] %v191_v3  ;;  %v195_v5 = vld [vmem:[%s9022_s3 + $0x228] sm:$0xff]  ;;  %v197_v6 = vld [vmem:[%s9022_s3 + $0x230] sm:$0xff] }
  0x24   :  { %194 = vst [vmem:[%s9032_s13 + $0x220] sm:$0xff] %v193_v4  ;;  %v199_v7 = vld [vmem:[%s9022_s3 + $0x238] sm:$0xff]  ;;  %196 = vst [vmem:[%s9032_s13 + $0x228] sm:$0xff] %v195_v5  ;;  %v201_v8 = vld [vmem:[%s9022_s3 + $0x240] sm:$0xff] }
  0x25   :  { %198 = vst [vmem:[%s9032_s13 + $0x230] sm:$0xff] %v197_v6  ;;  %200 = vst [vmem:[%s9032_s13 + $0x238] sm:$0xff] %v199_v7  ;;  %v203_v9 = vld [vmem:[%s9022_s3 + $0x248] sm:$0xff]  ;;  %v205_v10 = vld [vmem:[%s9022_s3 + $0x250] sm:$0xff] }
  0x26   :  { %202 = vst [vmem:[%s9032_s13 + $0x240] sm:$0xff] %v201_v8  ;;  %204 = vst [vmem:[%s9032_s13 + $0x248] sm:$0xff] %v203_v9  ;;  %v207_v11 = vld [vmem:[%s9022_s3 + $0x258] sm:$0xff]  ;;  %v209_v12 = vld [vmem:[%s9022_s3 + $0x260] sm:$0xff] }
  0x27   :  { %206 = vst [vmem:[%s9032_s13 + $0x250] sm:$0xff] %v205_v10  ;;  %v211_v13 = vld [vmem:[%s9022_s3 + $0x268] sm:$0xff]  ;;  %208 = vst [vmem:[%s9032_s13 + $0x258] sm:$0xff] %v207_v11  ;;  %v213_v14 = vld [vmem:[%s9022_s3 + $0x270] sm:$0xff] }
  0x28   :  { %210 = vst [vmem:[%s9032_s13 + $0x260] sm:$0xff] %v209_v12  ;;  %212 = vst [vmem:[%s9032_s13 + $0x268] sm:$0xff] %v211_v13  ;;  %v215_v15 = vld [vmem:[%s9022_s3 + $0x278] sm:$0xff]  ;;  %v217_v16 = vld [vmem:[%s9022_s3 + $0x280] sm:$0xff] }
  0x29   :  { %214 = vst [vmem:[%s9032_s13 + $0x270] sm:$0xff] %v213_v14  ;;  %216 = vst [vmem:[%s9032_s13 + $0x278] sm:$0xff] %v215_v15  ;;  %v219_v17 = vld [vmem:[%s9022_s3 + $0x288] sm:$0xff]  ;;  %v221_v18 = vld [vmem:[%s9022_s3 + $0x290] sm:$0xff] }
  0x2a   :  { %218 = vst [vmem:[%s9032_s13 + $0x280] sm:$0xff] %v217_v16  ;;  %v223_v19 = vld [vmem:[%s9022_s3 + $0x298] sm:$0xff]  ;;  %220 = vst [vmem:[%s9032_s13 + $0x288] sm:$0xff] %v219_v17  ;;  %v225_v20 = vld [vmem:[%s9022_s3 + $0x2a0] sm:$0xff] }
  0x2b   :  { %222 = vst [vmem:[%s9032_s13 + $0x290] sm:$0xff] %v221_v18  ;;  %224 = vst [vmem:[%s9032_s13 + $0x298] sm:$0xff] %v223_v19  ;;  %v227_v21 = vld [vmem:[%s9022_s3 + $0x2a8] sm:$0xff]  ;;  %v229_v22 = vld [vmem:[%s9022_s3 + $0x2b0] sm:$0xff] }
  0x2c   :  { %226 = vst [vmem:[%s9032_s13 + $0x2a0] sm:$0xff] %v225_v20  ;;  %228 = vst [vmem:[%s9032_s13 + $0x2a8] sm:$0xff] %v227_v21  ;;  %v231_v23 = vld [vmem:[%s9022_s3 + $0x2b8] sm:$0xff]  ;;  %v233_v24 = vld [vmem:[%s9022_s3 + $0x2c0] sm:$0xff] }
  0x2d   :  { %230 = vst [vmem:[%s9032_s13 + $0x2b0] sm:$0xff] %v229_v22  ;;  %v235_v25 = vld [vmem:[%s9022_s3 + $0x2c8] sm:$0xff]  ;;  %232 = vst [vmem:[%s9032_s13 + $0x2b8] sm:$0xff] %v231_v23  ;;  %v237_v26 = vld [vmem:[%s9022_s3 + $0x2d0] sm:$0xff] }
  0x2e   :  { %234 = vst [vmem:[%s9032_s13 + $0x2c0] sm:$0xff] %v233_v24  ;;  %236 = vst [vmem:[%s9032_s13 + $0x2c8] sm:$0xff] %v235_v25  ;;  %v239_v27 = vld [vmem:[%s9022_s3 + $0x2d8] sm:$0xff]  ;;  %v241_v28 = vld [vmem:[%s9022_s3 + $0x2e0] sm:$0xff] }
  0x2f   :  { %238 = vst [vmem:[%s9032_s13 + $0x2d0] sm:$0xff] %v237_v26  ;;  %240 = vst [vmem:[%s9032_s13 + $0x2d8] sm:$0xff] %v239_v27  ;;  %v243_v29 = vld [vmem:[%s9022_s3 + $0x2e8] sm:$0xff]  ;;  %v245_v30 = vld [vmem:[%s9022_s3 + $0x2f0] sm:$0xff] }
  0x30   :  { %242 = vst [vmem:[%s9032_s13 + $0x2e0] sm:$0xff] %v241_v28  ;;  %v247_v31 = vld [vmem:[%s9022_s3 + $0x2f8] sm:$0xff]  ;;  %244 = vst [vmem:[%s9032_s13 + $0x2e8] sm:$0xff] %v243_v29 }
  0x31   :  { %246 = vst [vmem:[%s9032_s13 + $0x2f0] sm:$0xff] %v245_v30  ;;  %248 = vst [vmem:[%s9032_s13 + $0x2f8] sm:$0xff] %v247_v31 }
  0x32   :  { %256 = vsyncadd [#allocation3], 12288  ;;  %v291_v32 = vld [vmem:[%s9023_s4] sm:$0xff]  ;;  %v293_v33 = vld [vmem:[%s9023_s4 + $0x8] sm:$0xff] }
  0x33   :  { %3819 = vst [vmem:[%s9032_s13 + $0x300] sm:$0xff] %v291_v32  ;;  %3820 = vst [vmem:[%s9032_s13 + $0x308] sm:$0xff] %v293_v33  ;;  %v295_v34 = vld [vmem:[%s9023_s4 + $0x10] sm:$0xff]  ;;  %v297_v35 = vld [vmem:[%s9023_s4 + $0x18] sm:$0xff] }
  0x34   :  { %v299_v36 = vld [vmem:[%s9023_s4 + $0x20] sm:$0xff]  ;;  %3821 = vst [vmem:[%s9032_s13 + $0x310] sm:$0xff] %v295_v34  ;;  %3822 = vst [vmem:[%s9032_s13 + $0x318] sm:$0xff] %v297_v35  ;;  %v301_v37 = vld [vmem:[%s9023_s4 + $0x28] sm:$0xff] }
  0x35   :  { %3823 = vst [vmem:[%s9032_s13 + $0x320] sm:$0xff] %v299_v36  ;;  %v303_v38 = vld [vmem:[%s9023_s4 + $0x30] sm:$0xff]  ;;  %v305_v39 = vld [vmem:[%s9023_s4 + $0x38] sm:$0xff]  ;;  %3824 = vst [vmem:[%s9032_s13 + $0x328] sm:$0xff] %v301_v37 }
  0x36   :  { %3825 = vst [vmem:[%s9032_s13 + $0x330] sm:$0xff] %v303_v38  ;;  %3826 = vst [vmem:[%s9032_s13 + $0x338] sm:$0xff] %v305_v39  ;;  %v307_v40 = vld [vmem:[%s9023_s4 + $0x40] sm:$0xff]  ;;  %v309_v41 = vld [vmem:[%s9023_s4 + $0x48] sm:$0xff] }
  0x37   :  { %v311_v42 = vld [vmem:[%s9023_s4 + $0x50] sm:$0xff]  ;;  %3827 = vst [vmem:[%s9032_s13 + $0x340] sm:$0xff] %v307_v40  ;;  %3828 = vst [vmem:[%s9032_s13 + $0x348] sm:$0xff] %v309_v41  ;;  %v313_v43 = vld [vmem:[%s9023_s4 + $0x58] sm:$0xff] }
  0x38   :  { %3829 = vst [vmem:[%s9032_s13 + $0x350] sm:$0xff] %v311_v42  ;;  %3830 = vst [vmem:[%s9032_s13 + $0x358] sm:$0xff] %v313_v43 }
  0x39   :  { %322 = vsyncadd [#allocation3 + $0x1], 1536  ;;  %v357_v44 = vld [vmem:[%s9024_s5] sm:$0xff]  ;;  %v359_v45 = vld [vmem:[%s9024_s5 + $0x8] sm:$0xff] }
  0x3a   :  { %3832 = vst [vmem:[%s9032_s13 + $0x360] sm:$0xff] %v357_v44  ;;  %3833 = vst [vmem:[%s9032_s13 + $0x368] sm:$0xff] %v359_v45  ;;  %v361_v46 = vld [vmem:[%s9024_s5 + $0x10] sm:$0xff]  ;;  %v363_v47 = vld [vmem:[%s9024_s5 + $0x18] sm:$0xff] }
  0x3b   :  { %v365_v48 = vld [vmem:[%s9024_s5 + $0x20] sm:$0xff]  ;;  %3834 = vst [vmem:[%s9032_s13 + $0x370] sm:$0xff] %v361_v46  ;;  %3835 = vst [vmem:[%s9032_s13 + $0x378] sm:$0xff] %v363_v47  ;;  %v367_v49 = vld [vmem:[%s9024_s5 + $0x28] sm:$0xff] }
  0x3c   :  { %3836 = vst [vmem:[%s9032_s13 + $0x380] sm:$0xff] %v365_v48  ;;  %v369_v50 = vld [vmem:[%s9024_s5 + $0x30] sm:$0xff]  ;;  %v371_v51 = vld [vmem:[%s9024_s5 + $0x38] sm:$0xff]  ;;  %3837 = vst [vmem:[%s9032_s13 + $0x388] sm:$0xff] %v367_v49 }
  0x3d   :  { %3838 = vst [vmem:[%s9032_s13 + $0x390] sm:$0xff] %v369_v50  ;;  %3839 = vst [vmem:[%s9032_s13 + $0x398] sm:$0xff] %v371_v51  ;;  %v373_v52 = vld [vmem:[%s9024_s5 + $0x40] sm:$0xff]  ;;  %v375_v53 = vld [vmem:[%s9024_s5 + $0x48] sm:$0xff] }
  0x3e   :  { %v377_v54 = vld [vmem:[%s9024_s5 + $0x50] sm:$0xff]  ;;  %3840 = vst [vmem:[%s9032_s13 + $0x3a0] sm:$0xff] %v373_v52  ;;  %3841 = vst [vmem:[%s9032_s13 + $0x3a8] sm:$0xff] %v375_v53  ;;  %v379_v55 = vld [vmem:[%s9024_s5 + $0x58] sm:$0xff] }
  0x3f   :  { %3842 = vst [vmem:[%s9032_s13 + $0x3b0] sm:$0xff] %v377_v54  ;;  %3843 = vst [vmem:[%s9032_s13 + $0x3b8] sm:$0xff] %v379_v55 }
  0x40   :  { %388 = vsyncadd [#allocation3 + $0x2], 1536  ;;  %v423_v56 = vld [vmem:[%s9025_s6] sm:$0xff]  ;;  %v425_v57 = vld [vmem:[%s9025_s6 + $0x8] sm:$0xff] }
  0x41   :  { %3845 = vst [vmem:[%s9032_s13 + $0x3c0] sm:$0xff] %v423_v56  ;;  %3846 = vst [vmem:[%s9032_s13 + $0x3c8] sm:$0xff] %v425_v57  ;;  %v427_v58 = vld [vmem:[%s9025_s6 + $0x10] sm:$0xff]  ;;  %v429_v59 = vld [vmem:[%s9025_s6 + $0x18] sm:$0xff] }
  0x42   :  { %v431_v60 = vld [vmem:[%s9025_s6 + $0x20] sm:$0xff]  ;;  %3847 = vst [vmem:[%s9032_s13 + $0x3d0] sm:$0xff] %v427_v58  ;;  %3848 = vst [vmem:[%s9032_s13 + $0x3d8] sm:$0xff] %v429_v59  ;;  %v433_v61 = vld [vmem:[%s9025_s6 + $0x28] sm:$0xff] }
  0x43   :  { %3849 = vst [vmem:[%s9032_s13 + $0x3e0] sm:$0xff] %v431_v60  ;;  %v435_v62 = vld [vmem:[%s9025_s6 + $0x30] sm:$0xff]  ;;  %v437_v63 = vld [vmem:[%s9025_s6 + $0x38] sm:$0xff]  ;;  %3850 = vst [vmem:[%s9032_s13 + $0x3e8] sm:$0xff] %v433_v61 }
  0x44   :  { %3851 = vst [vmem:[%s9032_s13 + $0x3f0] sm:$0xff] %v435_v62  ;;  %3852 = vst [vmem:[%s9032_s13 + $0x3f8] sm:$0xff] %v437_v63  ;;  %v439_v0 = vld [vmem:[%s9025_s6 + $0x40] sm:$0xff]  ;;  %v441_v1 = vld [vmem:[%s9025_s6 + $0x48] sm:$0xff] }
  0x45   :  { %v443_v2 = vld [vmem:[%s9025_s6 + $0x50] sm:$0xff]  ;;  %3853 = vst [vmem:[%s9032_s13 + $0x400] sm:$0xff] %v439_v0  ;;  %3854 = vst [vmem:[%s9032_s13 + $0x408] sm:$0xff] %v441_v1  ;;  %v445_v3 = vld [vmem:[%s9025_s6 + $0x58] sm:$0xff] }
  0x46   :  { %3855 = vst [vmem:[%s9032_s13 + $0x410] sm:$0xff] %v443_v2  ;;  %3856 = vst [vmem:[%s9032_s13 + $0x418] sm:$0xff] %v445_v3 }
  0x47   :  { %454 = vsyncadd [#allocation3 + $0x3], 1536  ;;  %v489_v4 = vld [vmem:[%s9026_s7] sm:$0xff]  ;;  %v491_v5 = vld [vmem:[%s9026_s7 + $0x8] sm:$0xff] }
  0x48   :  { %3858 = vst [vmem:[%s9032_s13 + $0x420] sm:$0xff] %v489_v4  ;;  %3859 = vst [vmem:[%s9032_s13 + $0x428] sm:$0xff] %v491_v5  ;;  %v493_v6 = vld [vmem:[%s9026_s7 + $0x10] sm:$0xff]  ;;  %v495_v7 = vld [vmem:[%s9026_s7 + $0x18] sm:$0xff] }
  0x49   :  { %v497_v8 = vld [vmem:[%s9026_s7 + $0x20] sm:$0xff]  ;;  %3860 = vst [vmem:[%s9032_s13 + $0x430] sm:$0xff] %v493_v6  ;;  %3861 = vst [vmem:[%s9032_s13 + $0x438] sm:$0xff] %v495_v7  ;;  %v499_v9 = vld [vmem:[%s9026_s7 + $0x28] sm:$0xff] }
  0x4a   :  { %3862 = vst [vmem:[%s9032_s13 + $0x440] sm:$0xff] %v497_v8  ;;  %v501_v10 = vld [vmem:[%s9026_s7 + $0x30] sm:$0xff]  ;;  %v503_v11 = vld [vmem:[%s9026_s7 + $0x38] sm:$0xff]  ;;  %3863 = vst [vmem:[%s9032_s13 + $0x448] sm:$0xff] %v499_v9 }
  0x4b   :  { %3864 = vst [vmem:[%s9032_s13 + $0x450] sm:$0xff] %v501_v10  ;;  %3865 = vst [vmem:[%s9032_s13 + $0x458] sm:$0xff] %v503_v11  ;;  %v505_v12 = vld [vmem:[%s9026_s7 + $0x40] sm:$0xff]  ;;  %v507_v13 = vld [vmem:[%s9026_s7 + $0x48] sm:$0xff] }
  0x4c   :  { %v509_v14 = vld [vmem:[%s9026_s7 + $0x50] sm:$0xff]  ;;  %3866 = vst [vmem:[%s9032_s13 + $0x460] sm:$0xff] %v505_v12  ;;  %3867 = vst [vmem:[%s9032_s13 + $0x468] sm:$0xff] %v507_v13  ;;  %v511_v15 = vld [vmem:[%s9026_s7 + $0x58] sm:$0xff] }
  0x4d   :  { %3868 = vst [vmem:[%s9032_s13 + $0x470] sm:$0xff] %v509_v14  ;;  %3869 = vst [vmem:[%s9032_s13 + $0x478] sm:$0xff] %v511_v15 }
  0x4e   :  { %520 = vsyncadd [#allocation3 + $0x4], 1536  ;;  %v555_v16 = vld [vmem:[%s9027_s8] sm:$0xff]  ;;  %v557_v17 = vld [vmem:[%s9027_s8 + $0x8] sm:$0xff] }
  0x4f   :  { %3871 = vst [vmem:[%s9032_s13 + $0x480] sm:$0xff] %v555_v16  ;;  %3872 = vst [vmem:[%s9032_s13 + $0x488] sm:$0xff] %v557_v17  ;;  %v559_v18 = vld [vmem:[%s9027_s8 + $0x10] sm:$0xff]  ;;  %v561_v19 = vld [vmem:[%s9027_s8 + $0x18] sm:$0xff] }
  0x50   :  { %v563_v20 = vld [vmem:[%s9027_s8 + $0x20] sm:$0xff]  ;;  %3873 = vst [vmem:[%s9032_s13 + $0x490] sm:$0xff] %v559_v18  ;;  %3874 = vst [vmem:[%s9032_s13 + $0x498] sm:$0xff] %v561_v19  ;;  %v565_v21 = vld [vmem:[%s9027_s8 + $0x28] sm:$0xff] }
  0x51   :  { %3875 = vst [vmem:[%s9032_s13 + $0x4a0] sm:$0xff] %v563_v20  ;;  %v567_v22 = vld [vmem:[%s9027_s8 + $0x30] sm:$0xff]  ;;  %v569_v23 = vld [vmem:[%s9027_s8 + $0x38] sm:$0xff]  ;;  %3876 = vst [vmem:[%s9032_s13 + $0x4a8] sm:$0xff] %v565_v21 }
  0x52   :  { %3877 = vst [vmem:[%s9032_s13 + $0x4b0] sm:$0xff] %v567_v22  ;;  %3878 = vst [vmem:[%s9032_s13 + $0x4b8] sm:$0xff] %v569_v23  ;;  %v571_v24 = vld [vmem:[%s9027_s8 + $0x40] sm:$0xff]  ;;  %v573_v25 = vld [vmem:[%s9027_s8 + $0x48] sm:$0xff] }
  0x53   :  { %v575_v26 = vld [vmem:[%s9027_s8 + $0x50] sm:$0xff]  ;;  %3879 = vst [vmem:[%s9032_s13 + $0x4c0] sm:$0xff] %v571_v24  ;;  %3880 = vst [vmem:[%s9032_s13 + $0x4c8] sm:$0xff] %v573_v25  ;;  %v577_v27 = vld [vmem:[%s9027_s8 + $0x58] sm:$0xff] }
  0x54   :  { %3881 = vst [vmem:[%s9032_s13 + $0x4d0] sm:$0xff] %v575_v26  ;;  %3882 = vst [vmem:[%s9032_s13 + $0x4d8] sm:$0xff] %v577_v27 }
  0x55   :  { %586 = vsyncadd [#allocation3 + $0x5], 1536  ;;  %v621_v28 = vld [vmem:[%s9028_s9] sm:$0xff]  ;;  %v623_v29 = vld [vmem:[%s9028_s9 + $0x8] sm:$0xff] }
  0x56   :  { %3884 = vst [vmem:[%s9032_s13 + $0x4e0] sm:$0xff] %v621_v28  ;;  %3885 = vst [vmem:[%s9032_s13 + $0x4e8] sm:$0xff] %v623_v29  ;;  %v625_v30 = vld [vmem:[%s9028_s9 + $0x10] sm:$0xff]  ;;  %v627_v31 = vld [vmem:[%s9028_s9 + $0x18] sm:$0xff] }
  0x57   :  { %v629_v32 = vld [vmem:[%s9028_s9 + $0x20] sm:$0xff]  ;;  %3886 = vst [vmem:[%s9032_s13 + $0x4f0] sm:$0xff] %v625_v30  ;;  %3887 = vst [vmem:[%s9032_s13 + $0x4f8] sm:$0xff] %v627_v31  ;;  %v631_v33 = vld [vmem:[%s9028_s9 + $0x28] sm:$0xff] }
  0x58   :  { %3888 = vst [vmem:[%s9032_s13 + $0x500] sm:$0xff] %v629_v32  ;;  %v633_v34 = vld [vmem:[%s9028_s9 + $0x30] sm:$0xff]  ;;  %v635_v35 = vld [vmem:[%s9028_s9 + $0x38] sm:$0xff]  ;;  %3889 = vst [vmem:[%s9032_s13 + $0x508] sm:$0xff] %v631_v33 }
  0x59   :  { %3890 = vst [vmem:[%s9032_s13 + $0x510] sm:$0xff] %v633_v34  ;;  %3891 = vst [vmem:[%s9032_s13 + $0x518] sm:$0xff] %v635_v35  ;;  %v637_v36 = vld [vmem:[%s9028_s9 + $0x40] sm:$0xff]  ;;  %v639_v37 = vld [vmem:[%s9028_s9 + $0x48] sm:$0xff] }
  0x5a   :  { %v641_v38 = vld [vmem:[%s9028_s9 + $0x50] sm:$0xff]  ;;  %3892 = vst [vmem:[%s9032_s13 + $0x520] sm:$0xff] %v637_v36  ;;  %3893 = vst [vmem:[%s9032_s13 + $0x528] sm:$0xff] %v639_v37  ;;  %v643_v39 = vld [vmem:[%s9028_s9 + $0x58] sm:$0xff] }
  0x5b   :  { %3894 = vst [vmem:[%s9032_s13 + $0x530] sm:$0xff] %v641_v38  ;;  %3895 = vst [vmem:[%s9032_s13 + $0x538] sm:$0xff] %v643_v39 }
  0x5c   :  { %652 = vsyncadd [#allocation3 + $0x6], 1536  ;;  %v687_v40 = vld [vmem:[%s9029_s10] sm:$0xff]  ;;  %v689_v41 = vld [vmem:[%s9029_s10 + $0x8] sm:$0xff] }
  0x5d   :  { %3897 = vst [vmem:[%s9032_s13 + $0x540] sm:$0xff] %v687_v40  ;;  %3898 = vst [vmem:[%s9032_s13 + $0x548] sm:$0xff] %v689_v41  ;;  %v691_v42 = vld [vmem:[%s9029_s10 + $0x10] sm:$0xff]  ;;  %v693_v43 = vld [vmem:[%s9029_s10 + $0x18] sm:$0xff] }
  0x5e   :  { %v695_v44 = vld [vmem:[%s9029_s10 + $0x20] sm:$0xff]  ;;  %3899 = vst [vmem:[%s9032_s13 + $0x550] sm:$0xff] %v691_v42  ;;  %3900 = vst [vmem:[%s9032_s13 + $0x558] sm:$0xff] %v693_v43  ;;  %v697_v45 = vld [vmem:[%s9029_s10 + $0x28] sm:$0xff] }
  0x5f   :  { %3901 = vst [vmem:[%s9032_s13 + $0x560] sm:$0xff] %v695_v44  ;;  %v699_v46 = vld [vmem:[%s9029_s10 + $0x30] sm:$0xff]  ;;  %v701_v47 = vld [vmem:[%s9029_s10 + $0x38] sm:$0xff]  ;;  %3902 = vst [vmem:[%s9032_s13 + $0x568] sm:$0xff] %v697_v45 }
  0x60   :  { %3903 = vst [vmem:[%s9032_s13 + $0x570] sm:$0xff] %v699_v46  ;;  %3904 = vst [vmem:[%s9032_s13 + $0x578] sm:$0xff] %v701_v47  ;;  %v703_v48 = vld [vmem:[%s9029_s10 + $0x40] sm:$0xff]  ;;  %v705_v49 = vld [vmem:[%s9029_s10 + $0x48] sm:$0xff] }
  0x61   :  { %v707_v50 = vld [vmem:[%s9029_s10 + $0x50] sm:$0xff]  ;;  %3905 = vst [vmem:[%s9032_s13 + $0x580] sm:$0xff] %v703_v48  ;;  %3906 = vst [vmem:[%s9032_s13 + $0x588] sm:$0xff] %v705_v49  ;;  %v709_v51 = vld [vmem:[%s9029_s10 + $0x58] sm:$0xff] }
  0x62   :  { %3907 = vst [vmem:[%s9032_s13 + $0x590] sm:$0xff] %v707_v50  ;;  %3908 = vst [vmem:[%s9032_s13 + $0x598] sm:$0xff] %v709_v51 }
  0x63   :  { %718 = vsyncadd [#allocation3 + $0x7], 1536  ;;  %v753_v52 = vld [vmem:[%s9030_s11] sm:$0xff]  ;;  %v755_v53 = vld [vmem:[%s9030_s11 + $0x8] sm:$0xff] }
  0x64   :  { %3910 = vst [vmem:[%s9032_s13 + $0x5a0] sm:$0xff] %v753_v52  ;;  %3911 = vst [vmem:[%s9032_s13 + $0x5a8] sm:$0xff] %v755_v53  ;;  %v757_v54 = vld [vmem:[%s9030_s11 + $0x10] sm:$0xff]  ;;  %v759_v55 = vld [vmem:[%s9030_s11 + $0x18] sm:$0xff] }
  0x65   :  { %v761_v56 = vld [vmem:[%s9030_s11 + $0x20] sm:$0xff]  ;;  %3912 = vst [vmem:[%s9032_s13 + $0x5b0] sm:$0xff] %v757_v54  ;;  %3913 = vst [vmem:[%s9032_s13 + $0x5b8] sm:$0xff] %v759_v55  ;;  %v763_v57 = vld [vmem:[%s9030_s11 + $0x28] sm:$0xff] }
  0x66   :  { %3914 = vst [vmem:[%s9032_s13 + $0x5c0] sm:$0xff] %v761_v56  ;;  %v765_v58 = vld [vmem:[%s9030_s11 + $0x30] sm:$0xff]  ;;  %v767_v59 = vld [vmem:[%s9030_s11 + $0x38] sm:$0xff]  ;;  %3915 = vst [vmem:[%s9032_s13 + $0x5c8] sm:$0xff] %v763_v57 }
  0x67   :  { %3916 = vst [vmem:[%s9032_s13 + $0x5d0] sm:$0xff] %v765_v58  ;;  %3917 = vst [vmem:[%s9032_s13 + $0x5d8] sm:$0xff] %v767_v59  ;;  %v769_v60 = vld [vmem:[%s9030_s11 + $0x40] sm:$0xff]  ;;  %v771_v61 = vld [vmem:[%s9030_s11 + $0x48] sm:$0xff] }
  0x68   :  { %v773_v62 = vld [vmem:[%s9030_s11 + $0x50] sm:$0xff]  ;;  %3918 = vst [vmem:[%s9032_s13 + $0x5e0] sm:$0xff] %v769_v60  ;;  %3919 = vst [vmem:[%s9032_s13 + $0x5e8] sm:$0xff] %v771_v61  ;;  %v775_v63 = vld [vmem:[%s9030_s11 + $0x58] sm:$0xff] }
  0x69   :  { %3920 = vst [vmem:[%s9032_s13 + $0x5f0] sm:$0xff] %v773_v62  ;;  %3921 = vst [vmem:[%s9032_s13 + $0x5f8] sm:$0xff] %v775_v63 }
  0x6a   :  { %784 = vsyncadd [#allocation3 + $0x8], 1536  ;;  %v819_v0 = vld [vmem:[%s9031_s12] sm:$0xff]  ;;  %v821_v1 = vld [vmem:[%s9031_s12 + $0x8] sm:$0xff]  ;;  %s5299_s10 = smov 15  }
  0x6b   :  { %3923 = vst [vmem:[%s9032_s13 + $0x660] sm:$0xff] %v819_v0  ;;  %3924 = vst [vmem:[%s9032_s13 + $0x668] sm:$0xff] %v821_v1  ;;  %v823_v2 = vld [vmem:[%s9031_s12 + $0x10] sm:$0xff]  ;;  %v825_v3 = vld [vmem:[%s9031_s12 + $0x18] sm:$0xff] }
  0x6c   :  { %v827_v4 = vld [vmem:[%s9031_s12 + $0x20] sm:$0xff]  ;;  %3925 = vst [vmem:[%s9032_s13 + $0x670] sm:$0xff] %v823_v2  ;;  %3926 = vst [vmem:[%s9032_s13 + $0x678] sm:$0xff] %v825_v3  ;;  %v829_v5 = vld [vmem:[%s9031_s12 + $0x28] sm:$0xff] }
  0x6d   :  { %3927 = vst [vmem:[%s9032_s13 + $0x680] sm:$0xff] %v827_v4  ;;  %v831_v6 = vld [vmem:[%s9031_s12 + $0x30] sm:$0xff]  ;;  %v833_v7 = vld [vmem:[%s9031_s12 + $0x38] sm:$0xff]  ;;  %3928 = vst [vmem:[%s9032_s13 + $0x688] sm:$0xff] %v829_v5 }
  0x6e   :  { %3929 = vst [vmem:[%s9032_s13 + $0x690] sm:$0xff] %v831_v6  ;;  %3930 = vst [vmem:[%s9032_s13 + $0x698] sm:$0xff] %v833_v7  ;;  %v835_v8 = vld [vmem:[%s9031_s12 + $0x40] sm:$0xff]  ;;  %v837_v9 = vld [vmem:[%s9031_s12 + $0x48] sm:$0xff] }
  0x6f   :  { %v839_v10 = vld [vmem:[%s9031_s12 + $0x50] sm:$0xff]  ;;  %3931 = vst [vmem:[%s9032_s13 + $0x6a0] sm:$0xff] %v835_v8  ;;  %3932 = vst [vmem:[%s9032_s13 + $0x6a8] sm:$0xff] %v837_v9  ;;  %v841_v11 = vld [vmem:[%s9031_s12 + $0x58] sm:$0xff] }
  0x70   :  { %3933 = vst [vmem:[%s9032_s13 + $0x6b0] sm:$0xff] %v839_v10  ;;  %3934 = vst [vmem:[%s9032_s13 + $0x6b8] sm:$0xff] %v841_v11  ;;  %v859_v12 = vld [vmem:[%s9019_s0 + $0x40] sm:$0xff]  ;;  %v861_v13 = vld [vmem:[%s9019_s0 + $0x50] sm:$0xff] }
  0x71   :  { %v851_v14 = vld [vmem:[%s9019_s0] sm:$0xff]  ;;  %v6610_v15 = vpack.i.bf16 %v861_v13, %v859_v12  ;;  %v853_v16 = vld [vmem:[%s9019_s0 + $0x10] sm:$0xff]  ;;  %v856_v45 = vld [vmem:[%s9019_s0 + $0x28] sm:$0xff] }
  0x72   :  { %v863_v17 = vld [vmem:[%s9019_s0 + $0x60] sm:$0xff]  ;;  %v865_v18 = vld [vmem:[%s9019_s0 + $0x70] sm:$0xff]  ;;  %v6621_v19 = vpack.i.bf16 %v853_v16, %v851_v14  ;;  %v858_v46 = vld [vmem:[%s9019_s0 + $0x38] sm:$0xff] }
  0x73   :  { %v855_v20 = vld [vmem:[%s9019_s0 + $0x20] sm:$0xff]  ;;  %v857_v21 = vld [vmem:[%s9019_s0 + $0x30] sm:$0xff]  ;;  %4175 = vrot.lane.b32.xlu1 %v6610_v15, %s5299_s10  ;;  %v6631_v22 = vpack.i.bf16 %v865_v18, %v863_v17  ;;  %v852_v48 = vld [vmem:[%s9019_s0 + $0x8] sm:$0xff] }
  0x74   :  { %4165 = vrot.lane.b32.xlu0 %v6621_v19, %s5299_s10  ;;  %v6635_v23 = vpack.i.bf16 %v857_v21, %v855_v20  ;;  %v871_v24 = vld [vmem:[%s9019_s0 + $0xa0] sm:$0xff]  ;;  %v873_v25 = vld [vmem:[%s9019_s0 + $0xb0] sm:$0xff]  ;;  %v854_v49 = vld [vmem:[%s9019_s0 + $0x18] sm:$0xff] }
  0x75   :  { %v867_v26 = vld [vmem:[%s9019_s0 + $0x80] sm:$0xff]  ;;  %v869_v27 = vld [vmem:[%s9019_s0 + $0x90] sm:$0xff]  ;;  %v6651_v28 = vpack.i.bf16 %v873_v25, %v871_v24 }
  0x76   :  { %v6655_v29 = vpack.i.bf16 %v869_v27, %v867_v26  ;;  %v879_v30 = vld [vmem:[%s9019_s0 + $0xe0] sm:$0xff]  ;;  %v881_v31 = vld [vmem:[%s9019_s0 + $0xf0] sm:$0xff] }
  0x77   :  { %4180 = vrot.lane.b32.xlu1 %v6631_v22, %s5299_s10  ;;  %v875_v32 = vld [vmem:[%s9019_s0 + $0xc0] sm:$0xff]  ;;  %v877_v33 = vld [vmem:[%s9019_s0 + $0xd0] sm:$0xff]  ;;  %v6671_v34 = vpack.i.bf16 %v881_v31, %v879_v30 }
  0x78   :  { %4170 = vrot.lane.b32.xlu0 %v6635_v23, %s5299_s10  ;;  %v6675_v35 = vpack.i.bf16 %v877_v33, %v875_v32  ;;  %v887_v36 = vld [vmem:[%s9019_s0 + $0x120] sm:$0xff]  ;;  %v889_v37 = vld [vmem:[%s9019_s0 + $0x130] sm:$0xff] }
  0x79   :  { %v883_v38 = vld [vmem:[%s9019_s0 + $0x100] sm:$0xff]  ;;  %v885_v39 = vld [vmem:[%s9019_s0 + $0x110] sm:$0xff]  ;;  %v6697_v42 = vpack.i.bf16 %v889_v37, %v887_v36 }
  0x7a   :  { %v895_v40 = vld [vmem:[%s9019_s0 + $0x160] sm:$0xff]  ;;  %v897_v41 = vld [vmem:[%s9019_s0 + $0x170] sm:$0xff]  ;;  %v6713_v47 = vpack.i.bf16 %v885_v39, %v883_v38 }
  0x7b   :  { %4190 = vrot.lane.b32.xlu1 %v6651_v28, %s5299_s10  ;;  %v891_v43 = vld [vmem:[%s9019_s0 + $0x140] sm:$0xff]  ;;  %v893_v44 = vld [vmem:[%s9019_s0 + $0x150] sm:$0xff] }
  0x7c   :  { %4185 = vrot.lane.b32.xlu0 %v6655_v29, %s5299_s10 }
  0x7f   :  { %4200 = vrot.lane.b32.xlu1 %v6671_v34, %s5299_s10 }
  0x80   :  { %4195 = vrot.lane.b32.xlu0 %v6675_v35, %s5299_s10 }
  0x81   :  { %850 = vsyncadd [#allocation3 + $0x9], 1536  ;;  %vm899_vm0 = vcmask 556032   ;;  %v6723_v50 = vpack.i.bf16 %v897_v41, %v895_v40  ;;  %v864_v51 = vld [vmem:[%s9019_s0 + $0x68] sm:$0xff]  ;;  %v866_v52 = vld [vmem:[%s9019_s0 + $0x78] sm:$0xff]  ;;  %v6733_v53 = vpack.i.bf16 %v893_v44, %v891_v43  ;;  %s5300_s26 = smov 14  }
  0x82   :  { %v902_v54 = vsel %vm899_vm0, %v856_v45, 0.0  ;;  %v903_v55 = vsel %vm899_vm0, %v858_v46, 0.0  ;;  %v860_v56 = vld [vmem:[%s9019_s0 + $0x48] sm:$0xff]  ;;  %v862_v57 = vld [vmem:[%s9019_s0 + $0x58] sm:$0xff]  ;;  %v900_v58 = vsel %vm899_vm0, %v852_v48, 0.0  ;;  %v901_v59 = vsel %vm899_vm0, %v854_v49, 0.0  ;;  %vm7917_vm7 = vmpackc.low %vm899_vm0, %vm899_vm0 }
  0x83   :  { %4210 = vrot.lane.b32.xlu1 %v6697_v42, %s5299_s10  ;;  %v6747_v60 = vpack.i.bf16 %v903_v55, %v902_v54  ;;  %v872_v61 = vld [vmem:[%s9019_s0 + $0xa8] sm:$0xff]  ;;  %v874_v62 = vld [vmem:[%s9019_s0 + $0xb8] sm:$0xff]  ;;  %v6757_v63 = vpack.i.bf16 %v901_v59, %v900_v58  ;;  %v906_v0 = vsel %vm899_vm0, %v864_v51, 0.0  ;;  %v907_v1 = vsel %vm899_vm0, %v866_v52, 0.0  ;;  %s5302_s30 = smov 1   ;;  %s5303_s14 = smov 127  }
  0x84   :  { %4205 = vrot.lane.b32.xlu0 %v6713_v47, %s5299_s10  ;;  %v868_v2 = vld [vmem:[%s9019_s0 + $0x88] sm:$0xff]  ;;  %v870_v3 = vld [vmem:[%s9019_s0 + $0x98] sm:$0xff]  ;;  %v904_v4 = vsel %vm899_vm0, %v860_v56, 0.0  ;;  %v905_v5 = vsel %vm899_vm0, %v862_v57, 0.0  ;;  %v6771_v6 = vpack.i.bf16 %v907_v1, %v906_v0  ;;  %v910_v10 = vsel %vm899_vm0, %v872_v61, 0.0  ;;  %s5304_s21 = smov 114  }
  0x85   :  { %v880_v7 = vld [vmem:[%s9019_s0 + $0xe8] sm:$0xff]  ;;  %v882_v8 = vld [vmem:[%s9019_s0 + $0xf8] sm:$0xff]  ;;  %v6781_v9 = vpack.i.bf16 %v905_v5, %v904_v4  ;;  %v911_v11 = vsel %vm899_vm0, %v874_v62, 0.0  ;;  %v908_v14 = vsel %vm899_vm0, %v868_v2, 0.0  ;;  %v909_v16 = vsel %vm899_vm0, %v870_v3, 0.0  ;;  %s5305_s11 = smov 115  }
  0x86   :  { %v876_v12 = vld [vmem:[%s9019_s0 + $0xc8] sm:$0xff]  ;;  %v878_v13 = vld [vmem:[%s9019_s0 + $0xd8] sm:$0xff]  ;;  %v6795_v17 = vpack.i.bf16 %v911_v11, %v910_v10  ;;  %v6805_v21 = vpack.i.bf16 %v909_v16, %v908_v14  ;;  %v914_v24 = vsel %vm899_vm0, %v880_v7, 0.0  ;;  %v915_v25 = vsel %vm899_vm0, %v882_v8, 0.0 }
  0x87   :  { %4220 = vrot.lane.b32.xlu1 %v6723_v50, %s5299_s10  ;;  %v888_v18 = vld [vmem:[%s9019_s0 + $0x128] sm:$0xff]  ;;  %v890_v20 = vld [vmem:[%s9019_s0 + $0x138] sm:$0xff]  ;;  %v912_v30 = vsel %vm899_vm0, %v876_v12, 0.0  ;;  %v913_v31 = vsel %vm899_vm0, %v878_v13, 0.0  ;;  %v6819_v32 = vpack.i.bf16 %v915_v25, %v914_v24  ;;  %vm1128_vm1 = vcmask 523264  }
  0x88   :  { %4215 = vrot.lane.b32.xlu0 %v6733_v53, %s5299_s10  ;;  %v884_v26 = vld [vmem:[%s9019_s0 + $0x108] sm:$0xff]  ;;  %v886_v27 = vld [vmem:[%s9019_s0 + $0x118] sm:$0xff]  ;;  %v6823_v33 = vpack.i.bf16 %v913_v31, %v912_v30  ;;  %v918_v36 = vsel %vm899_vm0, %v888_v18, 0.0  ;;  %v919_v37 = vsel %vm899_vm0, %v890_v20, 0.0  ;;  %v9033_v4 = vlaneseq }
  0x89   :  { %v916_v38 = vsel %vm899_vm0, %v884_v26, 0.0  ;;  %v917_v39 = vsel %vm899_vm0, %v886_v27, 0.0  ;;  %v896_v40 = vld [vmem:[%s9019_s0 + $0x168] sm:$0xff]  ;;  %v898_v41 = vld [vmem:[%s9019_s0 + $0x178] sm:$0xff]  ;;  %v6843_v45 = vpack.i.bf16 %v919_v37, %v918_v36 }
  0x8a   :  { %v892_v43 = vld [vmem:[%s9019_s0 + $0x148] sm:$0xff]  ;;  %v894_v44 = vld [vmem:[%s9019_s0 + $0x158] sm:$0xff]  ;;  %v6847_v46 = vpack.i.bf16 %v917_v39, %v916_v38  ;;  %v922_v48 = vsel %vm899_vm0, %v896_v40, 0.0  ;;  %v923_v49 = vsel %vm899_vm0, %v898_v41, 0.0  ;;  %v6955_v10 = vand.u32 127, %v9033_v4 }
  0x8b   :  { %4230 = vrot.lane.b32.xlu1 %v6747_v60, %s5299_s10  ;;  %v920_v51 = vsel %vm899_vm0, %v892_v43, 0.0  ;;  %v921_v52 = vsel %vm899_vm0, %v894_v44, 0.0  ;;  %v6855_v54 = vpack.i.bf16 %v923_v49, %v922_v48  ;;  %v5126_v56 = vld [vmem:[%s9020_s1 + $0x4] ss:$8 sps:$4 sm:$0xff]   ;;  %v5129_v7 = vld [vmem:[%s9020_s1 + $0x34] ss:$8 sps:$4 sm:$0xff]  }
  0x8c   :  { %4225 = vrot.lane.b32.xlu0 %v6757_v63, %s5299_s10  ;;  %v6859_v55 = vpack.i.bf16 %v921_v52, %v920_v51  ;;  %3942 = vmatprep.mubr.msk.bf16.mxu0 %vm1128_vm1, %v5126_v56  ;;  %vm1022_vm2 = vcmp.lt.s32.totalorder %v6955_v10, 15  ;;  %vm1321_vm3 = vcmp.lt.s32.totalorder %v6955_v10, 14  ;;  %vm1633_vm4 = vcmp.lt.s32.totalorder %v6955_v10, 13 }
  0x8d   :  { %3957 = vmatprep.mubr.msk.bf16.mxu1 %vm1128_vm1, %v5129_v7  ;;  %vm1945_vm5 = vcmp.lt.s32.totalorder %v6955_v10, 1  ;;  %vm2399_vm6 = vcmp.lt.s32.totalorder %v6955_v10, 127  ;;  %vm3023_vm8 = vcmp.lt.s32.totalorder %v6955_v10, 114  ;;  %vm2711_vm9 = vcmp.lt.s32.totalorder %v6955_v10, 115 }
  0x8e   :  { %vm3335_vm10 = vcmp.lt.s32.totalorder %v6955_v10, 113  ;;  %v5204_v10 = vld [vmem:[%s9020_s1 + $0x1a0] ss:$8 sps:$4 sm:$0xff]  }
  0x8f   :  { %4240 = vrot.lane.b32.xlu1 %v6771_v6, %s5299_s10 }
  0x90   :  { %4235 = vrot.lane.b32.xlu0 %v6781_v9, %s5299_s10 }
  0x93   :  { %4250 = vrot.lane.b32.xlu1 %v6795_v17, %s5299_s10 }
  0x94   :  { %4245 = vrot.lane.b32.xlu0 %v6805_v21, %s5299_s10 }
  0x97   :  { %4260 = vrot.lane.b32.xlu1 %v6819_v32, %s5299_s10 }
  0x98   :  { %4255 = vrot.lane.b32.xlu0 %v6823_v33, %s5299_s10 }
  0x9b   :  { %4270 = vrot.lane.b32.xlu1 %v6843_v45, %s5299_s10 }
  0x9c   :  { %4265 = vrot.lane.b32.xlu0 %v6847_v46, %s5299_s10 }
  0x9f   :  { %4280 = vrot.lane.b32.xlu1 %v6855_v54, %s5299_s10 }
  0xa0   :  { %4275 = vrot.lane.b32.xlu0 %v6859_v55, %s5299_s10  ;;  %s5301_s10 = smov 13  }
  0xa3   :  { %4290 = vrot.lane.b32.xlu1 %v6635_v23, %s5300_s26 }
  0xa4   :  { %4285 = vrot.lane.b32.xlu0 %v6621_v19, %s5300_s26 }
  0xa7   :  { %4300 = vrot.lane.b32.xlu1 %v6631_v22, %s5300_s26 }
  0xa8   :  { %4295 = vrot.lane.b32.xlu0 %v6610_v15, %s5300_s26 }
  0xab   :  { %4310 = vrot.lane.b32.xlu1 %v6651_v28, %s5300_s26 }
  0xac   :  { %4305 = vrot.lane.b32.xlu0 %v6655_v29, %s5300_s26 }
  0xaf   :  { %4320 = vrot.lane.b32.xlu1 %v6671_v34, %s5300_s26 }
  0xb0   :  { %4315 = vrot.lane.b32.xlu0 %v6675_v35, %s5300_s26 }
  0xb3   :  { %4330 = vrot.lane.b32.xlu1 %v6697_v42, %s5300_s26 }
  0xb4   :  { %4325 = vrot.lane.b32.xlu0 %v6713_v47, %s5300_s26 }
  0xb7   :  { %4340 = vrot.lane.b32.xlu1 %v6723_v50, %s5300_s26 }
  0xb8   :  { %4335 = vrot.lane.b32.xlu0 %v6733_v53, %s5300_s26 }
  0xbb   :  { %4350 = vrot.lane.b32.xlu1 %v6747_v60, %s5300_s26 }
  0xbc   :  { %4345 = vrot.lane.b32.xlu0 %v6757_v63, %s5300_s26 }
  0xbf   :  { %4360 = vrot.lane.b32.xlu1 %v6771_v6, %s5300_s26 }
  0xc0   :  { %4355 = vrot.lane.b32.xlu0 %v6781_v9, %s5300_s26 }
  0xc3   :  { %4370 = vrot.lane.b32.xlu1 %v6795_v17, %s5300_s26 }
  0xc4   :  { %4365 = vrot.lane.b32.xlu0 %v6805_v21, %s5300_s26 }
  0xc7   :  { %4380 = vrot.lane.b32.xlu1 %v6819_v32, %s5300_s26 }
  0xc8   :  { %4375 = vrot.lane.b32.xlu0 %v6823_v33, %s5300_s26 }
  0xcb   :  { %4390 = vrot.lane.b32.xlu1 %v6843_v45, %s5300_s26 }
  0xcc   :  { %4385 = vrot.lane.b32.xlu0 %v6847_v46, %s5300_s26 }
  0xcf   :  { %4400 = vrot.lane.b32.xlu1 %v6855_v54, %s5300_s26 }
  0xd0   :  { %4395 = vrot.lane.b32.xlu0 %v6859_v55, %s5300_s26 }
  0xd3   :  { %4410 = vrot.lane.b32.xlu1 %v6635_v23, %s5301_s10 }
  0xd4   :  { %4405 = vrot.lane.b32.xlu0 %v6621_v19, %s5301_s10 }
  0xd7   :  { %4420 = vrot.lane.b32.xlu1 %v6631_v22, %s5301_s10 }
  0xd8   :  { %4415 = vrot.lane.b32.xlu0 %v6610_v15, %s5301_s10 }
  0xdb   :  { %4430 = vrot.lane.b32.xlu1 %v6651_v28, %s5301_s10 }
  0xdc   :  { %4425 = vrot.lane.b32.xlu0 %v6655_v29, %s5301_s10 }
  0xdf   :  { %4440 = vrot.lane.b32.xlu1 %v6671_v34, %s5301_s10 }
  0xe0   :  { %4435 = vrot.lane.b32.xlu0 %v6675_v35, %s5301_s10 }
  0xe3   :  { %4450 = vrot.lane.b32.xlu1 %v6697_v42, %s5301_s10 }
  0xe4   :  { %4445 = vrot.lane.b32.xlu0 %v6713_v47, %s5301_s10 }
  0xe5   :  { %v6912_v57 = vpop.permute.xlu1 %4175 }
  0xe6   :  { %v4166_v58 = vpop.permute.xlu0 %4165  ;;  %v4178_v48 = vunpack.i.h.bf16 %v6912_v57  ;;  %v4177_v49 = vunpack.i.l.bf16 %v6912_v57 }
  0xe7   :  { %4460 = vrot.lane.b32.xlu1 %v6723_v50, %s5301_s10  ;;  %v4168_v24 = vunpack.i.h.bf16 %v4166_v58  ;;  %v4167_v25 = vunpack.i.l.bf16 %v4166_v58 }
  0xe8   :  { %4455 = vrot.lane.b32.xlu0 %v6733_v53, %s5301_s10 }
  0xe9   :  { %v6919_v59 = vpop.permute.xlu1 %4180 }
  0xea   :  { %v4171_v61 = vpop.permute.xlu0 %4170 }
  0xeb   :  { %4470 = vrot.lane.b32.xlu1 %v6747_v60, %s5301_s10  ;;  %v4173_v13 = vunpack.i.h.bf16 %v4171_v61  ;;  %v4172_v14 = vunpack.i.l.bf16 %v4171_v61 }
  0xec   :  { %4465 = vrot.lane.b32.xlu0 %v6757_v63, %s5301_s10 }
  0xed   :  { %v6925_v62 = vpop.permute.xlu1 %4190 }
  0xee   :  { %v6927_v0 = vpop.permute.xlu0 %4185 }
  0xef   :  { %4480 = vrot.lane.b32.xlu1 %v6771_v6, %s5301_s10 }
  0xf0   :  { %4475 = vrot.lane.b32.xlu0 %v6781_v9, %s5301_s10 }
  0xf1   :  { %v6933_v1 = vpop.permute.xlu1 %4200 }
  0xf2   :  { %v6935_v2 = vpop.permute.xlu0 %4195 }
  0xf3   :  { %4490 = vrot.lane.b32.xlu1 %v6795_v17, %s5301_s10 }
  0xf4   :  { %4485 = vrot.lane.b32.xlu0 %v6805_v21, %s5301_s10 }
  0xf5   :  { %v6941_v3 = vpop.permute.xlu1 %4210 }
  0xf6   :  { %v6943_v5 = vpop.permute.xlu0 %4205 }
  0xf7   :  { %4500 = vrot.lane.b32.xlu1 %v6819_v32, %s5301_s10 }
  0xf8   :  { %4495 = vrot.lane.b32.xlu0 %v6823_v33, %s5301_s10 }
  0xf9   :  { %v6952_v8 = vpop.permute.xlu1 %4220 }
  0xfa   :  { %v6957_v11 = vpop.permute.xlu0 %4215 }
  0xfb   :  { %4510 = vrot.lane.b32.xlu1 %v6843_v45, %s5301_s10 }
  0xfc   :  { %4505 = vrot.lane.b32.xlu0 %v6847_v46, %s5301_s10 }
  0xfd   :  { %v4231_v12 = vpop.permute.xlu1 %4230 }
  0xfe   :  { %v4233_v16 = vunpack.i.h.bf16 %v4231_v12  ;;  %v4232_v18 = vunpack.i.l.bf16 %v4231_v12  ;;  %v4226_v20 = vpop.permute.xlu0 %4225 }
  0xff   :  { %v4228_v26 = vunpack.i.h.bf16 %v4226_v20  ;;  %v4227_v27 = vunpack.i.l.bf16 %v4226_v20  ;;  %4520 = vrot.lane.b32.xlu1 %v6757_v63, %s5302_s30 }
 0x100   :  { %4515 = vrot.lane.b32.xlu0 %v6621_v19, %s5302_s30  ;;  %v1025_v30 = vsel %vm1022_vm2, %v4172_v14, %v4232_v18  ;;  %v1026_v31 = vsel %vm1022_vm2, %v4173_v13, %v4233_v16  ;;  %v1049_v58 = vsel %vm1022_vm2, %v4232_v18, %v4172_v14  ;;  %v1050_v61 = vsel %vm1022_vm2, %v4233_v16, %v4173_v13 }
 0x101   :  { %v4241_v36 = vpop.permute.xlu1 %4240  ;;  %v1023_v37 = vsel %vm1022_vm2, %v4167_v25, %v4227_v27  ;;  %v1024_v38 = vsel %vm1022_vm2, %v4168_v24, %v4228_v26  ;;  %v1047_v39 = vsel %vm1022_vm2, %v4227_v27, %v4167_v25  ;;  %v1048_v40 = vsel %vm1022_vm2, %v4228_v26, %v4168_v24 }
 0x102   :  { %v4236_v41 = vpop.permute.xlu0 %4235  ;;  %v1078_v43 = vpack.c.bf16 %v1024_v38, %v1023_v37  ;;  %v1077_v44 = vpack.c.bf16 %v1048_v40, %v1047_v39  ;;  %v1080_v56 = vpack.c.bf16 %v1026_v31, %v1025_v30  ;;  %v4243_v7 = vunpack.i.h.bf16 %v4241_v36 }
 0x103   :  { %v4238_v51 = vunpack.i.h.bf16 %v4236_v41  ;;  %v4237_v52 = vunpack.i.l.bf16 %v4236_v41  ;;  %4530 = vrot.lane.b32.xlu1 %v6747_v60, %s5302_s30  ;;  %v4242_v12 = vunpack.i.l.bf16 %v4241_v36  ;;  %v4182_v26 = vunpack.i.l.bf16 %v6919_v59 }
 0x104   :  { %4525 = vrot.lane.b32.xlu0 %v6635_v23, %s5302_s30  ;;  %1138 = vmatprep.subr.bf16.mxu0 %v1078_v43  ;;  %v4183_v23 = vunpack.i.h.bf16 %v6919_v59  ;;  %v1079_v13 = vpack.c.bf16 %v1050_v61, %v1049_v58  ;;  %v4187_v38 = vunpack.i.l.bf16 %v6927_v0 }
 0x105   :  { %1139 = vmatpush1.bf16.msra.mxu0 %v1077_v44  ;;  %v4251_v57 = vpop.permute.xlu1 %4250  ;;  %v1027_v20 = vsel %vm1022_vm2, %v4177_v49, %v4237_v52  ;;  %v1028_v24 = vsel %vm1022_vm2, %v4178_v48, %v4238_v51  ;;  %v1051_v16 = vsel %vm1022_vm2, %v4237_v52, %v4177_v49  ;;  %v1052_v18 = vsel %vm1022_vm2, %v4238_v51, %v4178_v48 }
 0x106   :  { %v4246_v25 = vpop.permute.xlu0 %4245  ;;  %1140 = vmatprep.subr.bf16.mxu0 %v1080_v56  ;;  %v1082_v14 = vpack.c.bf16 %v1028_v24, %v1027_v20  ;;  %v1029_v59 = vsel %vm1022_vm2, %v4182_v26, %v4242_v12  ;;  %v1030_v36 = vsel %vm1022_vm2, %v4183_v23, %v4243_v7  ;;  %v1081_v39 = vpack.c.bf16 %v1052_v18, %v1051_v16 }
 0x107   :  { %4540 = vrot.lane.b32.xlu1 %v6781_v9, %s5302_s30  ;;  %v4248_v27 = vunpack.i.h.bf16 %v4246_v25  ;;  %v4247_v30 = vunpack.i.l.bf16 %v4246_v25  ;;  %v1084_v40 = vpack.c.bf16 %v1030_v36, %v1029_v59  ;;  %v1053_v41 = vsel %vm1022_vm2, %v4242_v12, %v4182_v26 }
 0x108   :  { %4535 = vrot.lane.b32.xlu0 %v6610_v15, %s5302_s30  ;;  %v4188_v15 = vunpack.i.h.bf16 %v6927_v0  ;;  %v1054_v43 = vsel %vm1022_vm2, %v4243_v7, %v4183_v23  ;;  %v4253_v44 = vunpack.i.h.bf16 %v4251_v57  ;;  %v4252_v48 = vunpack.i.l.bf16 %v4251_v57 }
 0x109   :  { %1141 = vmatpush1.bf16.msra.mxu0 %v1079_v13  ;;  %v7005_v31 = vpop.permute.xlu1 %4260  ;;  %v1031_v0 = vsel %vm1022_vm2, %v4187_v38, %v4247_v30  ;;  %v4192_v56 = vunpack.i.l.bf16 %v6925_v62  ;;  %v1083_v58 = vpack.c.bf16 %v1054_v43, %v1053_v41  ;;  %v1055_v7 = vsel %vm1022_vm2, %v4247_v30, %v4187_v38 }
 0x10a   :  { %v4256_v37 = vpop.permute.xlu0 %4255  ;;  %1142 = vmatprep.subr.bf16.mxu0 %v1082_v14  ;;  %v1032_v51 = vsel %vm1022_vm2, %v4188_v15, %v4248_v27  ;;  %v1056_v12 = vsel %vm1022_vm2, %v4248_v27, %v4188_v15  ;;  %v4197_v26 = vunpack.i.l.bf16 %v6935_v2  ;;  %v4263_v27 = vunpack.i.h.bf16 %v7005_v31 }
 0x10b   :  { %4550 = vrot.lane.b32.xlu1 %v6771_v6, %s5302_s30  ;;  %v1086_v61 = vpack.c.bf16 %v1032_v51, %v1031_v0  ;;  %v4258_v57 = vunpack.i.h.bf16 %v4256_v37  ;;  %v4257_v20 = vunpack.i.l.bf16 %v4256_v37  ;;  %v1085_v13 = vpack.c.bf16 %v1056_v12, %v1055_v7 }
 0x10c   :  { %4545 = vrot.lane.b32.xlu0 %v6631_v22, %s5302_s30  ;;  %v4193_v22 = vunpack.i.h.bf16 %v6925_v62  ;;  %v1033_v62 = vsel %vm1022_vm2, %v4192_v56, %v4252_v48  ;;  %v1057_v16 = vsel %vm1022_vm2, %v4252_v48, %v4192_v56  ;;  %v4262_v30 = vunpack.i.l.bf16 %v7005_v31 }
 0x10d   :  { %1143 = vmatpush1.bf16.msra.mxu0 %v1081_v39  ;;  %v7021_v49 = vpop.permute.xlu1 %4270  ;;  %v1035_v59 = vsel %vm1022_vm2, %v4197_v26, %v4257_v20  ;;  %v4203_v37 = vunpack.i.h.bf16 %v6933_v1  ;;  %v4202_v15 = vunpack.i.l.bf16 %v6933_v1  ;;  %v1059_v39 = vsel %vm1022_vm2, %v4257_v20, %v4197_v26 }
 0x10e   :  { %v7027_v52 = vpop.permute.xlu0 %4265  ;;  %1144 = vmatprep.subr.bf16.mxu0 %v1084_v40  ;;  %v1034_v25 = vsel %vm1022_vm2, %v4193_v22, %v4253_v44  ;;  %v1058_v18 = vsel %vm1022_vm2, %v4253_v44, %v4193_v22  ;;  %v4208_v0 = vunpack.i.h.bf16 %v6943_v5  ;;  %v4207_v51 = vunpack.i.l.bf16 %v6943_v5 }
 0x10f   :  { %4560 = vrot.lane.b32.xlu1 %v6805_v21, %s5302_s30  ;;  %v1088_v14 = vpack.c.bf16 %v1034_v25, %v1033_v62  ;;  %v1087_v31 = vpack.c.bf16 %v1058_v18, %v1057_v16  ;;  %v4268_v41 = vunpack.i.h.bf16 %v7027_v52  ;;  %v4267_v43 = vunpack.i.l.bf16 %v7027_v52 }
 0x110   :  { %4555 = vrot.lane.b32.xlu0 %v6655_v29, %s5302_s30  ;;  %v4198_v29 = vunpack.i.h.bf16 %v6935_v2  ;;  %v1037_v44 = vsel %vm1022_vm2, %v4202_v15, %v4262_v30  ;;  %v1061_v56 = vsel %vm1022_vm2, %v4262_v30, %v4202_v15  ;;  %v4272_v7 = vunpack.i.l.bf16 %v7021_v49 }
 0x111   :  { %1145 = vmatpush1.bf16.msra.mxu0 %v1083_v58  ;;  %v7039_v24 = vpop.permute.xlu1 %4280  ;;  %v1062_v58 = vsel %vm1022_vm2, %v4263_v27, %v4203_v37  ;;  %v1039_v12 = vsel %vm1022_vm2, %v4207_v51, %v4267_v43  ;;  %v4213_v20 = vunpack.i.h.bf16 %v6941_v3  ;;  %v4212_v62 = vunpack.i.l.bf16 %v6941_v3 }
 0x112   :  { %v7045_v23 = vpop.permute.xlu0 %4275  ;;  %1146 = vmatprep.subr.bf16.mxu0 %v1086_v61  ;;  %v1060_v40 = vsel %vm1022_vm2, %v4258_v57, %v4198_v29  ;;  %v4273_v61 = vunpack.i.h.bf16 %v7021_v49  ;;  %v1091_v49 = vpack.c.bf16 %v1062_v58, %v1061_v56  ;;  %v1064_v26 = vsel %vm1022_vm2, %v4268_v41, %v4208_v0 }
 0x113   :  { %4570 = vrot.lane.b32.xlu1 %v6795_v17, %s5302_s30  ;;  %v1089_v52 = vpack.c.bf16 %v1060_v40, %v1059_v39  ;;  %v1041_v16 = vsel %vm1022_vm2, %v4212_v62, %v4272_v7  ;;  %v4217_v30 = vunpack.i.l.bf16 %v6957_v11  ;;  %v4283_v15 = vunpack.i.h.bf16 %v7039_v24 }
 0x114   :  { %4565 = vrot.lane.b32.xlu0 %v6651_v28, %s5302_s30  ;;  %v1036_v28 = vsel %vm1022_vm2, %v4198_v29, %v4258_v57  ;;  %v1063_v29 = vsel %vm1022_vm2, %v4267_v43, %v4207_v51  ;;  %v4223_v40 = vunpack.i.h.bf16 %v6952_v8 }
 0x115   :  { %1147 = vmatpush1.bf16.msra.mxu0 %v1085_v13  ;;  %v7059_v2 = vpop.permute.xlu1 %4290  ;;  %v1090_v38 = vpack.c.bf16 %v1036_v28, %v1035_v59  ;;  %v4278_v13 = vunpack.i.h.bf16 %v7045_v23  ;;  %v1065_v28 = vsel %vm1022_vm2, %v4272_v7, %v4212_v62 }
 0x116   :  { %v7065_v36 = vpop.permute.xlu0 %4285  ;;  %1148 = vmatprep.subr.bf16.mxu0 %v1088_v14  ;;  %v4277_v14 = vunpack.i.l.bf16 %v7045_v23  ;;  %v1093_v23 = vpack.c.bf16 %v1064_v26, %v1063_v29  ;;  %v1046_v51 = vsel %vm1022_vm2, %v4223_v40, %v4283_v15  ;;  %v1070_v58 = vsel %vm1022_vm2, %v4283_v15, %v4223_v40  ;;  %v5124_v15 = vld [vmem:[%s9020_s1] ss:$8 sps:$4 sm:$0xff]  }
 0x117   :  { %4580 = vrot.lane.b32.xlu1 %v6823_v33, %s5302_s30 }
 0x118   :  { %4575 = vrot.lane.b32.xlu0 %v6675_v35, %s5302_s30  ;;  %v1038_v35 = vsel %vm1022_vm2, %v4203_v37, %v4263_v27  ;;  %v4218_v27 = vunpack.i.h.bf16 %v6957_v11  ;;  %v1066_v37 = vsel %vm1022_vm2, %v4273_v61, %v4213_v20 }
 0x119   :  { %1149 = vmatpush1.bf16.msra.mxu0 %v1087_v31  ;;  %v7079_v1 = vpop.permute.xlu1 %4300  ;;  %v1092_v22 = vpack.c.bf16 %v1038_v35, %v1037_v44  ;;  %v4282_v31 = vunpack.i.l.bf16 %v7039_v24  ;;  %v1095_v24 = vpack.c.bf16 %v1066_v37, %v1065_v28  ;;  %v1067_v44 = vsel %vm1022_vm2, %v4277_v14, %v4217_v30  ;;  %v5206_v28 = vld [vmem:[%s9019_s0 + $0x30] sm:$0xff] }
 0x11a   :  { %v7085_v48 = vpop.permute.xlu0 %4295  ;;  %1150 = vmatprep.subr.bf16.mxu0 %v1090_v38  ;;  %v1043_v38 = vsel %vm1022_vm2, %v4217_v30, %v4277_v14  ;;  %v1068_v35 = vsel %vm1022_vm2, %v4278_v13, %v4218_v27 }
 0x11b   :  { %4590 = vrot.lane.b32.xlu1 %v6819_v32, %s5302_s30 }
 0x11c   :  { %4585 = vrot.lane.b32.xlu0 %v6671_v34, %s5302_s30  ;;  %v1040_v34 = vsel %vm1022_vm2, %v4208_v0, %v4268_v41  ;;  %v4222_v41 = vunpack.i.l.bf16 %v6952_v8 }
 0x11d   :  { %1151 = vmatpush1.bf16.msra.mxu0 %v1089_v52  ;;  %v7099_v5 = vpop.permute.xlu1 %4310  ;;  %v1094_v25 = vpack.c.bf16 %v1040_v34, %v1039_v12  ;;  %v4292_v12 = vunpack.i.l.bf16 %v7059_v2  ;;  %v4288_v34 = vunpack.i.h.bf16 %v7065_v36 }
 0x11e   :  { %v7105_v57 = vpop.permute.xlu0 %4305  ;;  %1152 = vmatprep.subr.bf16.mxu0 %v1092_v22  ;;  %v1045_v8 = vsel %vm1022_vm2, %v4222_v41, %v4282_v31  ;;  %v1069_v56 = vsel %vm1022_vm2, %v4282_v31, %v4222_v41  ;;  %v4298_v31 = vunpack.i.h.bf16 %v7085_v48  ;;  %v5133_v41 = vld [vmem:[%s9020_s1 + $0x14] ss:$8 sps:$4 sm:$0xff]  }
 0x11f   :  { %4600 = vrot.lane.b32.xlu1 %v6847_v46, %s5302_s30  ;;  %v1100_v22 = vpack.c.bf16 %v1046_v51, %v1045_v8  ;;  %v1099_v26 = vpack.c.bf16 %v1070_v58, %v1069_v56  ;;  %v4303_v56 = vunpack.i.h.bf16 %v7079_v1  ;;  %v4302_v58 = vunpack.i.l.bf16 %v7079_v1 }
 0x120   :  { %4595 = vrot.lane.b32.xlu0 %v6713_v47, %s5302_s30  ;;  %v1042_v47 = vsel %vm1022_vm2, %v4213_v20, %v4273_v61  ;;  %v4293_v61 = vunpack.i.h.bf16 %v7059_v2 }
 0x121   :  { %1153 = vmatpush1.bf16.msra.mxu0 %v1091_v49  ;;  %v7119_v3 = vpop.permute.xlu1 %4320  ;;  %v1096_v59 = vpack.c.bf16 %v1042_v47, %v1041_v16  ;;  %v4287_v49 = vunpack.i.l.bf16 %v7065_v36 }
 0x122   :  { %v7125_v18 = vpop.permute.xlu0 %4315  ;;  %1154 = vmatprep.subr.bf16.mxu0 %v1094_v25 }
 0x123   :  { %4610 = vrot.lane.b32.xlu1 %v6843_v45, %s5302_s30 }
 0x124   :  { %4605 = vrot.lane.b32.xlu0 %v6697_v42, %s5302_s30  ;;  %v1044_v42 = vsel %vm1022_vm2, %v4218_v27, %v4278_v13 }
 0x125   :  { %1155 = vmatpush1.bf16.msra.mxu0 %v1093_v23  ;;  %v7139_v11 = vpop.permute.xlu1 %4330  ;;  %v1098_v43 = vpack.c.bf16 %v1044_v42, %v1043_v38  ;;  %v4297_v38 = vunpack.i.l.bf16 %v7085_v48 }
 0x126   :  { %v7145_v39 = vpop.permute.xlu0 %4325  ;;  %1156 = vmatprep.subr.bf16.mxu0 %v1096_v59  ;;  %v5205_v59 = vld [vmem:[%s9019_s0 + $0x20] sm:$0xff] }
 0x127   :  { %4620 = vrot.lane.b32.xlu1 %v6859_v55, %s5302_s30  ;;  %v7202_v37 = vpack.i.bf16 %v5206_v28, %v5205_v59 }
 0x128   :  { %4615 = vrot.lane.b32.xlu0 %v6733_v53, %s5302_s30  ;;  %v1097_v53 = vpack.c.bf16 %v1068_v35, %v1067_v44 }
 0x129   :  { %1157 = vmatpush1.bf16.msra.mxu0 %v1095_v24  ;;  %v7157_v0 = vpop.permute.xlu1 %4340 }
 0x12a   :  { %v7163_v52 = vpop.permute.xlu0 %4335  ;;  %1158 = vmatprep.subr.bf16.mxu0 %v1098_v43 }
 0x12b   :  { %4630 = vrot.lane.b32.xlu1 %v6855_v54, %s5302_s30 }
 0x12c   :  { %4625 = vrot.lane.b32.xlu0 %v6723_v50, %s5302_s30 }
 0x12d   :  { %1159 = vmatpush1.bf16.msra.mxu0 %v1097_v53  ;;  %v4351_v7 = vpop.permute.xlu1 %4350 }
 0x12e   :  { %v4353_v20 = vunpack.i.h.bf16 %v4351_v7  ;;  %v4352_v62 = vunpack.i.l.bf16 %v4351_v7  ;;  %v4346_v50 = vpop.permute.xlu0 %4345  ;;  %1160 = vmatprep.subr.bf16.mxu0 %v1100_v22 }
 0x12f   :  { %v4348_v25 = vunpack.i.h.bf16 %v4346_v50  ;;  %v4347_v29 = vunpack.i.l.bf16 %v4346_v50  ;;  %4640 = vrot.lane.b32.xlu1 %v6621_v19, %s5303_s14 }
 0x130   :  { %4635 = vrot.lane.b32.xlu0 %v6859_v55, %s5301_s10  ;;  %v1324_v2 = vsel %vm1321_vm3, %v4292_v12, %v4352_v62  ;;  %v1325_v13 = vsel %vm1321_vm3, %v4293_v61, %v4353_v20  ;;  %v1348_v43 = vsel %vm1321_vm3, %v4352_v62, %v4292_v12  ;;  %v1349_v48 = vsel %vm1321_vm3, %v4353_v20, %v4293_v61  ;;  %v5207_v12 = vld [vmem:[%s9019_s0 + $0x40] sm:$0xff] }
 0x131   :  { %1161 = vmatpush1.bf16.msra.mxu0 %v1099_v26  ;;  %v7186_v14 = vpop.permute.xlu1 %4360  ;;  %v1322_v36 = vsel %vm1321_vm3, %v4287_v49, %v4347_v29  ;;  %v1323_v16 = vsel %vm1321_vm3, %v4288_v34, %v4348_v25  ;;  %v1346_v19 = vsel %vm1321_vm3, %v4347_v29, %v4287_v49  ;;  %v1347_v47 = vsel %vm1321_vm3, %v4348_v25, %v4288_v34  ;;  %v5208_v34 = vld [vmem:[%s9019_s0 + $0x50] sm:$0xff] }
 0x132   :  { %v4356_v27 = vpop.permute.xlu0 %4355  ;;  %v1378_v30 = vpack.c.bf16 %v1323_v16, %v1322_v36  ;;  %v1377_v23 = vpack.c.bf16 %v1347_v47, %v1346_v19  ;;  %v1380_v24 = vpack.c.bf16 %v1325_v13, %v1324_v2  ;;  %v4363_v44 = vunpack.i.h.bf16 %v7186_v14  ;;  %v5135_v13 = vld [vmem:[%s9020_s1 + $0x10] ss:$8 sps:$4 sm:$0xff]   ;;  %v5139_v19 = vld [vmem:[%s9020_s1 + $0x24] ss:$8 sps:$4 sm:$0xff]  }
 0x133   :  { %v4358_v42 = vunpack.i.h.bf16 %v4356_v27  ;;  %v4357_v40 = vunpack.i.l.bf16 %v4356_v27  ;;  %4650 = vrot.lane.b32.xlu1 %v6855_v54, %s5301_s10  ;;  %v4362_v35 = vunpack.i.l.bf16 %v7186_v14  ;;  %v1379_v61 = vpack.c.bf16 %v1349_v48, %v1348_v43  ;;  %v5209_v27 = vld [vmem:[%s9019_s0 + $0x60] sm:$0xff] }
 0x134   :  { %4645 = vrot.lane.b32.xlu0 %v6757_v63, %s5303_s14  ;;  %1437 = vmatprep.subr.bf16.mxu1 %v1378_v30  ;;  %v7241_v20 = vpack.i.bf16 %v5208_v34, %v5207_v12  ;;  %v1329_v26 = vsel %vm1321_vm3, %v4303_v56, %v4363_v44  ;;  %v4308_v14 = vunpack.i.h.bf16 %v7105_v57  ;;  %v4307_v36 = vunpack.i.l.bf16 %v7105_v57  ;;  %v5210_v57 = vld [vmem:[%s9019_s0 + $0x70] sm:$0xff]  ;;  %v5141_v12 = vld [vmem:[%s9020_s1 + $0x20] ss:$8 sps:$4 sm:$0xff]  }
 0x135   :  { %1438 = vmatpush1.bf16.msra.mxu1 %v1377_v23  ;;  %v7222_v8 = vpop.permute.xlu1 %4370  ;;  %v1326_v51 = vsel %vm1321_vm3, %v4297_v38, %v4357_v40  ;;  %v1327_v53 = vsel %vm1321_vm3, %v4298_v31, %v4358_v42  ;;  %1171 = vmatmul.mubr.bf16.vlgmr.msra.gmra.mrb[0].mxu0 %v5124_v15  ;;  %v1350_v1 = vsel %vm1321_vm3, %v4357_v40, %v4297_v38  ;;  %v4318_v34 = vunpack.i.h.bf16 %v7125_v18 }
 0x136   :  { %v4366_v22 = vpop.permute.xlu0 %4365  ;;  %1439 = vmatprep.subr.bf16.mxu1 %v1380_v24  ;;  %3943 = vmatprep.mubr.msk.bf16.mxu0 %vm1128_vm1, %v5133_v41  ;;  %v1382_v7 = vpack.c.bf16 %v1327_v53, %v1326_v51  ;;  %v1351_v62 = vsel %vm1321_vm3, %v4358_v42, %v4298_v31  ;;  %v1328_v29 = vsel %vm1321_vm3, %v4302_v58, %v4362_v35  ;;  %v4373_v28 = vunpack.i.h.bf16 %v7222_v8 }
 0x137   :  { %4660 = vrot.lane.b32.xlu1 %v6747_v60, %s5303_s14  ;;  %v4368_v50 = vunpack.i.h.bf16 %v4366_v22  ;;  %v4367_v49 = vunpack.i.l.bf16 %v4366_v22  ;;  %v1381_v16 = vpack.c.bf16 %v1351_v62, %v1350_v1  ;;  %v1384_v47 = vpack.c.bf16 %v1329_v26, %v1328_v29  ;;  %v5213_v29 = vld [vmem:[%s9019_s0 + $0xa0] sm:$0xff] }
 0x138   :  { %4655 = vrot.lane.b32.xlu0 %v7202_v37, %s5303_s14  ;;  %v7273_v30 = vpack.i.bf16 %v5210_v57, %v5209_v27  ;;  %v1352_v23 = vsel %vm1321_vm3, %v4362_v35, %v4302_v58  ;;  %v1353_v59 = vsel %vm1321_vm3, %v4363_v44, %v4303_v56  ;;  %v4372_v15 = vunpack.i.l.bf16 %v7222_v8  ;;  %v5211_v44 = vld [vmem:[%s9019_s0 + $0x80] sm:$0xff]  ;;  %v5212_v35 = vld [vmem:[%s9019_s0 + $0x90] sm:$0xff] }
 0x139   :  { %1440 = vmatpush1.bf16.msra.mxu1 %v1379_v61  ;;  %v7247_v25 = vpop.permute.xlu1 %4380  ;;  %v1330_v38 = vsel %vm1321_vm3, %v4307_v36, %v4367_v49  ;;  %v1331_v42 = vsel %vm1321_vm3, %v4308_v14, %v4368_v50  ;;  %v4313_v41 = vunpack.i.h.bf16 %v7099_v5  ;;  %v4312_v24 = vunpack.i.l.bf16 %v7099_v5 }
 0x13a   :  { %v7253_v2 = vpop.permute.xlu0 %4375  ;;  %1441 = vmatprep.subr.bf16.mxu1 %v1382_v7  ;;  %v1383_v43 = vpack.c.bf16 %v1353_v59, %v1352_v23  ;;  %v1386_v48 = vpack.c.bf16 %v1331_v42, %v1330_v38  ;;  %v7302_v8 = vpack.i.bf16 %v5212_v35, %v5211_v44  ;;  %v1354_v5 = vsel %vm1321_vm3, %v4367_v49, %v4307_v36 }
 0x13b   :  { %4670 = vrot.lane.b32.xlu1 %v6781_v9, %s5303_s14  ;;  %v1355_v51 = vsel %vm1321_vm3, %v4368_v50, %v4308_v14  ;;  %v4378_v53 = vunpack.i.h.bf16 %v7253_v2  ;;  %v4377_v22 = vunpack.i.l.bf16 %v7253_v2  ;;  %v1332_v58 = vsel %vm1321_vm3, %v4312_v24, %v4372_v15  ;;  %v5147_v50 = vld [vmem:[%s9020_s1 + $0x64] ss:$8 sps:$4 sm:$0xff]  }
 0x13c   :  { %4665 = vrot.lane.b32.xlu0 %v7241_v20, %s5303_s14  ;;  %v1333_v61 = vsel %vm1321_vm3, %v4313_v41, %v4373_v28  ;;  %v4317_v1 = vunpack.i.l.bf16 %v7125_v18  ;;  %v1385_v62 = vpack.c.bf16 %v1355_v51, %v1354_v5  ;;  %v5214_v18 = vld [vmem:[%s9019_s0 + $0xb0] sm:$0xff]  ;;  %v1356_v2 = vsel %vm1321_vm3, %v4372_v15, %v4312_v24 }
 0x13d   :  { %1442 = vmatpush1.bf16.msra.mxu1 %v1381_v16  ;;  %v7281_v31 = vpop.permute.xlu1 %4390  ;;  %1181 = vmatmul.mubr.bf16.gmra.mrb[4].mxu0 %v5135_v13  ;;  %v1388_v49 = vpack.c.bf16 %v1333_v61, %v1332_v58  ;;  %v7336_v26 = vpack.i.bf16 %v5214_v18, %v5213_v29  ;;  %v1357_v13 = vsel %vm1321_vm3, %v4373_v28, %v4313_v41  ;;  %v4383_v14 = vunpack.i.h.bf16 %v7247_v25  ;;  %v5215_v28 = vld [vmem:[%s9019_s0 + $0xc0] sm:$0xff]  ;;  %v5216_v15 = vld [vmem:[%s9019_s0 + $0xd0] sm:$0xff] }
 0x13e   :  { %v7287_v40 = vpop.permute.xlu0 %4385  ;;  %1443 = vmatprep.subr.bf16.mxu1 %v1384_v47  ;;  %3944 = vmatprep.mubr.msk.bf16.mxu0 %vm1128_vm1, %v5139_v19  ;;  %v4382_v36 = vunpack.i.l.bf16 %v7247_v25  ;;  %v1334_v19 = vsel %vm1321_vm3, %v4317_v1, %v4377_v22  ;;  %v1335_v47 = vsel %vm1321_vm3, %v4318_v34, %v4378_v53  ;;  %v4323_v57 = vunpack.i.h.bf16 %v7119_v3  ;;  %v5218_v58 = vld [vmem:[%s9019_s0 + $0xf0] sm:$0xff] }
 0x13f   :  { %4680 = vrot.lane.b32.xlu1 %v6771_v6, %s5303_s14  ;;  %v4322_v23 = vunpack.i.l.bf16 %v7119_v3  ;;  %v1387_v25 = vpack.c.bf16 %v1357_v13, %v1356_v2  ;;  %v1390_v59 = vpack.c.bf16 %v1335_v47, %v1334_v19  ;;  %v7365_v38 = vpack.i.bf16 %v5216_v15, %v5215_v28 }
 0x140   :  { %4675 = vrot.lane.b32.xlu0 %v7273_v30, %s5303_s14  ;;  %v1358_v3 = vsel %vm1321_vm3, %v4377_v22, %v4317_v1  ;;  %v1359_v42 = vsel %vm1321_vm3, %v4378_v53, %v4318_v34  ;;  %v4388_v41 = vunpack.i.h.bf16 %v7287_v40  ;;  %v4387_v24 = vunpack.i.l.bf16 %v7287_v40  ;;  %v5217_v22 = vld [vmem:[%s9019_s0 + $0xe0] sm:$0xff] }
 0x141   :  { %1444 = vmatpush1.bf16.msra.mxu1 %v1383_v43  ;;  %v7310_v56 = vpop.permute.xlu1 %4400  ;;  %v1337_v44 = vsel %vm1321_vm3, %v4323_v57, %v4383_v14  ;;  %v4328_v5 = vunpack.i.h.bf16 %v7145_v39  ;;  %v4327_v51 = vunpack.i.l.bf16 %v7145_v39  ;;  %v1389_v40 = vpack.c.bf16 %v1359_v42, %v1358_v3 }
 0x142   :  { %v7316_v7 = vpop.permute.xlu0 %4395  ;;  %1445 = vmatprep.subr.bf16.mxu1 %v1386_v48  ;;  %v1336_v48 = vsel %vm1321_vm3, %v4322_v23, %v4382_v36  ;;  %v7393_v61 = vpack.i.bf16 %v5218_v58, %v5217_v22  ;;  %v1360_v39 = vsel %vm1321_vm3, %v4382_v36, %v4322_v23  ;;  %v4393_v34 = vunpack.i.h.bf16 %v7281_v31  ;;  %v5220_v36 = vld [vmem:[%s9019_s0 + $0x110] sm:$0xff] }
 0x143   :  { %4690 = vrot.lane.b32.xlu1 %v6805_v21, %s5303_s14  ;;  %v1392_v53 = vpack.c.bf16 %v1337_v44, %v1336_v48  ;;  %v4392_v1 = vunpack.i.l.bf16 %v7281_v31  ;;  %v4333_v18 = vunpack.i.h.bf16 %v7139_v11  ;;  %v4332_v2 = vunpack.i.l.bf16 %v7139_v11  ;;  %v5222_v48 = vld [vmem:[%s9019_s0 + $0x130] sm:$0xff] }
 0x144   :  { %4685 = vrot.lane.b32.xlu0 %v7302_v8, %s5303_s14  ;;  %v1362_v11 = vsel %vm1321_vm3, %v4387_v24, %v4327_v51  ;;  %v1363_v47 = vsel %vm1321_vm3, %v4388_v41, %v4328_v5  ;;  %v4397_v23 = vunpack.i.l.bf16 %v7316_v7  ;;  %v4338_v3 = vunpack.i.h.bf16 %v7163_v52 }
 0x145   :  { %1446 = vmatpush1.bf16.msra.mxu1 %v1385_v62  ;;  %v7344_v16 = vpop.permute.xlu1 %4410  ;;  %1191 = vmatmul.mubr.bf16.gmra.mrb[8].mxu0 %v5141_v12  ;;  %v1361_v12 = vsel %vm1321_vm3, %v4383_v14, %v4323_v57  ;;  %v5219_v14 = vld [vmem:[%s9019_s0 + $0x100] sm:$0xff]  ;;  %v4398_v57 = vunpack.i.h.bf16 %v7316_v7  ;;  %v1341_v28 = vsel %vm1321_vm3, %v4333_v18, %v4393_v34  ;;  %v4337_v42 = vunpack.i.l.bf16 %v7163_v52 }
 0x146   :  { %v7350_v27 = vpop.permute.xlu0 %4405  ;;  %1447 = vmatprep.subr.bf16.mxu1 %v1388_v49  ;;  %3973 = vmatprep.mubr.msk.bf16.mxu0 %vm1128_vm1, %v5147_v50  ;;  %v1338_v50 = vsel %vm1321_vm3, %v4327_v51, %v4387_v24  ;;  %v1339_v49 = vsel %vm1321_vm3, %v4328_v5, %v4388_v41  ;;  %v1391_v31 = vpack.c.bf16 %v1361_v12, %v1360_v39  ;;  %v5221_v24 = vld [vmem:[%s9019_s0 + $0x120] sm:$0xff]  ;;  %v4403_v51 = vunpack.i.h.bf16 %v7310_v56 }
 0x147   :  { %4700 = vrot.lane.b32.xlu1 %v6795_v17, %s5303_s14  ;;  %v1394_v13 = vpack.c.bf16 %v1339_v49, %v1338_v50  ;;  %v7421_v19 = vpack.i.bf16 %v5220_v36, %v5219_v14  ;;  %v1393_v7 = vpack.c.bf16 %v1363_v47, %v1362_v11  ;;  %v7449_v44 = vpack.i.bf16 %v5222_v48, %v5221_v24  ;;  %v5224_v50 = vld [vmem:[%s9019_s0 + $0x150] sm:$0xff]  ;;  %v5225_v36 = vld [vmem:[%s9019_s0 + $0x160] sm:$0xff] }
 0x148   :  { %4695 = vrot.lane.b32.xlu0 %v7336_v26, %s5303_s14  ;;  %v1364_v52 = vsel %vm1321_vm3, %v4392_v1, %v4332_v2  ;;  %v1365_v5 = vsel %vm1321_vm3, %v4393_v34, %v4333_v18  ;;  %v1342_v22 = vsel %vm1321_vm3, %v4337_v42, %v4397_v23  ;;  %v1343_v58 = vsel %vm1321_vm3, %v4338_v3, %v4398_v57  ;;  %v5226_v11 = vld [vmem:[%s9019_s0 + $0x170] sm:$0xff] }
 0x149   :  { %1448 = vmatpush1.bf16.msra.mxu1 %v1387_v25  ;;  %v7373_v43 = vpop.permute.xlu1 %4420  ;;  %v4343_v12 = vunpack.i.h.bf16 %v7157_v0  ;;  %v4342_v34 = vunpack.i.l.bf16 %v7157_v0  ;;  %v1398_v18 = vpack.c.bf16 %v1343_v58, %v1342_v22  ;;  %v1366_v0 = vsel %vm1321_vm3, %v4397_v23, %v4337_v42  ;;  %v7503_v23 = vld [vmem:[%s9019_s0] sm:$0xff] }
 0x14a   :  { %v7379_v35 = vpop.permute.xlu0 %4415  ;;  %1449 = vmatprep.subr.bf16.mxu1 %v1390_v59  ;;  %v1340_v59 = vsel %vm1321_vm3, %v4332_v2, %v4392_v1  ;;  %v5223_v1 = vld [vmem:[%s9019_s0 + $0x140] sm:$0xff]  ;;  %v1367_v2 = vsel %vm1321_vm3, %v4398_v57, %v4338_v3  ;;  %v7496_v47 = vpack.i.bf16 %v5226_v11, %v5225_v36  ;;  %v4413_v24 = vunpack.i.h.bf16 %v7344_v16  ;;  %v5127_v11 = vld [vmem:[%s9020_s1 + $0x30] ss:$8 sps:$4 sm:$0xff]  }
 0x14b   :  { %4710 = vrot.lane.b32.xlu1 %v6823_v33, %s5303_s14  ;;  %v1396_v41 = vpack.c.bf16 %v1341_v28, %v1340_v59  ;;  %v7475_v49 = vpack.i.bf16 %v5224_v50, %v5223_v1  ;;  %v1345_v14 = vsel %vm1321_vm3, %v4343_v12, %v4403_v51  ;;  %v7508_v59 = vld [vmem:[%s9019_s0 + $0x10] sm:$0xff]  ;;  %v1397_v3 = vpack.c.bf16 %v1367_v2, %v1366_v0 }
 0x14c   :  { %4705 = vrot.lane.b32.xlu0 %v7365_v38, %s5303_s14  ;;  %v7512_v28 = vpack.i.bf16 %v7508_v59, %v7503_v23  ;;  %v4407_v1 = vunpack.i.l.bf16 %v7350_v27 }
 0x14d   :  { %1450 = vmatpush1.bf16.msra.mxu1 %v1389_v40  ;;  %v7401_v62 = vpop.permute.xlu1 %4430  ;;  %v4402_v40 = vunpack.i.l.bf16 %v7310_v56  ;;  %v1395_v56 = vpack.c.bf16 %v1365_v5, %v1364_v52  ;;  %v4412_v52 = vunpack.i.l.bf16 %v7344_v16  ;;  %v4408_v5 = vunpack.i.h.bf16 %v7350_v27 }
 0x14e   :  { %v7407_v29 = vpop.permute.xlu0 %4425  ;;  %1451 = vmatprep.subr.bf16.mxu1 %v1392_v53 }
 0x14f   :  { %4720 = vrot.lane.b32.xlu1 %v6819_v32, %s5303_s14 }
 0x150   :  { %4715 = vrot.lane.b32.xlu0 %v7393_v61, %s5303_s14 }
 0x151   :  { %1452 = vmatpush1.bf16.msra.mxu1 %v1391_v31  ;;  %v7429_v25 = vpop.permute.xlu1 %4440 }
 0x152   :  { %v7435_v15 = vpop.permute.xlu0 %4435  ;;  %1453 = vmatprep.subr.bf16.mxu1 %v1394_v13  ;;  %v1344_v13 = vsel %vm1321_vm3, %v4342_v34, %v4402_v40 }
 0x153   :  { %4730 = vrot.lane.b32.xlu1 %v6847_v46, %s5303_s14  ;;  %v1400_v42 = vpack.c.bf16 %v1345_v14, %v1344_v13 }
 0x154   :  { %4725 = vrot.lane.b32.xlu0 %v7421_v19, %s5303_s14 }
 0x155   :  { %1454 = vmatpush1.bf16.msra.mxu1 %v1393_v7  ;;  %v7457_v53 = vpop.permute.xlu1 %4450  ;;  %v1368_v7 = vsel %vm1321_vm3, %v4402_v40, %v4342_v34 }
 0x156   :  { %v7463_v39 = vpop.permute.xlu0 %4445  ;;  %1455 = vmatprep.subr.bf16.mxu1 %v1396_v41  ;;  %v1369_v41 = vsel %vm1321_vm3, %v4403_v51, %v4343_v12 }
 0x157   :  { %4740 = vrot.lane.b32.xlu1 %v6843_v45, %s5303_s14  ;;  %v1399_v51 = vpack.c.bf16 %v1369_v41, %v1368_v7 }
 0x158   :  { %4735 = vrot.lane.b32.xlu0 %v7449_v44, %s5303_s14 }
 0x159   :  { %1456 = vmatpush1.bf16.msra.mxu1 %v1395_v56  ;;  %v7484_v31 = vpop.permute.xlu1 %4460 }
 0x15a   :  { %v7498_v57 = vpop.permute.xlu0 %4455  ;;  %1457 = vmatprep.subr.bf16.mxu1 %v1398_v18 }
 0x15b   :  { %4750 = vrot.lane.b32.xlu1 %v6859_v55, %s5303_s14 }
 0x15c   :  { %4745 = vrot.lane.b32.xlu0 %v7475_v49, %s5303_s14 }
 0x15d   :  { %1458 = vmatpush1.bf16.msra.mxu1 %v1397_v3  ;;  %v4471_v48 = vpop.permute.xlu1 %4470  ;;  %v4418_v3 = vunpack.i.h.bf16 %v7379_v35 }
 0x15e   :  { %v4473_v22 = vunpack.i.h.bf16 %v4471_v48  ;;  %v4472_v58 = vunpack.i.l.bf16 %v4471_v48  ;;  %v4466_v56 = vpop.permute.xlu0 %4465  ;;  %1459 = vmatprep.subr.bf16.mxu1 %v1400_v42  ;;  %v4417_v42 = vunpack.i.l.bf16 %v7379_v35  ;;  %v5130_v48 = vld [vmem:[%s9020_s1 + $0x44] ss:$8 sps:$4 sm:$0xff]  }
 0x15f   :  { %v4468_v50 = vunpack.i.h.bf16 %v4466_v56  ;;  %v4467_v18 = vunpack.i.l.bf16 %v4466_v56  ;;  %4760 = vrot.lane.b32.xlu1 %v6855_v54, %s5303_s14 }
 0x160   :  { %4755 = vrot.lane.b32.xlu0 %v7496_v47, %s5303_s14  ;;  %v1636_v16 = vsel %vm1633_vm4, %v4412_v52, %v4472_v58  ;;  %v1637_v40 = vsel %vm1633_vm4, %v4413_v24, %v4473_v22  ;;  %v1661_v56 = vsel %vm1633_vm4, %v4473_v22, %v4413_v24  ;;  %v4423_v24 = vunpack.i.h.bf16 %v7373_v43 }
 0x161   :  { %v1658_v12 = vsel %vm1633_vm4, %v4467_v18, %v4407_v1  ;;  %v1659_v27 = vsel %vm1633_vm4, %v4468_v50, %v4408_v5  ;;  %1460 = vmatpush1.bf16.msra.mxu1 %v1399_v51  ;;  %v4481_v34 = vpop.permute.xlu1 %4480  ;;  %v1634_v0 = vsel %vm1633_vm4, %v4407_v1, %v4467_v18  ;;  %v1635_v2 = vsel %vm1633_vm4, %v4408_v5, %v4468_v50 }
 0x162   :  { %v4476_v13 = vpop.permute.xlu0 %4475  ;;  %v1690_v14 = vpack.c.bf16 %v1635_v2, %v1634_v0  ;;  %v1689_v36 = vpack.c.bf16 %v1659_v27, %v1658_v12  ;;  %v1660_v5 = vsel %vm1633_vm4, %v4472_v58, %v4412_v52  ;;  %v1692_v35 = vpack.c.bf16 %v1637_v40, %v1636_v16 }
 0x163   :  { %v4478_v7 = vunpack.i.h.bf16 %v4476_v13  ;;  %v4477_v41 = vunpack.i.l.bf16 %v4476_v13  ;;  %4770 = vrot.lane.b32.xlu1 %v6757_v63, %s5304_s21  ;;  %v4483_v1 = vunpack.i.h.bf16 %v4481_v34  ;;  %v4482_v50 = vunpack.i.l.bf16 %v4481_v34 }
 0x164   :  { %4765 = vrot.lane.b32.xlu0 %v7512_v28, %s5304_s21  ;;  %1749 = vmatprep.subr.bf16.mxu0 %v1690_v14  ;;  %v4422_v22 = vunpack.i.l.bf16 %v7373_v43  ;;  %v1691_v58 = vpack.c.bf16 %v1661_v56, %v1660_v5  ;;  %v4433_v14 = vunpack.i.h.bf16 %v7401_v62  ;;  %v5136_v56 = vld [vmem:[%s9020_s1 + $0x54] ss:$8 sps:$4 sm:$0xff]  }
 0x165   :  { %1750 = vmatpush1.bf16.msra.mxu0 %v1689_v36  ;;  %v7558_v18 = vpop.permute.xlu1 %4490  ;;  %v1638_v51 = vsel %vm1633_vm4, %v4417_v42, %v4477_v41  ;;  %v1639_v12 = vsel %vm1633_vm4, %v4418_v3, %v4478_v7  ;;  %1470 = vmatmul.mubr.bf16.vlgmr.msra.gmra.mrb[0].mxu1 %v5127_v11  ;;  %v1662_v16 = vsel %vm1633_vm4, %v4477_v41, %v4417_v42  ;;  %v4428_v36 = vunpack.i.h.bf16 %v7407_v29 }
 0x166   :  { %v4486_v52 = vpop.permute.xlu0 %4485  ;;  %1751 = vmatprep.subr.bf16.mxu0 %v1692_v35  ;;  %3958 = vmatprep.mubr.msk.bf16.mxu1 %vm1128_vm1, %v5130_v48  ;;  %v1663_v40 = vsel %vm1633_vm4, %v4478_v7, %v4418_v3  ;;  %v1694_v27 = vpack.c.bf16 %v1639_v12, %v1638_v51  ;;  %v1640_v2 = vsel %vm1633_vm4, %v4422_v22, %v4482_v50  ;;  %v4427_v11 = vunpack.i.l.bf16 %v7407_v29  ;;  %v5132_v7 = vld [vmem:[%s9020_s1 + $0x40] ss:$8 sps:$4 sm:$0xff]  }
 0x167   :  { %4780 = vrot.lane.b32.xlu1 %v6747_v60, %s5304_s21  ;;  %v4488_v34 = vunpack.i.h.bf16 %v4486_v52  ;;  %v4487_v0 = vunpack.i.l.bf16 %v4486_v52  ;;  %v1641_v13 = vsel %vm1633_vm4, %v4423_v24, %v4483_v1  ;;  %v1664_v3 = vsel %vm1633_vm4, %v4482_v50, %v4422_v22 }
 0x168   :  { %4775 = vrot.lane.b32.xlu0 %v7202_v37, %s5304_s21  ;;  %v1665_v41 = vsel %vm1633_vm4, %v4483_v1, %v4423_v24  ;;  %v4493_v48 = vunpack.i.h.bf16 %v7558_v18  ;;  %v4492_v5 = vunpack.i.l.bf16 %v7558_v18  ;;  %v1693_v29 = vpack.c.bf16 %v1663_v40, %v1662_v16 }
 0x169   :  { %1752 = vmatpush1.bf16.msra.mxu0 %v1691_v58  ;;  %v7575_v43 = vpop.permute.xlu1 %4500  ;;  %v4432_v35 = vunpack.i.l.bf16 %v7401_v62  ;;  %v4443_v50 = vunpack.i.h.bf16 %v7429_v25  ;;  %v4442_v51 = vunpack.i.l.bf16 %v7429_v25  ;;  %v1696_v1 = vpack.c.bf16 %v1641_v13, %v1640_v2 }
 0x16a   :  { %v7586_v42 = vpop.permute.xlu0 %4495  ;;  %1753 = vmatprep.subr.bf16.mxu0 %v1694_v27  ;;  %v4438_v18 = vunpack.i.h.bf16 %v7435_v15  ;;  %v4437_v12 = vunpack.i.l.bf16 %v7435_v15  ;;  %v1642_v24 = vsel %vm1633_vm4, %v4427_v11, %v4487_v0  ;;  %v1643_v62 = vsel %vm1633_vm4, %v4428_v36, %v4488_v34 }
 0x16b   :  { %4790 = vrot.lane.b32.xlu1 %v6757_v63, %s5305_s11  ;;  %v1666_v22 = vsel %vm1633_vm4, %v4487_v0, %v4427_v11  ;;  %v4502_v58 = vunpack.i.l.bf16 %v7575_v43  ;;  %v1695_v15 = vpack.c.bf16 %v1665_v41, %v1664_v3  ;;  %v7623_v40 = vsel %vm1633_vm4, %v4492_v5, %v4432_v35 }
 0x16c   :  { %4785 = vrot.lane.b32.xlu0 %v7512_v28, %s5305_s11  ;;  %v1667_v28 = vsel %vm1633_vm4, %v4488_v34, %v4428_v36  ;;  %v7627_v27 = vsel %vm1633_vm4, %v4493_v48, %v4433_v14  ;;  %v4503_v0 = vunpack.i.h.bf16 %v7575_v43  ;;  %v1644_v34 = vsel %vm1633_vm4, %v4432_v35, %v4492_v5 }
 0x16d   :  { %1754 = vmatpush1.bf16.msra.mxu0 %v1693_v29  ;;  %v7608_v52 = vpop.permute.xlu1 %4510  ;;  %1480 = vmatmul.mubr.bf16.gmra.mrb[4].mxu1 %v5132_v7  ;;  %v4498_v2 = vunpack.i.h.bf16 %v7586_v42  ;;  %v4497_v13 = vunpack.i.l.bf16 %v7586_v42  ;;  %v1698_v36 = vpack.c.bf16 %v1643_v62, %v1642_v24  ;;  %v1645_v11 = vsel %vm1633_vm4, %v4433_v14, %v4493_v48  ;;  %v5138_v48 = vld [vmem:[%s9020_s1 + $0x50] ss:$8 sps:$4 sm:$0xff]  }
 0x16e   :  { %v7619_v16 = vpop.permute.xlu0 %4505  ;;  %1755 = vmatprep.subr.bf16.mxu0 %v1696_v1  ;;  %3959 = vmatprep.mubr.msk.bf16.mxu1 %vm1128_vm1, %v5136_v56  ;;  %v1697_v5 = vpack.c.bf16 %v1667_v28, %v1666_v22  ;;  %v7646_v29 = vsel %vm1633_vm4, %v4502_v58, %v4442_v51  ;;  %v1699_v14 = vpack.c.bf16 %v7627_v27, %v7623_v40  ;;  %v5144_v28 = vld [vmem:[%s9020_s1 + $0x94] ss:$8 sps:$4 sm:$0xff]   ;;  %v4513_v3 = vunpack.i.h.bf16 %v7608_v52 }
 0x16f   :  { %4800 = vrot.lane.b32.xlu1 %v6781_v9, %s5304_s21  ;;  %v7657_v1 = vsel %vm1633_vm4, %v4503_v0, %v4443_v50  ;;  %v1700_v22 = vpack.c.bf16 %v1645_v11, %v1644_v34  ;;  %v1646_v40 = vsel %vm1633_vm4, %v4437_v12, %v4497_v13  ;;  %v1647_v27 = vsel %vm1633_vm4, %v4438_v18, %v4498_v2 }
 0x170   :  { %4795 = vrot.lane.b32.xlu0 %v7241_v20, %s5304_s21 }
 0x171   :  { %1756 = vmatpush1.bf16.msra.mxu0 %v1695_v15  ;;  %v4521_v41 = vpop.permute.xlu1 %4520  ;;  %v1670_v15 = vsel %vm1633_vm4, %v4497_v13, %v4437_v12 }
 0x172   :  { %v4523_v42 = vunpack.i.h.bf16 %v4521_v41  ;;  %v4522_v56 = vunpack.i.l.bf16 %v4521_v41  ;;  %v4516_v35 = vpop.permute.xlu0 %4515  ;;  %1757 = vmatprep.subr.bf16.mxu0 %v1698_v36  ;;  %v1648_v36 = vsel %vm1633_vm4, %v4442_v51, %v4502_v58  ;;  %v1671_v58 = vsel %vm1633_vm4, %v4498_v2, %v4438_v18 }
 0x173   :  { %v4518_v24 = vunpack.i.h.bf16 %v4516_v35  ;;  %v4517_v62 = vunpack.i.l.bf16 %v4516_v35  ;;  %4810 = vrot.lane.b32.xlu1 %v6747_v60, %s5305_s11  ;;  %v1649_v18 = vsel %vm1633_vm4, %v4443_v50, %v4503_v0 }
 0x174   :  { %4805 = vrot.lane.b32.xlu0 %v7202_v37, %s5305_s11 }
 0x175   :  { %v1971_v34 = vsel %vm1945_vm5, %v4523_v42, %v4518_v24  ;;  %v1970_v11 = vsel %vm1945_vm5, %v4522_v56, %v4517_v62  ;;  %1758 = vmatpush1.bf16.msra.mxu0 %v1697_v5  ;;  %v4531_v41 = vpop.permute.xlu1 %4530  ;;  %v1946_v37 = vsel %vm1945_vm5, %v4517_v62, %v4522_v56  ;;  %v1947_v12 = vsel %vm1945_vm5, %v4518_v24, %v4523_v42 }
 0x176   :  { %v4533_v13 = vunpack.i.h.bf16 %v4531_v41  ;;  %v4532_v35 = vunpack.i.l.bf16 %v4531_v41  ;;  %v4526_v4 = vpop.permute.xlu0 %4525  ;;  %1759 = vmatprep.subr.bf16.mxu0 %v1700_v22  ;;  %v2002_v43 = vpack.c.bf16 %v1947_v12, %v1946_v37  ;;  %v2001_v51 = vpack.c.bf16 %v1971_v34, %v1970_v11  ;;  %1490 = vmatmul.mubr.bf16.gmra.mrb[8].mxu1 %v5138_v48 }
 0x177   :  { %v4528_v5 = vunpack.i.h.bf16 %v4526_v4  ;;  %v4527_v7 = vunpack.i.l.bf16 %v4526_v4  ;;  %4820 = vrot.lane.b32.xlu1 %v6771_v6, %s5304_s21  ;;  %3989 = vmatprep.mubr.msk.bf16.mxu1 %vm1128_vm1, %v5144_v28  ;;  %v4508_v42 = vunpack.i.h.bf16 %v7619_v16  ;;  %v4507_v56 = vunpack.i.l.bf16 %v7619_v16 }
 0x178   :  { %4815 = vrot.lane.b32.xlu0 %v7273_v30, %s5304_s21  ;;  %2061 = vmatprep.subr.bf16.mxu1 %v2002_v43  ;;  %v1702_v48 = vpack.c.bf16 %v1647_v27, %v1646_v40  ;;  %v4512_v4 = vunpack.i.l.bf16 %v7608_v52  ;;  %v1704_v34 = vpack.c.bf16 %v1649_v18, %v1648_v36  ;;  %v9034_v11 = vunpack.i.l.bf16 %v7463_v39 }
 0x179   :  { %v1973_v2 = vsel %vm1945_vm5, %v4533_v13, %v4528_v5  ;;  %v1972_v24 = vsel %vm1945_vm5, %v4532_v35, %v4527_v7  ;;  %1760 = vmatpush1.bf16.msra.mxu0 %v1699_v14  ;;  %2062 = vmatpush1.bf16.msra.mxu1 %v2001_v51  ;;  %v4541_v16 = vpop.permute.xlu1 %4540  ;;  %v1948_v43 = vsel %vm1945_vm5, %v4527_v7, %v4532_v35  ;;  %v9035_v37 = vunpack.i.h.bf16 %v7463_v39 }
 0x17a   :  { %v4543_v62 = vunpack.i.h.bf16 %v4541_v16  ;;  %v4542_v22 = vunpack.i.l.bf16 %v4541_v16  ;;  %v4536_v25 = vpop.permute.xlu0 %4535  ;;  %1761 = vmatprep.subr.bf16.mxu0 %v1702_v48  ;;  %v1949_v50 = vsel %vm1945_vm5, %v4528_v5, %v4533_v13  ;;  %v2003_v0 = vpack.c.bf16 %v1973_v2, %v1972_v24 }
 0x17b   :  { %v4538_v28 = vunpack.i.h.bf16 %v4536_v25  ;;  %v4537_v40 = vunpack.i.l.bf16 %v4536_v25  ;;  %4830 = vrot.lane.b32.xlu1 %v6781_v9, %s5305_s11  ;;  %v2004_v27 = vpack.c.bf16 %v1949_v50, %v1948_v43  ;;  %v1701_v14 = vpack.c.bf16 %v1671_v58, %v1670_v15 }
 0x17c   :  { %4825 = vrot.lane.b32.xlu0 %v7241_v20, %s5305_s11  ;;  %v1703_v7 = vpack.c.bf16 %v7657_v1, %v7646_v29  ;;  %v1650_v41 = vsel %vm1633_vm4, %v9034_v11, %v4507_v56  ;;  %v1651_v12 = vsel %vm1633_vm4, %v9035_v37, %v4508_v42  ;;  %v4452_v13 = vunpack.i.l.bf16 %v7457_v53 }
 0x17d   :  { %v1975_v15 = vsel %vm1945_vm5, %v4543_v62, %v4538_v28  ;;  %v1974_v20 = vsel %vm1945_vm5, %v4542_v22, %v4537_v40  ;;  %2063 = vmatprep.subr.bf16.mxu1 %v2004_v27  ;;  %1762 = vmatpush1.bf16.msra.mxu0 %v1701_v14  ;;  %v4551_v29 = vpop.permute.xlu1 %4550  ;;  %v1950_v1 = vsel %vm1945_vm5, %v4537_v40, %v4542_v22  ;;  %v9038_v50 = vunpack.i.h.bf16 %v7457_v53 }
 0x17e   :  { %2064 = vmatpush1.bf16.msra.mxu1 %v2003_v0  ;;  %v4553_v36 = vunpack.i.h.bf16 %v4551_v29  ;;  %v4552_v35 = vunpack.i.l.bf16 %v4551_v29  ;;  %v4546_v51 = vpop.permute.xlu0 %4545  ;;  %1763 = vmatprep.subr.bf16.mxu0 %v1704_v34  ;;  %v1951_v58 = vsel %vm1945_vm5, %v4538_v28, %v4543_v62  ;;  %v2005_v5 = vpack.c.bf16 %v1975_v15, %v1974_v20 }
 0x17f   :  { %v4548_v48 = vunpack.i.h.bf16 %v4546_v51  ;;  %v4547_v18 = vunpack.i.l.bf16 %v4546_v51  ;;  %4840 = vrot.lane.b32.xlu1 %v6805_v21, %s5304_s21  ;;  %v2006_v2 = vpack.c.bf16 %v1951_v58, %v1950_v1  ;;  %v1652_v24 = vsel %vm1633_vm4, %v4452_v13, %v4512_v4 }
 0x180   :  { %v9036_v16 = vmov %v9034_v11  ;;  %v9037_v22 = vmov %v9035_v37  ;;  %4835 = vrot.lane.b32.xlu0 %v7302_v8, %s5304_s21  ;;  %v1706_v25 = vpack.c.bf16 %v1651_v12, %v1650_v41  ;;  %v1653_v0 = vsel %vm1633_vm4, %v9038_v50, %v4513_v3 }
 0x181   :  { %v1674_v43 = vsel %vm1633_vm4, %v4507_v56, %v9036_v16  ;;  %v1675_v62 = vsel %vm1633_vm4, %v4508_v42, %v9037_v22  ;;  %v1977_v28 = vsel %vm1945_vm5, %v4553_v36, %v4548_v48  ;;  %v1976_v39 = vsel %vm1945_vm5, %v4552_v35, %v4547_v18  ;;  %2065 = vmatprep.subr.bf16.mxu1 %v2006_v2  ;;  %v4561_v42 = vpop.permute.xlu1 %4560 }
 0x182   :  { %1764 = vmatpush1.bf16.msra.mxu0 %v1703_v7  ;;  %v1952_v56 = vsel %vm1945_vm5, %v4547_v18, %v4552_v35  ;;  %2066 = vmatpush1.bf16.msra.mxu1 %v2005_v5  ;;  %v4563_v40 = vunpack.i.h.bf16 %v4561_v42  ;;  %v4562_v27 = vunpack.i.l.bf16 %v4561_v42  ;;  %v4556_v14 = vpop.permute.xlu0 %4555  ;;  %v1953_v34 = vsel %vm1945_vm5, %v4548_v48, %v4553_v36 }
 0x183   :  { %1765 = vmatprep.subr.bf16.mxu0 %v1706_v25  ;;  %v2007_v11 = vpack.c.bf16 %v1977_v28, %v1976_v39  ;;  %v4558_v41 = vunpack.i.h.bf16 %v4556_v14  ;;  %v4557_v37 = vunpack.i.l.bf16 %v4556_v14  ;;  %4850 = vrot.lane.b32.xlu1 %v6771_v6, %s5305_s11  ;;  %v2008_v12 = vpack.c.bf16 %v1953_v34, %v1952_v56 }
 0x184   :  { %v1705_v7 = vpack.c.bf16 %v1675_v62, %v1674_v43  ;;  %v1676_v15 = vsel %vm1633_vm4, %v4512_v4, %v4452_v13  ;;  %v9039_v20 = vmov %v9038_v50  ;;  %4845 = vrot.lane.b32.xlu0 %v7273_v30, %s5305_s11  ;;  %v1708_v1 = vpack.c.bf16 %v1653_v0, %v1652_v24 }
 0x185   :  { %v1677_v29 = vsel %vm1633_vm4, %v4513_v3, %v9039_v20  ;;  %v1979_v36 = vsel %vm1945_vm5, %v4563_v40, %v4558_v41  ;;  %v1978_v35 = vsel %vm1945_vm5, %v4562_v27, %v4557_v37  ;;  %2067 = vmatprep.subr.bf16.mxu1 %v2008_v12  ;;  %v4571_v4 = vpop.permute.xlu1 %4570  ;;  %v1954_v53 = vsel %vm1945_vm5, %v4557_v37, %v4562_v27 }
 0x186   :  { %1766 = vmatpush1.bf16.msra.mxu0 %v1705_v7  ;;  %2068 = vmatpush1.bf16.msra.mxu1 %v2007_v11  ;;  %v4573_v52 = vunpack.i.h.bf16 %v4571_v4  ;;  %v4572_v13 = vunpack.i.l.bf16 %v4571_v4  ;;  %v4566_v3 = vpop.permute.xlu0 %4565  ;;  %v1955_v30 = vsel %vm1945_vm5, %v4558_v41, %v4563_v40  ;;  %v2009_v51 = vpack.c.bf16 %v1979_v36, %v1978_v35 }
 0x187   :  { %1767 = vmatprep.subr.bf16.mxu0 %v1708_v1  ;;  %v4568_v58 = vunpack.i.h.bf16 %v4566_v3  ;;  %v4567_v5 = vunpack.i.l.bf16 %v4566_v3  ;;  %4860 = vrot.lane.b32.xlu1 %v6795_v17, %s5304_s21  ;;  %v2010_v48 = vpack.c.bf16 %v1955_v30, %v1954_v53  ;;  %v1707_v18 = vpack.c.bf16 %v1677_v29, %v1676_v15 }
 0x188   :  { %4855 = vrot.lane.b32.xlu0 %v7336_v26, %s5304_s21 }
 0x189   :  { %v1981_v2 = vsel %vm1945_vm5, %v4573_v52, %v4568_v58  ;;  %v1980_v24 = vsel %vm1945_vm5, %v4572_v13, %v4567_v5  ;;  %2069 = vmatprep.subr.bf16.mxu1 %v2010_v48  ;;  %v4581_v16 = vpop.permute.xlu1 %4580  ;;  %v1956_v43 = vsel %vm1945_vm5, %v4567_v5, %v4572_v13  ;;  %v1957_v50 = vsel %vm1945_vm5, %v4568_v58, %v4573_v52 }
 0x18a   :  { %1768 = vmatpush1.bf16.msra.mxu0 %v1707_v18  ;;  %2070 = vmatpush1.bf16.msra.mxu1 %v2009_v51  ;;  %v4583_v22 = vunpack.i.h.bf16 %v4581_v16  ;;  %v4582_v62 = vunpack.i.l.bf16 %v4581_v16  ;;  %v4576_v25 = vpop.permute.xlu0 %4575  ;;  %v2011_v0 = vpack.c.bf16 %v1981_v2, %v1980_v24  ;;  %v2012_v42 = vpack.c.bf16 %v1957_v50, %v1956_v43 }
 0x18b   :  { %v4578_v28 = vunpack.i.h.bf16 %v4576_v25  ;;  %v4577_v39 = vunpack.i.l.bf16 %v4576_v25  ;;  %4870 = vrot.lane.b32.xlu1 %v6805_v21, %s5305_s11 }
 0x18c   :  { %4865 = vrot.lane.b32.xlu0 %v7302_v8, %s5305_s11  ;;  %2071 = vmatprep.subr.bf16.mxu1 %v2012_v42 }
 0x18d   :  { %v1983_v56 = vsel %vm1945_vm5, %v4583_v22, %v4578_v28  ;;  %v1982_v40 = vsel %vm1945_vm5, %v4582_v62, %v4577_v39  ;;  %v4591_v27 = vpop.permute.xlu1 %4590  ;;  %v1958_v14 = vsel %vm1945_vm5, %v4577_v39, %v4582_v62  ;;  %v1959_v34 = vsel %vm1945_vm5, %v4578_v28, %v4583_v22 }
 0x18e   :  { %2072 = vmatpush1.bf16.msra.mxu1 %v2011_v0  ;;  %v4593_v11 = vunpack.i.h.bf16 %v4591_v27  ;;  %v4592_v41 = vunpack.i.l.bf16 %v4591_v27  ;;  %v4586_v37 = vpop.permute.xlu0 %4585  ;;  %v2014_v12 = vpack.c.bf16 %v1959_v34, %v1958_v14  ;;  %v2013_v8 = vpack.c.bf16 %v1983_v56, %v1982_v40 }
 0x18f   :  { %v4588_v7 = vunpack.i.h.bf16 %v4586_v37  ;;  %v4587_v15 = vunpack.i.l.bf16 %v4586_v37  ;;  %4880 = vrot.lane.b32.xlu1 %v6823_v33, %s5304_s21 }
 0x190   :  { %4875 = vrot.lane.b32.xlu0 %v7365_v38, %s5304_s21  ;;  %2073 = vmatprep.subr.bf16.mxu1 %v2014_v12 }
 0x191   :  { %v1985_v20 = vsel %vm1945_vm5, %v4593_v11, %v4588_v7  ;;  %v1984_v29 = vsel %vm1945_vm5, %v4592_v41, %v4587_v15  ;;  %v4601_v1 = vpop.permute.xlu1 %4600  ;;  %v1960_v36 = vsel %vm1945_vm5, %v4587_v15, %v4592_v41  ;;  %v1961_v35 = vsel %vm1945_vm5, %v4588_v7, %v4593_v11 }
 0x192   :  { %2074 = vmatpush1.bf16.msra.mxu1 %v2013_v8  ;;  %v4603_v4 = vunpack.i.h.bf16 %v4601_v1  ;;  %v4602_v53 = vunpack.i.l.bf16 %v4601_v1  ;;  %v4596_v52 = vpop.permute.xlu0 %4595  ;;  %v2016_v13 = vpack.c.bf16 %v1961_v35, %v1960_v36  ;;  %v2015_v3 = vpack.c.bf16 %v1985_v20, %v1984_v29 }
 0x193   :  { %v4598_v30 = vunpack.i.h.bf16 %v4596_v52  ;;  %v4597_v51 = vunpack.i.l.bf16 %v4596_v52  ;;  %4890 = vrot.lane.b32.xlu1 %v6795_v17, %s5305_s11 }
 0x194   :  { %4885 = vrot.lane.b32.xlu0 %v7336_v26, %s5305_s11  ;;  %2075 = vmatprep.subr.bf16.mxu1 %v2016_v13 }
 0x195   :  { %v1987_v58 = vsel %vm1945_vm5, %v4603_v4, %v4598_v30  ;;  %v1986_v5 = vsel %vm1945_vm5, %v4602_v53, %v4597_v51  ;;  %v4611_v48 = vpop.permute.xlu1 %4610  ;;  %v1962_v18 = vsel %vm1945_vm5, %v4597_v51, %v4602_v53  ;;  %v1963_v2 = vsel %vm1945_vm5, %v4598_v30, %v4603_v4 }
 0x196   :  { %2076 = vmatpush1.bf16.msra.mxu1 %v2015_v3  ;;  %v4613_v24 = vunpack.i.h.bf16 %v4611_v48  ;;  %v4612_v16 = vunpack.i.l.bf16 %v4611_v48  ;;  %v4606_v43 = vpop.permute.xlu0 %4605  ;;  %v2018_v22 = vpack.c.bf16 %v1963_v2, %v1962_v18  ;;  %v2017_v26 = vpack.c.bf16 %v1987_v58, %v1986_v5 }
 0x197   :  { %v4608_v62 = vunpack.i.h.bf16 %v4606_v43  ;;  %v4607_v25 = vunpack.i.l.bf16 %v4606_v43  ;;  %4900 = vrot.lane.b32.xlu1 %v6819_v32, %s5304_s21  ;;  %v4458_v48 = vunpack.i.h.bf16 %v7498_v57  ;;  %v4457_v18 = vunpack.i.l.bf16 %v7498_v57  ;;  %v5230_v57 = vld [vmem:[%s9019_s0 + $0x18] sm:$0xff] }
 0x198   :  { %4895 = vrot.lane.b32.xlu0 %v7393_v61, %s5304_s21  ;;  %2077 = vmatprep.subr.bf16.mxu1 %v2018_v22  ;;  %v4462_v43 = vunpack.i.l.bf16 %v7484_v31  ;;  %v5229_v22 = vld [vmem:[%s9019_s0 + $0x8] sm:$0xff] }
 0x199   :  { %v1989_v50 = vsel %vm1945_vm5, %v4613_v24, %v4608_v62  ;;  %v1988_v0 = vsel %vm1945_vm5, %v4612_v16, %v4607_v25  ;;  %v4621_v28 = vpop.permute.xlu1 %4620  ;;  %v1964_v39 = vsel %vm1945_vm5, %v4607_v25, %v4612_v16  ;;  %v1965_v42 = vsel %vm1945_vm5, %v4608_v62, %v4613_v24 }
 0x19a   :  { %2078 = vmatpush1.bf16.msra.mxu1 %v2017_v26  ;;  %v4623_v56 = vunpack.i.h.bf16 %v4621_v28  ;;  %v4622_v40 = vunpack.i.l.bf16 %v4621_v28  ;;  %v4616_v27 = vpop.permute.xlu0 %4615  ;;  %v2020_v14 = vpack.c.bf16 %v1965_v42, %v1964_v39  ;;  %v2019_v34 = vpack.c.bf16 %v1989_v50, %v1988_v0 }
 0x19b   :  { %v4618_v11 = vunpack.i.h.bf16 %v4616_v27  ;;  %v4617_v41 = vunpack.i.l.bf16 %v4616_v27  ;;  %4910 = vrot.lane.b32.xlu1 %v6823_v33, %s5305_s11  ;;  %v4463_v16 = vunpack.i.h.bf16 %v7484_v31  ;;  %v4006_v26 = vpack.c.bf16 %v5230_v57, %v5229_v22 }
 0x19c   :  { %4905 = vrot.lane.b32.xlu0 %v7365_v38, %s5305_s11  ;;  %2079 = vmatprep.subr.bf16.mxu1 %v2020_v14 }
 0x19d   :  { %v1991_v37 = vsel %vm1945_vm5, %v4623_v56, %v4618_v11  ;;  %v1990_v12 = vsel %vm1945_vm5, %v4622_v40, %v4617_v41  ;;  %v4631_v8 = vpop.permute.xlu1 %4630  ;;  %v1966_v7 = vsel %vm1945_vm5, %v4617_v41, %v4622_v40  ;;  %v1967_v15 = vsel %vm1945_vm5, %v4618_v11, %v4623_v56  ;;  %v5142_v40 = vld [vmem:[%s9020_s1 + $0x90] ss:$8 sps:$4 sm:$0xff]   ;;  %v5151_v41 = vld [vmem:[%s9020_s1 + $0xa4] ss:$8 sps:$4 sm:$0xff]  }
 0x19e   :  { %2080 = vmatpush1.bf16.msra.mxu1 %v2019_v34  ;;  %v4633_v20 = vunpack.i.h.bf16 %v4631_v8  ;;  %v4632_v29 = vunpack.i.l.bf16 %v4631_v8  ;;  %v4626_v1 = vpop.permute.xlu0 %4625  ;;  %v2022_v36 = vpack.c.bf16 %v1967_v15, %v1966_v7  ;;  %v2021_v38 = vpack.c.bf16 %v1991_v37, %v1990_v12 }
 0x19f   :  { %v4628_v35 = vunpack.i.h.bf16 %v4626_v1  ;;  %v4627_v4 = vunpack.i.l.bf16 %v4626_v1  ;;  %4920 = vrot.lane.b32.xlu1 %v6847_v46, %s5304_s21 }
 0x1a0   :  { %4915 = vrot.lane.b32.xlu0 %v7421_v19, %s5304_s21  ;;  %2081 = vmatprep.subr.bf16.mxu1 %v2022_v36 }
 0x1a1   :  { %v1993_v53 = vsel %vm1945_vm5, %v4633_v20, %v4628_v35  ;;  %v1992_v52 = vsel %vm1945_vm5, %v4632_v29, %v4627_v4  ;;  %v4641_v13 = vpop.permute.xlu1 %4640  ;;  %v1968_v3 = vsel %vm1945_vm5, %v4627_v4, %v4632_v29  ;;  %v1969_v30 = vsel %vm1945_vm5, %v4628_v35, %v4633_v20 }
 0x1a2   :  { %2082 = vmatpush1.bf16.msra.mxu1 %v2021_v38  ;;  %v4636_v51 = vpop.permute.xlu0 %4635  ;;  %v2024_v58 = vpack.c.bf16 %v1969_v30, %v1968_v3  ;;  %v2023_v5 = vpack.c.bf16 %v1993_v53, %v1992_v52  ;;  %v4643_v27 = vunpack.i.h.bf16 %v4641_v13  ;;  %v4642_v14 = vunpack.i.l.bf16 %v4641_v13 }
 0x1a3   :  { %v4638_v2 = vunpack.i.h.bf16 %v4636_v51  ;;  %v4637_v24 = vunpack.i.l.bf16 %v4636_v51  ;;  %4930 = vrot.lane.b32.xlu1 %v6819_v32, %s5305_s11  ;;  %v5163_v51 = vld [vmem:[%s9020_s1 + $0xc0] ss:$8 sps:$4 sm:$0xff]  }
 0x1a4   :  { %4925 = vrot.lane.b32.xlu0 %v7393_v61, %s5305_s11  ;;  %2083 = vmatprep.subr.bf16.mxu1 %v2024_v58 }
 0x1a5   :  { %v1678_v62 = vsel %vm1633_vm4, %v4637_v24, %v4457_v18  ;;  %v1679_v25 = vsel %vm1633_vm4, %v4638_v2, %v4458_v48  ;;  %v4651_v31 = vpop.permute.xlu1 %4650  ;;  %v1654_v61 = vsel %vm1633_vm4, %v4457_v18, %v4637_v24  ;;  %v1655_v50 = vsel %vm1633_vm4, %v4458_v48, %v4638_v2 }
 0x1a6   :  { %v1709_v0 = vpack.c.bf16 %v1679_v25, %v1678_v62  ;;  %2084 = vmatpush1.bf16.msra.mxu1 %v2023_v5  ;;  %v4653_v28 = vunpack.i.h.bf16 %v4651_v31  ;;  %v4652_v39 = vunpack.i.l.bf16 %v4651_v31  ;;  %v4646_v42 = vpop.permute.xlu0 %4645  ;;  %v1710_v56 = vpack.c.bf16 %v1655_v50, %v1654_v61  ;;  %v5145_v5 = vld [vmem:[%s9020_s1 + $0x60] ss:$8 sps:$4 sm:$0xff]   ;;  %v5232_v62 = vld [vmem:[%s9019_s0 + $0x38] sm:$0xff] }
 0x1a7   :  { %v4648_v34 = vunpack.i.h.bf16 %v4646_v42  ;;  %v4647_v11 = vunpack.i.l.bf16 %v4646_v42  ;;  %4940 = vrot.lane.b32.xlu1 %v6843_v45, %s5304_s21  ;;  %v2168_v48 = vpack.c.bf16 %v7508_v59, %v7503_v23  ;;  %v5231_v59 = vld [vmem:[%s9019_s0 + $0x28] sm:$0xff]  ;;  %v5148_v31 = vld [vmem:[%s9020_s1 + $0x74] ss:$8 sps:$4 sm:$0xff]  }
 0x1a8   :  { %v1681_v37 = vsel %vm1633_vm4, %v4653_v28, %v4463_v16  ;;  %v1680_v12 = vsel %vm1633_vm4, %v4652_v39, %v4462_v43  ;;  %4935 = vrot.lane.b32.xlu0 %v7449_v44, %s5304_s21  ;;  %1769 = vmatprep.subr.bf16.mxu0 %v1710_v56  ;;  %v1656_v8 = vsel %vm1633_vm4, %v4462_v43, %v4652_v39  ;;  %v5153_v42 = vld [vmem:[%s9020_s1 + $0xa0] ss:$8 sps:$4 sm:$0xff]  }
 0x1a9   :  { %v1711_v7 = vpack.c.bf16 %v1681_v37, %v1680_v12  ;;  %v2401_v15 = vsel %vm2399_vm6, %v4643_v27, %v4648_v34  ;;  %v2400_v20 = vsel %vm2399_vm6, %v4642_v14, %v4647_v11  ;;  %1770 = vmatpush1.bf16.msra.mxu0 %v1709_v0  ;;  %v4661_v29 = vpop.permute.xlu1 %4660  ;;  %v1657_v1 = vsel %vm1633_vm4, %v4463_v16, %v4653_v28  ;;  %v7960_v28 = vld [vmem:[%s9019_s0 + $0x30] sm:$0xff]  ;;  %v5235_v37 = vld [vmem:[%s9019_s0 + $0x48] sm:$0xff]  ;;  %v5236_v12 = vld [vmem:[%s9019_s0 + $0x58] sm:$0xff] }
 0x1aa   :  { %v2455_v36 = vpack.c.bf16 %v2401_v15, %v2400_v20  ;;  %v4663_v38 = vunpack.i.h.bf16 %v4661_v29  ;;  %v4662_v35 = vunpack.i.l.bf16 %v4661_v29  ;;  %v4656_v4 = vpop.permute.xlu0 %4655  ;;  %v1712_v53 = vpack.c.bf16 %v1657_v1, %v1656_v8  ;;  %2094 = vmatmul.mubr.bf16.vlgmr.msra.gmra.mrb[12].mxu1 %v5142_v40 }
 0x1ab   :  { %v4658_v52 = vunpack.i.h.bf16 %v4656_v4  ;;  %v4657_v13 = vunpack.i.l.bf16 %v4656_v4  ;;  %4950 = vrot.lane.b32.xlu1 %v6847_v46, %s5305_s11  ;;  %v2424_v3 = vsel %vm2399_vm6, %v4647_v11, %v4642_v14  ;;  %v2425_v30 = vsel %vm2399_vm6, %v4648_v34, %v4643_v27  ;;  %3990 = vmatprep.mubr.msk.bf16.mxu1 %vm1128_vm1, %v5151_v41  ;;  %v5150_v4 = vld [vmem:[%s9020_s1 + $0x70] ss:$8 sps:$4 sm:$0xff]  }
 0x1ac   :  { %4945 = vrot.lane.b32.xlu0 %v7421_v19, %s5305_s11  ;;  %1771 = vmatprep.subr.bf16.mxu0 %v1712_v53  ;;  %v2456_v58 = vpack.c.bf16 %v2425_v30, %v2424_v3  ;;  %v4009_v25 = vpack.c.bf16 %v5232_v62, %v5231_v59  ;;  %v4012_v8 = vpack.c.bf16 %v5236_v12, %v5235_v37  ;;  %v8047_v62 = vld [vmem:[%s9019_s0 + $0x60] sm:$0xff] }
 0x1ad   :  { %v2403_v18 = vsel %vm2399_vm6, %v4658_v52, %v4663_v38  ;;  %v2402_v2 = vsel %vm2399_vm6, %v4657_v13, %v4662_v35  ;;  %1772 = vmatpush1.bf16.msra.mxu0 %v1711_v7  ;;  %v4671_v24 = vpop.permute.xlu1 %4670  ;;  %v2426_v19 = vsel %vm2399_vm6, %v4662_v35, %v4657_v13  ;;  %v2427_v16 = vsel %vm2399_vm6, %v4663_v38, %v4658_v52  ;;  %v5157_v7 = vld [vmem:[%s9020_s1 + $0xb4] ss:$8 sps:$4 sm:$0xff]  }
 0x1ae   :  { %2515 = vmatprep.subr.bf16.mxu1 %v2456_v58  ;;  %v4673_v43 = vunpack.i.h.bf16 %v4671_v24  ;;  %v4672_v22 = vunpack.i.l.bf16 %v4671_v24  ;;  %v4666_v57 = vpop.permute.xlu0 %4665  ;;  %4007 = vmatprep.subr.msk.bf16.mxu0 %vm7917_vm7, %v4006_v26  ;;  %v2458_v23 = vpack.c.bf16 %v2427_v16, %v2426_v19  ;;  %v2457_v61 = vpack.c.bf16 %v2403_v18, %v2402_v2  ;;  %v7955_v26 = vld [vmem:[%s9019_s0 + $0x20] sm:$0xff]  ;;  %v7999_v38 = vld [vmem:[%s9019_s0 + $0x50] sm:$0xff]  ;;  %v5240_v18 = vld [vmem:[%s9019_s0 + $0x78] sm:$0xff] }
 0x1af   :  { %2516 = vmatpush1.bf16.msra.mxu1 %v2455_v36  ;;  %v4668_v50 = vunpack.i.h.bf16 %v4666_v57  ;;  %v4667_v0 = vunpack.i.l.bf16 %v4666_v57  ;;  %4960 = vrot.lane.b32.xlu1 %v6859_v55, %s5304_s21  ;;  %v2170_v39 = vpack.c.bf16 %v7960_v28, %v7955_v26  ;;  %v7994_v36 = vld [vmem:[%s9019_s0 + $0x40] sm:$0xff] }
 0x1b0   :  { %4955 = vrot.lane.b32.xlu0 %v7475_v49, %s5304_s21  ;;  %1782 = vmatmul.mubr.bf16.vlgmr.msra.gmra.mrb[12].mxu0 %v5145_v5  ;;  %v2172_v35 = vpack.c.bf16 %v7999_v38, %v7994_v36  ;;  %v5154_v24 = vld [vmem:[%s9020_s1 + $0x84] ss:$8 sps:$4 sm:$0xff]  }
 0x1b1   :  { %v2405_v49 = vsel %vm2399_vm6, %v4668_v50, %v4673_v43  ;;  %v2404_v56 = vsel %vm2399_vm6, %v4667_v0, %v4672_v22  ;;  %2517 = vmatprep.subr.bf16.mxu1 %v2458_v23  ;;  %2229 = vmatpush1.bf16.msra.mxu0 %v2168_v48  ;;  %v4681_v40 = vpop.permute.xlu1 %4680  ;;  %v2428_v27 = vsel %vm2399_vm6, %v4672_v22, %v4667_v0  ;;  %v5239_v48 = vld [vmem:[%s9019_s0 + $0x68] sm:$0xff]  ;;  %v8033_v57 = vld [vmem:[%s9019_s0 + $0x140] sm:$0xff]  ;;  %v8038_v23 = vld [vmem:[%s9019_s0 + $0x150] sm:$0xff] }
 0x1b2   :  { %v4683_v14 = vunpack.i.h.bf16 %v4681_v40  ;;  %v4682_v34 = vunpack.i.l.bf16 %v4681_v40  ;;  %v4676_v11 = vpop.permute.xlu0 %4675  ;;  %4010 = vmatprep.subr.msk.bf16.mxu0 %vm7917_vm7, %v4009_v25  ;;  %v2429_v41 = vsel %vm2399_vm6, %v4673_v43, %v4668_v50  ;;  %3974 = vmatprep.mubr.msk.bf16.mxu0 %vm1128_vm1, %v5148_v31  ;;  %v2459_v15 = vpack.c.bf16 %v2405_v49, %v2404_v56  ;;  %v5159_v31 = vld [vmem:[%s9020_s1 + $0xb0] ss:$8 sps:$4 sm:$0xff]  }
 0x1b3   :  { %2518 = vmatpush1.bf16.msra.mxu1 %v2457_v61  ;;  %v4678_v20 = vunpack.i.h.bf16 %v4676_v11  ;;  %v4677_v29 = vunpack.i.l.bf16 %v4676_v11  ;;  %4970 = vrot.lane.b32.xlu1 %v6843_v45, %s5305_s11  ;;  %v2460_v1 = vpack.c.bf16 %v2429_v41, %v2428_v27  ;;  %v4015_v2 = vpack.c.bf16 %v5240_v18, %v5239_v48  ;;  %v5245_v27 = vld [vmem:[%s9019_s0 + $0x88] sm:$0xff]  ;;  %v5162_v11 = vld [vmem:[%s9020_s1 + $0xf4] ss:$8 sps:$4 sm:$0xff]  }
 0x1b4   :  { %4965 = vrot.lane.b32.xlu0 %v7449_v44, %s5305_s11  ;;  %2104 = vmatmul.mubr.bf16.gmra.mrb[16].mxu1 %v5153_v42  ;;  %v8042_v59 = vpack.i.bf16 %v8038_v23, %v8033_v57  ;;  %v5251_v48 = vld [vmem:[%s9019_s0 + $0xa8] sm:$0xff]  ;;  %v5252_v18 = vld [vmem:[%s9019_s0 + $0xb8] sm:$0xff] }
 0x1b5   :  { %v2407_v44 = vsel %vm2399_vm6, %v4678_v20, %v4683_v14  ;;  %v2406_v53 = vsel %vm2399_vm6, %v4677_v29, %v4682_v34  ;;  %2519 = vmatprep.subr.bf16.mxu1 %v2460_v1  ;;  %2231 = vmatpush1.bf16.msra.mxu0 %v2170_v39  ;;  %v4691_v52 = vpop.permute.xlu1 %4690  ;;  %v2430_v13 = vsel %vm2399_vm6, %v4682_v34, %v4677_v29  ;;  %v8092_v29 = vld [vmem:[%s9019_s0 + $0x80] sm:$0xff]  ;;  %v8097_v1 = vld [vmem:[%s9019_s0 + $0x90] sm:$0xff] }
 0x1b6   :  { %v4693_v3 = vunpack.i.h.bf16 %v4691_v52  ;;  %v4692_v30 = vunpack.i.l.bf16 %v4691_v52  ;;  %v4686_v58 = vpop.permute.xlu0 %4685  ;;  %4013 = vmatprep.subr.msk.bf16.mxu0 %vm7917_vm7, %v4012_v8  ;;  %v2431_v5 = vsel %vm2399_vm6, %v4683_v14, %v4678_v20  ;;  %3991 = vmatprep.mubr.msk.bf16.mxu1 %vm1128_vm1, %v5157_v7  ;;  %v2461_v19 = vpack.c.bf16 %v2407_v44, %v2406_v53  ;;  %v5246_v14 = vld [vmem:[%s9019_s0 + $0x98] sm:$0xff]  ;;  %v5247_v7 = vld [vmem:[%s9019_s0] sm:$0xff] }
 0x1b7   :  { %2520 = vmatpush1.bf16.msra.mxu1 %v2459_v15  ;;  %v4688_v16 = vunpack.i.h.bf16 %v4686_v58  ;;  %v4687_v43 = vunpack.i.l.bf16 %v4686_v58  ;;  %4980 = vrot.lane.b32.xlu1 %v6855_v54, %s5304_s21  ;;  %v2462_v22 = vpack.c.bf16 %v2431_v5, %v2430_v13  ;;  %v4018_v34 = vpack.c.bf16 %v5246_v14, %v5245_v27  ;;  %v5248_v15 = vld [vmem:[%s9019_s0 + $0x10] sm:$0xff] }
 0x1b8   :  { %4975 = vrot.lane.b32.xlu0 %v7496_v47, %s5304_s21  ;;  %v8052_v47 = vld [vmem:[%s9019_s0 + $0x70] sm:$0xff]  ;;  %1792 = vmatmul.mubr.bf16.gmra.mrb[16].mxu0 %v5150_v4  ;;  %v4994_v20 = vpack.i.bf16 %v5248_v15, %v5247_v7  ;;  %v5156_v4 = vld [vmem:[%s9020_s1 + $0x80] ss:$8 sps:$4 sm:$0xff]   ;;  %s5306_s21 = smov 113  }
 0x1b9   :  { %v2174_v25 = vpack.c.bf16 %v8052_v47, %v8047_v62  ;;  %v2409_v61 = vsel %vm2399_vm6, %v4688_v16, %v4693_v3  ;;  %v2408_v50 = vsel %vm2399_vm6, %v4687_v43, %v4692_v30  ;;  %2521 = vmatprep.subr.bf16.mxu1 %v2462_v22  ;;  %2233 = vmatpush1.bf16.msra.mxu0 %v2172_v35  ;;  %v4701_v0 = vpop.permute.xlu1 %4700 }
 0x1ba   :  { %v2432_v39 = vsel %vm2399_vm6, %v4692_v30, %v4687_v43  ;;  %v4703_v42 = vunpack.i.h.bf16 %v4701_v0  ;;  %v4702_v49 = vunpack.i.l.bf16 %v4701_v0  ;;  %v4696_v56 = vpop.permute.xlu0 %4695  ;;  %4016 = vmatprep.subr.msk.bf16.mxu0 %vm7917_vm7, %v4015_v2  ;;  %v2433_v40 = vsel %vm2399_vm6, %v4693_v3, %v4688_v16  ;;  %3975 = vmatprep.mubr.msk.bf16.mxu0 %vm1128_vm1, %v5154_v24  ;;  %v5165_v24 = vld [vmem:[%s9020_s1 + $0xc4] ss:$8 sps:$4 sm:$0xff]  }
 0x1bb   :  { %v2463_v41 = vpack.c.bf16 %v2409_v61, %v2408_v50  ;;  %2522 = vmatpush1.bf16.msra.mxu1 %v2461_v19  ;;  %v4698_v37 = vunpack.i.h.bf16 %v4696_v56  ;;  %v4697_v12 = vunpack.i.l.bf16 %v4696_v56  ;;  %4990 = vrot.lane.b32.xlu1 %v6859_v55, %s5305_s11  ;;  %v2464_v8 = vpack.c.bf16 %v2433_v40, %v2432_v39  ;;  %v8149_v50 = vld [vmem:[%s9019_s0 + $0xb0] sm:$0xff] }
 0x1bc   :  { %4985 = vrot.lane.b32.xlu0 %v8042_v59, %s5305_s11  ;;  %v2176_v35 = vpack.c.bf16 %v8097_v1, %v8092_v29  ;;  %2114 = vmatmul.mubr.bf16.gmra.mrb[20].mxu1 %v5159_v31  ;;  %v4021_v2 = vpack.c.bf16 %v5252_v18, %v5251_v48  ;;  %v8135_v31 = vld [vmem:[%s9019_s0 + $0x170] sm:$0xff]  ;;  %v5262_v48 = vld [vmem:[%s9019_s0 + $0xf8] sm:$0xff] }
 0x1bd   :  { %v2411_v44 = vsel %vm2399_vm6, %v4698_v37, %v4703_v42  ;;  %v2410_v53 = vsel %vm2399_vm6, %v4697_v12, %v4702_v49  ;;  %2523 = vmatprep.subr.bf16.mxu1 %v2464_v8  ;;  %2235 = vmatpush1.bf16.msra.mxu0 %v2174_v25  ;;  %v4711_v52 = vpop.permute.xlu1 %4710  ;;  %v2434_v13 = vsel %vm2399_vm6, %v4702_v49, %v4697_v12  ;;  %v8130_v25 = vld [vmem:[%s9019_s0 + $0x160] sm:$0xff] }
 0x1be   :  { %v4713_v3 = vunpack.i.h.bf16 %v4711_v52  ;;  %v4712_v30 = vunpack.i.l.bf16 %v4711_v52  ;;  %v4706_v58 = vpop.permute.xlu0 %4705  ;;  %4019 = vmatprep.subr.msk.bf16.mxu0 %vm7917_vm7, %v4018_v34  ;;  %v2435_v5 = vsel %vm2399_vm6, %v4703_v42, %v4698_v37  ;;  %4056 = vmatprep.mubr.msk.bf16.mxu1 %vm1128_vm1, %v5162_v11  ;;  %v2465_v19 = vpack.c.bf16 %v2411_v44, %v2410_v53  ;;  %v5257_v11 = vld [vmem:[%s9019_s0 + $0xc8] sm:$0xff] }
 0x1bf   :  { %2524 = vmatpush1.bf16.msra.mxu1 %v2463_v41  ;;  %v4708_v16 = vunpack.i.h.bf16 %v4706_v58  ;;  %v4707_v43 = vunpack.i.l.bf16 %v4706_v58  ;;  %5000 = vrot.lane.b32.xlu1 %v6757_v63, %s5306_s21  ;;  %v2466_v22 = vpack.c.bf16 %v2435_v5, %v2434_v13  ;;  %v8139_v61 = vpack.i.bf16 %v8135_v31, %v8130_v25  ;;  %v8144_v63 = vld [vmem:[%s9019_s0 + $0xa0] sm:$0xff]  ;;  %v5258_v41 = vld [vmem:[%s9019_s0 + $0xd8] sm:$0xff]  ;;  %v5261_v5 = vld [vmem:[%s9019_s0 + $0xe8] sm:$0xff] }
 0x1c0   :  { %4995 = vrot.lane.b32.xlu0 %v4994_v20, %s5306_s21  ;;  %v2178_v0 = vpack.c.bf16 %v8149_v50, %v8144_v63  ;;  %1802 = vmatmul.mubr.bf16.gmra.mrb[20].mxu0 %v5156_v4  ;;  %v4024_v37 = vpack.c.bf16 %v5258_v41, %v5257_v11  ;;  %v5014_v20 = vpack.i.bf16 %v7960_v28, %v7955_v26  ;;  %v8184_v4 = vld [vmem:[%s9019_s0 + $0xd0] sm:$0xff] }
 0x1c1   :  { %v2413_v39 = vsel %vm2399_vm6, %v4708_v16, %v4713_v3  ;;  %v2412_v42 = vsel %vm2399_vm6, %v4707_v43, %v4712_v30  ;;  %2525 = vmatprep.subr.bf16.mxu1 %v2466_v22  ;;  %2237 = vmatpush1.bf16.msra.mxu0 %v2176_v35  ;;  %v4721_v49 = vpop.permute.xlu1 %4720  ;;  %v2436_v56 = vsel %vm2399_vm6, %v4712_v30, %v4707_v43  ;;  %v8179_v35 = vld [vmem:[%s9019_s0 + $0xc0] sm:$0xff] }
 0x1c2   :  { %v4723_v40 = vunpack.i.h.bf16 %v4721_v49  ;;  %v4722_v27 = vunpack.i.l.bf16 %v4721_v49  ;;  %v4716_v14 = vpop.permute.xlu0 %4715  ;;  %4022 = vmatprep.subr.msk.bf16.mxu0 %vm7917_vm7, %v4021_v2  ;;  %v2437_v34 = vsel %vm2399_vm6, %v4713_v3, %v4708_v16  ;;  %4041 = vmatprep.mubr.msk.bf16.mxu0 %vm1128_vm1, %v5165_v24  ;;  %v2467_v12 = vpack.c.bf16 %v2413_v39, %v2412_v42  ;;  %v8212_v22 = vld [vmem:[%s9019_s0 + $0xe0] sm:$0xff] }
 0x1c3   :  { %2526 = vmatpush1.bf16.msra.mxu1 %v2465_v19  ;;  %v4718_v8 = vunpack.i.h.bf16 %v4716_v14  ;;  %v4717_v7 = vunpack.i.l.bf16 %v4716_v14  ;;  %5010 = vrot.lane.b32.xlu1 %v6855_v54, %s5305_s11  ;;  %v2468_v15 = vpack.c.bf16 %v2437_v34, %v2436_v56  ;;  %v2180_v44 = vpack.c.bf16 %v8184_v4, %v8179_v35  ;;  %v5265_v14 = vld [vmem:[%s9019_s0 + $0x108] sm:$0xff]  ;;  %v5266_v34 = vld [vmem:[%s9019_s0 + $0x118] sm:$0xff] }
 0x1c4   :  { %5005 = vrot.lane.b32.xlu0 %v8139_v61, %s5305_s11  ;;  %v4027_v18 = vpack.c.bf16 %v5262_v48, %v5261_v5  ;;  %v5024_v43 = vpack.i.bf16 %v7999_v38, %v7994_v36  ;;  %v4030_v11 = vpack.c.bf16 %v5266_v34, %v5265_v14 }
 0x1c5   :  { %v2415_v53 = vsel %vm2399_vm6, %v4718_v8, %v4723_v40  ;;  %v2414_v52 = vsel %vm2399_vm6, %v4717_v7, %v4722_v27  ;;  %2527 = vmatprep.subr.bf16.mxu1 %v2468_v15  ;;  %2239 = vmatpush1.bf16.msra.mxu0 %v2178_v0  ;;  %v4731_v26 = vpop.permute.xlu1 %4730  ;;  %v2438_v28 = vsel %vm2399_vm6, %v4722_v27, %v4717_v7  ;;  %v8217_v0 = vld [vmem:[%s9019_s0 + $0xf0] sm:$0xff]  ;;  %v8245_v15 = vld [vmem:[%s9019_s0 + $0x100] sm:$0xff] }
 0x1c6   :  { %v4733_v13 = vunpack.i.h.bf16 %v4731_v26  ;;  %v4732_v3 = vunpack.i.l.bf16 %v4731_v26  ;;  %v4726_v30 = vpop.permute.xlu0 %4725  ;;  %4025 = vmatprep.subr.msk.bf16.mxu0 %vm7917_vm7, %v4024_v37  ;;  %v2439_v58 = vsel %vm2399_vm6, %v4723_v40, %v4718_v8  ;;  %v2469_v2 = vpack.c.bf16 %v2415_v53, %v2414_v52 }
 0x1c7   :  { %2528 = vmatpush1.bf16.msra.mxu1 %v2467_v12  ;;  %v4728_v24 = vunpack.i.h.bf16 %v4726_v30  ;;  %v4727_v19 = vunpack.i.l.bf16 %v4726_v30  ;;  %5020 = vrot.lane.b32.xlu1 %v6747_v60, %s5306_s21  ;;  %v2470_v16 = vpack.c.bf16 %v2439_v58, %v2438_v28  ;;  %v2182_v39 = vpack.c.bf16 %v8217_v0, %v8212_v22  ;;  %v5270_v30 = vld [vmem:[%s9019_s0 + $0x138] sm:$0xff] }
 0x1c8   :  { %5015 = vrot.lane.b32.xlu0 %v5014_v20, %s5306_s21  ;;  %v5034_v7 = vpack.i.bf16 %v8052_v47, %v8047_v62  ;;  %v8250_v20 = vld [vmem:[%s9019_s0 + $0x110] sm:$0xff] }
 0x1c9   :  { %v2417_v60 = vsel %vm2399_vm6, %v4728_v24, %v4733_v13  ;;  %v2416_v42 = vsel %vm2399_vm6, %v4727_v19, %v4732_v3  ;;  %2529 = vmatprep.subr.bf16.mxu1 %v2470_v16  ;;  %2241 = vmatpush1.bf16.msra.mxu0 %v2180_v44  ;;  %v4741_v36 = vpop.permute.xlu1 %4740  ;;  %v2440_v38 = vsel %vm2399_vm6, %v4732_v3, %v4727_v19  ;;  %v5269_v3 = vld [vmem:[%s9019_s0 + $0x128] sm:$0xff]  ;;  %v8278_v19 = vld [vmem:[%s9019_s0 + $0x120] sm:$0xff]  ;;  %v8283_v16 = vld [vmem:[%s9019_s0 + $0x130] sm:$0xff] }
 0x1ca   :  { %v4743_v49 = vunpack.i.h.bf16 %v4741_v36  ;;  %v4742_v56 = vunpack.i.l.bf16 %v4741_v36  ;;  %v4736_v40 = vpop.permute.xlu0 %4735  ;;  %4028 = vmatprep.subr.msk.bf16.mxu0 %vm7917_vm7, %v4027_v18  ;;  %v2441_v27 = vsel %vm2399_vm6, %v4733_v13, %v4728_v24  ;;  %v2471_v41 = vpack.c.bf16 %v2417_v60, %v2416_v42 }
 0x1cb   :  { %2530 = vmatpush1.bf16.msra.mxu1 %v2469_v2  ;;  %v4738_v37 = vunpack.i.h.bf16 %v4736_v40  ;;  %v4737_v12 = vunpack.i.l.bf16 %v4736_v40  ;;  %5030 = vrot.lane.b32.xlu1 %v6781_v9, %s5306_s21  ;;  %v2472_v8 = vpack.c.bf16 %v2441_v27, %v2440_v38  ;;  %v2184_v44 = vpack.c.bf16 %v8250_v20, %v8245_v15 }
 0x1cc   :  { %5025 = vrot.lane.b32.xlu0 %v5024_v43, %s5306_s21  ;;  %v4033_v58 = vpack.c.bf16 %v5270_v30, %v5269_v3  ;;  %v5044_v24 = vpack.i.bf16 %v8097_v1, %v8092_v29  ;;  %v2186_v43 = vpack.c.bf16 %v8283_v16, %v8278_v19 }
 0x1cd   :  { %v2419_v9 = vsel %vm2399_vm6, %v4738_v37, %v4743_v49  ;;  %v2418_v53 = vsel %vm2399_vm6, %v4737_v12, %v4742_v56  ;;  %2531 = vmatprep.subr.bf16.mxu1 %v2472_v8  ;;  %2243 = vmatpush1.bf16.msra.mxu0 %v2182_v39  ;;  %v4751_v62 = vpop.permute.xlu1 %4750  ;;  %v2442_v47 = vsel %vm2399_vm6, %v4742_v56, %v4737_v12  ;;  %v5274_v56 = vld [vmem:[%s9019_s0 + $0x158] sm:$0xff] }
 0x1ce   :  { %v4753_v52 = vunpack.i.h.bf16 %v4751_v62  ;;  %v4752_v26 = vunpack.i.l.bf16 %v4751_v62  ;;  %v4746_v28 = vpop.permute.xlu0 %4745  ;;  %4031 = vmatprep.subr.msk.bf16.mxu0 %vm7917_vm7, %v4030_v11  ;;  %v2443_v13 = vsel %vm2399_vm6, %v4743_v49, %v4738_v37  ;;  %v2473_v5 = vpack.c.bf16 %v2419_v9, %v2418_v53  ;;  %v5273_v49 = vld [vmem:[%s9019_s0 + $0x148] sm:$0xff] }
 0x1cf   :  { %2532 = vmatpush1.bf16.msra.mxu1 %v2471_v41  ;;  %v4748_v48 = vunpack.i.h.bf16 %v4746_v28  ;;  %v4747_v18 = vunpack.i.l.bf16 %v4746_v28  ;;  %5040 = vrot.lane.b32.xlu1 %v6771_v6, %s5306_s21  ;;  %v2474_v2 = vpack.c.bf16 %v2443_v13, %v2442_v47  ;;  %v4036_v40 = vpack.c.bf16 %v5274_v56, %v5273_v49 }
 0x1d0   :  { %5035 = vrot.lane.b32.xlu0 %v5034_v7, %s5306_s21  ;;  %v5054_v41 = vpack.i.bf16 %v8149_v50, %v8144_v63  ;;  %v2188_v37 = vpack.c.bf16 %v8038_v23, %v8033_v57  ;;  %v5275_v23 = vld [vmem:[%s9019_s0 + $0x168] sm:$0xff]  ;;  %v5276_v50 = vld [vmem:[%s9019_s0 + $0x178] sm:$0xff]  ;;  %v5064_v28 = vpack.i.bf16 %v8184_v4, %v8179_v35  ;;  %v2190_v13 = vpack.c.bf16 %v8135_v31, %v8130_v25 }
 0x1d1   :  { %v2421_v6 = vsel %vm2399_vm6, %v4748_v48, %v4753_v52  ;;  %v2420_v39 = vsel %vm2399_vm6, %v4747_v18, %v4752_v26  ;;  %2533 = vmatprep.subr.bf16.mxu1 %v2474_v2  ;;  %2245 = vmatpush1.bf16.msra.mxu0 %v2184_v44  ;;  %v4761_v29 = vpop.permute.xlu1 %4760  ;;  %v2444_v1 = vsel %vm2399_vm6, %v4752_v26, %v4747_v18  ;;  %v5160_v25 = vld [vmem:[%s9020_s1 + $0xf0] ss:$8 sps:$4 sm:$0xff]  }
 0x1d2   :  { %v4763_v60 = vunpack.i.h.bf16 %v4761_v29  ;;  %v4762_v42 = vunpack.i.l.bf16 %v4761_v29  ;;  %v4756_v36 = vpop.permute.xlu0 %4755  ;;  %4034 = vmatprep.subr.msk.bf16.mxu0 %vm7917_vm7, %v4033_v58  ;;  %v2445_v38 = vsel %vm2399_vm6, %v4753_v52, %v4748_v48  ;;  %v2475_v27 = vpack.c.bf16 %v2421_v6, %v2420_v39 }
 0x1d3   :  { %2534 = vmatpush1.bf16.msra.mxu1 %v2473_v5  ;;  %v4758_v14 = vunpack.i.h.bf16 %v4756_v36  ;;  %v4757_v34 = vunpack.i.l.bf16 %v4756_v36  ;;  %5050 = vrot.lane.b32.xlu1 %v6805_v21, %s5306_s21  ;;  %v2476_v11 = vpack.c.bf16 %v2445_v38, %v2444_v1  ;;  %v4039_v53 = vpack.c.bf16 %v5276_v50, %v5275_v23  ;;  %v5168_v36 = vld [vmem:[%s9020_s1 + $0x104] ss:$8 sps:$4 sm:$0xff]  }
 0x1d4   :  { %5045 = vrot.lane.b32.xlu0 %v5044_v24, %s5306_s21 }
 0x1d5   :  { %v2423_v12 = vsel %vm2399_vm6, %v4758_v14, %v4763_v60  ;;  %v2422_v8 = vsel %vm2399_vm6, %v4757_v34, %v4762_v42  ;;  %2535 = vmatprep.subr.bf16.mxu1 %v2476_v11  ;;  %2247 = vmatpush1.bf16.msra.mxu0 %v2186_v43  ;;  %v4771_v7 = vpop.permute.xlu1 %4770  ;;  %v2446_v21 = vsel %vm2399_vm6, %v4762_v42, %v4757_v34 }
 0x1d6   :  { %v4773_v44 = vunpack.i.h.bf16 %v4771_v7  ;;  %v4772_v9 = vunpack.i.l.bf16 %v4771_v7  ;;  %v4766_v63 = vpop.permute.xlu0 %4765  ;;  %4037 = vmatprep.subr.msk.bf16.mxu0 %vm7917_vm7, %v4036_v40  ;;  %v2447_v57 = vsel %vm2399_vm6, %v4763_v60, %v4758_v14  ;;  %v2477_v62 = vpack.c.bf16 %v2423_v12, %v2422_v8 }
 0x1d7   :  { %2536 = vmatpush1.bf16.msra.mxu1 %v2475_v27  ;;  %v4768_v47 = vunpack.i.h.bf16 %v4766_v63  ;;  %v4767_v52 = vunpack.i.l.bf16 %v4766_v63  ;;  %5060 = vrot.lane.b32.xlu1 %v6795_v17, %s5306_s21  ;;  %v2478_v26 = vpack.c.bf16 %v2447_v57, %v2446_v21  ;;  %v5074_v43 = vpack.i.bf16 %v8217_v0, %v8212_v22  ;;  %v5166_v0 = vld [vmem:[%s9020_s1 + $0xd4] ss:$8 sps:$4 sm:$0xff]   ;;  %v5170_v57 = vld [vmem:[%s9020_s1 + $0xd0] ss:$8 sps:$4 sm:$0xff]  }
 0x1d8   :  { %5055 = vrot.lane.b32.xlu0 %v5054_v41, %s5306_s21  ;;  %v5084_v27 = vpack.i.bf16 %v8250_v20, %v8245_v15  ;;  %v5171_v15 = vld [vmem:[%s9020_s1 + $0x100] ss:$8 sps:$4 sm:$0xff]   ;;  %v5094_v63 = vpack.i.bf16 %v8283_v16, %v8278_v19 }
 0x1d9   :  { %v3025_v3 = vsel %vm3023_vm8, %v4768_v47, %v4773_v44  ;;  %v3024_v30 = vsel %vm3023_vm8, %v4767_v52, %v4772_v9  ;;  %2537 = vmatprep.subr.bf16.mxu1 %v2478_v26  ;;  %2249 = vmatpush1.bf16.msra.mxu0 %v2188_v37  ;;  %v4781_v58 = vpop.permute.xlu1 %4780  ;;  %v3048_v17 = vsel %vm3023_vm8, %v4772_v9, %v4767_v52  ;;  %v5174_v9 = vld [vmem:[%s9020_s1 + $0x114] ss:$8 sps:$4 sm:$0xff]  }
 0x1da   :  { %v4783_v5 = vunpack.i.h.bf16 %v4781_v58  ;;  %v4782_v48 = vunpack.i.l.bf16 %v4781_v58  ;;  %v4776_v18 = vpop.permute.xlu0 %4775  ;;  %4040 = vmatprep.subr.msk.bf16.mxu0 %vm7917_vm7, %v4039_v53  ;;  %v3049_v31 = vsel %vm3023_vm8, %v4773_v44, %v4768_v47  ;;  %v3079_v35 = vpack.c.bf16 %v3025_v3, %v3024_v30 }
 0x1db   :  { %2538 = vmatpush1.bf16.msra.mxu1 %v2477_v62  ;;  %v4778_v4 = vunpack.i.h.bf16 %v4776_v18  ;;  %v4777_v2 = vunpack.i.l.bf16 %v4776_v18  ;;  %5070 = vrot.lane.b32.xlu1 %v6823_v33, %s5306_s21  ;;  %v3080_v24 = vpack.c.bf16 %v3049_v31, %v3048_v17 }
 0x1dc   :  { %5065 = vrot.lane.b32.xlu0 %v5064_v28, %s5306_s21  ;;  %v5172_v28 = vld [vmem:[%s9020_s1 + $0xe4] ss:$8 sps:$4 sm:$0xff]  }
 0x1dd   :  { %v3027_v6 = vsel %vm3023_vm8, %v4778_v4, %v4783_v5  ;;  %v3026_v39 = vsel %vm3023_vm8, %v4777_v2, %v4782_v48  ;;  %3139 = vmatprep.subr.bf16.mxu1 %v3080_v24  ;;  %2251 = vmatpush1.bf16.msra.mxu0 %v2190_v13  ;;  %v4791_v29 = vpop.permute.xlu1 %4790  ;;  %v3050_v33 = vsel %vm3023_vm8, %v4782_v48, %v4777_v2 }
 0x1de   :  { %2548 = vmatmul.mubr.bf16.vlgmr.msra.gmra.mrb[24].mxu1 %v5160_v25  ;;  %v4793_v1 = vunpack.i.h.bf16 %v4791_v29  ;;  %v4792_v60 = vunpack.i.l.bf16 %v4791_v29  ;;  %v4786_v42 = vpop.permute.xlu0 %4785  ;;  %v3051_v22 = vsel %vm3023_vm8, %v4783_v5, %v4778_v4  ;;  %v3081_v38 = vpack.c.bf16 %v3027_v6, %v3026_v39  ;;  %v5177_v4 = vld [vmem:[%s9020_s1 + $0x110] ss:$8 sps:$4 sm:$0xff]  }
 0x1df   :  { %3140 = vmatpush1.bf16.msra.mxu1 %v3079_v35  ;;  %v4788_v49 = vunpack.i.h.bf16 %v4786_v42  ;;  %v4787_v56 = vunpack.i.l.bf16 %v4786_v42  ;;  %5080 = vrot.lane.b32.xlu1 %v6819_v32, %s5306_s21  ;;  %v3082_v40 = vpack.c.bf16 %v3051_v22, %v3050_v33 }
 0x1e0   :  { %5075 = vrot.lane.b32.xlu0 %v5074_v43, %s5306_s21  ;;  %2261 = vmatmul.mubr.bf16.vlgmr.msra.gmra.mrb[24].mxu0 %v5163_v51  ;;  %v5180_v51 = vld [vmem:[%s9020_s1 + $0x154] ss:$8 sps:$4 sm:$0xff]   ;;  %v5176_v43 = vld [vmem:[%s9020_s1 + $0xe0] ss:$8 sps:$4 sm:$0xff]  }
 0x1e1   :  { %v2713_v14 = vsel %vm2711_vm9, %v4788_v49, %v4793_v1  ;;  %v2712_v34 = vsel %vm2711_vm9, %v4787_v56, %v4792_v60  ;;  %3141 = vmatprep.subr.bf16.mxu1 %v3082_v40  ;;  %v4801_v11 = vpop.permute.xlu1 %4800  ;;  %v2736_v41 = vsel %vm2711_vm9, %v4792_v60, %v4787_v56  ;;  %v2737_v32 = vsel %vm2711_vm9, %v4793_v1, %v4788_v49 }
 0x1e2   :  { %v2767_v37 = vpack.c.bf16 %v2713_v14, %v2712_v34  ;;  %v4803_v12 = vunpack.i.h.bf16 %v4801_v11  ;;  %v4802_v8 = vunpack.i.l.bf16 %v4801_v11  ;;  %v4796_v7 = vpop.permute.xlu0 %4795  ;;  %v2768_v21 = vpack.c.bf16 %v2737_v32, %v2736_v41  ;;  %4042 = vmatprep.mubr.msk.bf16.mxu0 %vm1128_vm1, %v5166_v0  ;;  %4057 = vmatprep.mubr.msk.bf16.mxu1 %vm1128_vm1, %v5168_v36  ;;  %v5183_v0 = vld [vmem:[%s9020_s1 + $0x124] ss:$8 sps:$4 sm:$0xff]  }
 0x1e3   :  { %3142 = vmatpush1.bf16.msra.mxu1 %v3081_v38  ;;  %v4798_v20 = vunpack.i.h.bf16 %v4796_v7  ;;  %v4797_v44 = vunpack.i.l.bf16 %v4796_v7  ;;  %5090 = vrot.lane.b32.xlu1 %v6847_v46, %s5306_s21 }
 0x1e4   :  { %5085 = vrot.lane.b32.xlu0 %v5084_v27, %s5306_s21  ;;  %2827 = vmatprep.subr.bf16.mxu0 %v2768_v21 }
 0x1e5   :  { %v3029_v23 = vsel %vm3023_vm8, %v4798_v20, %v4803_v12  ;;  %v3028_v46 = vsel %vm3023_vm8, %v4797_v44, %v4802_v8  ;;  %2828 = vmatpush1.bf16.msra.mxu0 %v2767_v37  ;;  %v4811_v50 = vpop.permute.xlu1 %4810  ;;  %v3052_v53 = vsel %vm3023_vm8, %v4802_v8, %v4797_v44  ;;  %v3053_v62 = vsel %vm3023_vm8, %v4803_v12, %v4798_v20 }
 0x1e6   :  { %v3083_v47 = vpack.c.bf16 %v3029_v23, %v3028_v46  ;;  %v4813_v19 = vunpack.i.h.bf16 %v4811_v50  ;;  %v4812_v16 = vunpack.i.l.bf16 %v4811_v50  ;;  %v4806_v52 = vpop.permute.xlu0 %4805  ;;  %2558 = vmatmul.mubr.bf16.gmra.mrb[28].mxu1 %v5171_v15  ;;  %v3084_v26 = vpack.c.bf16 %v3053_v62, %v3052_v53 }
 0x1e7   :  { %v4808_v13 = vunpack.i.h.bf16 %v4806_v52  ;;  %v4807_v3 = vunpack.i.l.bf16 %v4806_v52  ;;  %5100 = vrot.lane.b32.xlu1 %v6843_v45, %s5306_s21  ;;  %4058 = vmatprep.mubr.msk.bf16.mxu1 %vm1128_vm1, %v5174_v9 }
 0x1e8   :  { %5095 = vrot.lane.b32.xlu0 %v5094_v63, %s5306_s21  ;;  %2271 = vmatmul.mubr.bf16.gmra.mrb[28].mxu0 %v5170_v57 }
 0x1e9   :  { %v2715_v30 = vsel %vm2711_vm9, %v4808_v13, %v4813_v19  ;;  %v2714_v58 = vsel %vm2711_vm9, %v4807_v3, %v4812_v16  ;;  %3143 = vmatprep.subr.bf16.mxu1 %v3084_v26  ;;  %v4821_v17 = vpop.permute.xlu1 %4820  ;;  %v2738_v5 = vsel %vm2711_vm9, %v4812_v16, %v4807_v3  ;;  %v2739_v48 = vsel %vm2711_vm9, %v4813_v19, %v4808_v13 }
 0x1ea   :  { %v2769_v45 = vpack.c.bf16 %v2715_v30, %v2714_v58  ;;  %3144 = vmatpush1.bf16.msra.mxu1 %v3083_v47  ;;  %v4823_v18 = vunpack.i.h.bf16 %v4821_v17  ;;  %v4822_v25 = vunpack.i.l.bf16 %v4821_v17  ;;  %v4816_v31 = vpop.permute.xlu0 %4815  ;;  %v2770_v35 = vpack.c.bf16 %v2739_v48, %v2738_v5  ;;  %4043 = vmatprep.mubr.msk.bf16.mxu0 %vm1128_vm1, %v5172_v28 }
 0x1eb   :  { %v4818_v2 = vunpack.i.h.bf16 %v4816_v31  ;;  %v4817_v24 = vunpack.i.l.bf16 %v4816_v31  ;;  %5110 = vrot.lane.b32.xlu1 %v6859_v55, %s5306_s21 }
 0x1ec   :  { %5105 = vrot.lane.b32.xlu0 %v8042_v59, %s5306_s21  ;;  %2829 = vmatprep.subr.bf16.mxu0 %v2770_v35 }
 0x1ed   :  { %v3031_v6 = vsel %vm3023_vm8, %v4818_v2, %v4823_v18  ;;  %v3030_v39 = vsel %vm3023_vm8, %v4817_v24, %v4822_v25  ;;  %2830 = vmatpush1.bf16.msra.mxu0 %v2769_v45  ;;  %v4831_v55 = vpop.permute.xlu1 %4830  ;;  %v3054_v29 = vsel %vm3023_vm8, %v4822_v25, %v4817_v24  ;;  %v3055_v33 = vsel %vm3023_vm8, %v4823_v18, %v4818_v2 }
 0x1ee   :  { %v3085_v59 = vpack.c.bf16 %v3031_v6, %v3030_v39  ;;  %v4833_v1 = vunpack.i.h.bf16 %v4831_v55  ;;  %v4832_v60 = vunpack.i.l.bf16 %v4831_v55  ;;  %v4826_v42 = vpop.permute.xlu0 %4825  ;;  %2568 = vmatmul.mubr.bf16.gmra.mrb[32].mxu1 %v5177_v4  ;;  %v3086_v22 = vpack.c.bf16 %v3055_v33, %v3054_v29 }
 0x1ef   :  { %v4828_v36 = vunpack.i.h.bf16 %v4826_v42  ;;  %v4827_v38 = vunpack.i.l.bf16 %v4826_v42  ;;  %5120 = vrot.lane.b32.xlu1 %v6855_v54, %s5306_s21  ;;  %4088 = vmatprep.mubr.msk.bf16.mxu1 %vm1128_vm1, %v5180_v51 }
 0x1f0   :  { %5115 = vrot.lane.b32.xlu0 %v8139_v61, %s5306_s21  ;;  %2281 = vmatmul.mubr.bf16.gmra.mrb[32].mxu0 %v5176_v43 }
 0x1f1   :  { %v2717_v49 = vsel %vm2711_vm9, %v4828_v36, %v4833_v1  ;;  %v2716_v56 = vsel %vm2711_vm9, %v4827_v38, %v4832_v60  ;;  %3145 = vmatprep.subr.bf16.mxu1 %v3086_v22  ;;  %v4841_v40 = vpop.permute.xlu1 %4840  ;;  %v2740_v27 = vsel %vm2711_vm9, %v4832_v60, %v4827_v38  ;;  %v2741_v54 = vsel %vm2711_vm9, %v4833_v1, %v4828_v36 }
 0x1f2   :  { %v2771_v14 = vpack.c.bf16 %v2717_v49, %v2716_v56  ;;  %3146 = vmatpush1.bf16.msra.mxu1 %v3085_v59  ;;  %v4843_v34 = vunpack.i.h.bf16 %v4841_v40  ;;  %v4842_v11 = vunpack.i.l.bf16 %v4841_v40  ;;  %v4836_v61 = vpop.permute.xlu0 %4835  ;;  %v2772_v41 = vpack.c.bf16 %v2741_v54, %v2740_v27  ;;  %4072 = vmatprep.mubr.msk.bf16.mxu0 %vm1128_vm1, %v5183_v0 }
 0x1f3   :  { %v4838_v32 = vunpack.i.h.bf16 %v4836_v61  ;;  %v4837_v37 = vunpack.i.l.bf16 %v4836_v61 }
 0x1f4   :  { %2831 = vmatprep.subr.bf16.mxu0 %v2772_v41 }
 0x1f5   :  { %v3033_v12 = vsel %vm3023_vm8, %v4838_v32, %v4843_v34  ;;  %v3032_v8 = vsel %vm3023_vm8, %v4837_v37, %v4842_v11  ;;  %2832 = vmatpush1.bf16.msra.mxu0 %v2771_v14  ;;  %v4851_v7 = vpop.permute.xlu1 %4850  ;;  %v3056_v21 = vsel %vm3023_vm8, %v4842_v11, %v4837_v37  ;;  %v3057_v15 = vsel %vm3023_vm8, %v4843_v34, %v4838_v32 }
 0x1f6   :  { %v3087_v20 = vpack.c.bf16 %v3033_v12, %v3032_v8  ;;  %v4853_v44 = vunpack.i.h.bf16 %v4851_v7  ;;  %v4852_v9 = vunpack.i.l.bf16 %v4851_v7  ;;  %v4846_v63 = vpop.permute.xlu0 %4845  ;;  %v3088_v57 = vpack.c.bf16 %v3057_v15, %v3056_v21 }
 0x1f7   :  { %v4848_v23 = vunpack.i.h.bf16 %v4846_v63  ;;  %v4847_v46 = vunpack.i.l.bf16 %v4846_v63 }
 0x1f8   :  { %3147 = vmatprep.subr.bf16.mxu1 %v3088_v57 }
 0x1f9   :  { %v2719_v50 = vsel %vm2711_vm9, %v4848_v23, %v4853_v44  ;;  %v2718_v53 = vsel %vm2711_vm9, %v4847_v46, %v4852_v9  ;;  %3148 = vmatpush1.bf16.msra.mxu1 %v3087_v20  ;;  %v4861_v62 = vpop.permute.xlu1 %4860  ;;  %v2742_v47 = vsel %vm2711_vm9, %v4852_v9, %v4847_v46  ;;  %v2743_v19 = vsel %vm2711_vm9, %v4853_v44, %v4848_v23 }
 0x1fa   :  { %v2773_v16 = vpack.c.bf16 %v2719_v50, %v2718_v53  ;;  %v4863_v52 = vunpack.i.h.bf16 %v4861_v62  ;;  %v4862_v26 = vunpack.i.l.bf16 %v4861_v62  ;;  %v4856_v28 = vpop.permute.xlu0 %4855  ;;  %v2774_v13 = vpack.c.bf16 %v2743_v19, %v2742_v47 }
 0x1fb   :  { %v4858_v3 = vunpack.i.h.bf16 %v4856_v28  ;;  %v4857_v30 = vunpack.i.l.bf16 %v4856_v28 }
 0x1fc   :  { %2833 = vmatprep.subr.bf16.mxu0 %v2774_v13 }
 0x1fd   :  { %v3035_v58 = vsel %vm3023_vm8, %v4858_v3, %v4863_v52  ;;  %v3034_v17 = vsel %vm3023_vm8, %v4857_v30, %v4862_v26  ;;  %2834 = vmatpush1.bf16.msra.mxu0 %v2773_v16  ;;  %v4871_v5 = vpop.permute.xlu1 %4870  ;;  %v3058_v48 = vsel %vm3023_vm8, %v4862_v26, %v4857_v30  ;;  %v3059_v45 = vsel %vm3023_vm8, %v4863_v52, %v4858_v3 }
 0x1fe   :  { %v3089_v18 = vpack.c.bf16 %v3035_v58, %v3034_v17  ;;  %v4873_v25 = vunpack.i.h.bf16 %v4871_v5  ;;  %v4872_v31 = vunpack.i.l.bf16 %v4871_v5  ;;  %v4866_v35 = vpop.permute.xlu0 %4865  ;;  %v3090_v4 = vpack.c.bf16 %v3059_v45, %v3058_v48 }
 0x1ff   :  { %v4868_v2 = vunpack.i.h.bf16 %v4866_v35  ;;  %v4867_v24 = vunpack.i.l.bf16 %v4866_v35 }
 0x200   :  { %3149 = vmatprep.subr.bf16.mxu1 %v3090_v4 }
 0x201   :  { %v2721_v51 = vsel %vm2711_vm9, %v4868_v2, %v4873_v25  ;;  %v2720_v43 = vsel %vm2711_vm9, %v4867_v24, %v4872_v31  ;;  %3150 = vmatpush1.bf16.msra.mxu1 %v3089_v18  ;;  %v4881_v6 = vpop.permute.xlu1 %4880  ;;  %v2744_v39 = vsel %vm2711_vm9, %v4872_v31, %v4867_v24  ;;  %v2745_v55 = vsel %vm2711_vm9, %v4873_v25, %v4868_v2 }
 0x202   :  { %v2775_v29 = vpack.c.bf16 %v2721_v51, %v2720_v43  ;;  %v4883_v33 = vunpack.i.h.bf16 %v4881_v6  ;;  %v4882_v59 = vunpack.i.l.bf16 %v4881_v6  ;;  %v4876_v1 = vpop.permute.xlu0 %4875  ;;  %v2776_v60 = vpack.c.bf16 %v2745_v55, %v2744_v39 }
 0x203   :  { %v4878_v42 = vunpack.i.h.bf16 %v4876_v1  ;;  %v4877_v22 = vunpack.i.l.bf16 %v4876_v1 }
 0x204   :  { %2835 = vmatprep.subr.bf16.mxu0 %v2776_v60 }
 0x205   :  { %v3037_v0 = vsel %vm3023_vm8, %v4878_v42, %v4883_v33  ;;  %v3036_v36 = vsel %vm3023_vm8, %v4877_v22, %v4882_v59  ;;  %2836 = vmatpush1.bf16.msra.mxu0 %v2775_v29  ;;  %v4891_v38 = vpop.permute.xlu1 %4890  ;;  %v3060_v49 = vsel %vm3023_vm8, %v4882_v59, %v4877_v22  ;;  %v3061_v56 = vsel %vm3023_vm8, %v4883_v33, %v4878_v42 }
 0x206   :  { %v3091_v40 = vpack.c.bf16 %v3037_v0, %v3036_v36  ;;  %v4893_v27 = vunpack.i.h.bf16 %v4891_v38  ;;  %v4892_v54 = vunpack.i.l.bf16 %v4891_v38  ;;  %v4886_v14 = vpop.permute.xlu0 %4885  ;;  %v3092_v34 = vpack.c.bf16 %v3061_v56, %v3060_v49 }
 0x207   :  { %v4888_v11 = vunpack.i.h.bf16 %v4886_v14  ;;  %v4887_v61 = vunpack.i.l.bf16 %v4886_v14 }
 0x208   :  { %3151 = vmatprep.subr.bf16.mxu1 %v3092_v34  ;;  %v8509_v7 = vpop.f32.mrb[0].mxu0 }
 0x209   :  { %v2723_v41 = vsel %vm2711_vm9, %v4888_v11, %v4893_v27  ;;  %v2722_v32 = vsel %vm2711_vm9, %v4887_v61, %v4892_v54  ;;  %3152 = vmatpush1.bf16.msra.mxu1 %v3091_v40  ;;  %v4901_v37 = vpop.permute.xlu1 %4900  ;;  %v2746_v12 = vsel %vm2711_vm9, %v4892_v54, %v4887_v61  ;;  %v2747_v8 = vsel %vm2711_vm9, %v4893_v27, %v4888_v11  ;;  %v8511_v63 = vpop.f32.mrb[1].mxu0 }
 0x20a   :  { %v2777_v21 = vpack.c.bf16 %v2723_v41, %v2722_v32  ;;  %v4903_v15 = vunpack.i.h.bf16 %v4901_v37  ;;  %v4902_v20 = vunpack.i.l.bf16 %v4901_v37  ;;  %v4896_v44 = vpop.permute.xlu0 %4895  ;;  %v2778_v9 = vpack.c.bf16 %v2747_v8, %v2746_v12  ;;  %v8513_v46 = vpop.f32.mrb[2].mxu0 }
 0x20b   :  { %v4898_v57 = vunpack.i.h.bf16 %v4896_v44  ;;  %v4897_v23 = vunpack.i.l.bf16 %v4896_v44  ;;  %v8515_v50 = vpop.f32.mrb[3].mxu0 }
 0x20c   :  { %2837 = vmatprep.subr.bf16.mxu0 %v2778_v9 }
 0x20d   :  { %v3039_v53 = vsel %vm3023_vm8, %v4898_v57, %v4903_v15  ;;  %v3038_v62 = vsel %vm3023_vm8, %v4897_v23, %v4902_v20  ;;  %2838 = vmatpush1.bf16.msra.mxu0 %v2777_v21  ;;  %v4911_v47 = vpop.permute.xlu1 %4910  ;;  %v3062_v19 = vsel %vm3023_vm8, %v4902_v20, %v4897_v23  ;;  %v3063_v16 = vsel %vm3023_vm8, %v4903_v15, %v4898_v57 }
 0x20e   :  { %v3093_v52 = vpack.c.bf16 %v3039_v53, %v3038_v62  ;;  %v4913_v26 = vunpack.i.h.bf16 %v4911_v47  ;;  %v4912_v28 = vunpack.i.l.bf16 %v4911_v47  ;;  %v4906_v13 = vpop.permute.xlu0 %4905  ;;  %v3094_v3 = vpack.c.bf16 %v3063_v16, %v3062_v19 }
 0x20f   :  { %v4908_v30 = vunpack.i.h.bf16 %v4906_v13  ;;  %v4907_v58 = vunpack.i.l.bf16 %v4906_v13 }
 0x210   :  { %3153 = vmatprep.subr.bf16.mxu1 %v3094_v3  ;;  %v8533_v25 = vpop.f32.mrb[4].mxu0 }
 0x211   :  { %v2725_v17 = vsel %vm2711_vm9, %v4908_v30, %v4913_v26  ;;  %v2724_v5 = vsel %vm2711_vm9, %v4907_v58, %v4912_v28  ;;  %3154 = vmatpush1.bf16.msra.mxu1 %v3093_v52  ;;  %v4921_v48 = vpop.permute.xlu1 %4920  ;;  %v2748_v45 = vsel %vm2711_vm9, %v4912_v28, %v4907_v58  ;;  %v2749_v18 = vsel %vm2711_vm9, %v4913_v26, %v4908_v30  ;;  %v8535_v51 = vpop.f32.mrb[5].mxu0 }
 0x212   :  { %v2779_v31 = vpack.c.bf16 %v2725_v17, %v2724_v5  ;;  %v4923_v35 = vunpack.i.h.bf16 %v4921_v48  ;;  %v4922_v4 = vunpack.i.l.bf16 %v4921_v48  ;;  %v4916_v2 = vpop.permute.xlu0 %4915  ;;  %v2780_v24 = vpack.c.bf16 %v2749_v18, %v2748_v45  ;;  %v8537_v39 = vpop.f32.mrb[6].mxu0 }
 0x213   :  { %v4918_v43 = vunpack.i.h.bf16 %v4916_v2  ;;  %v4917_v6 = vunpack.i.l.bf16 %v4916_v2  ;;  %v8539_v55 = vpop.f32.mrb[7].mxu0 }
 0x214   :  { %2839 = vmatprep.subr.bf16.mxu0 %v2780_v24 }
 0x215   :  { %v3041_v29 = vsel %vm3023_vm8, %v4918_v43, %v4923_v35  ;;  %v3040_v33 = vsel %vm3023_vm8, %v4917_v6, %v4922_v4  ;;  %2840 = vmatpush1.bf16.msra.mxu0 %v2779_v31  ;;  %v4931_v59 = vpop.permute.xlu1 %4930  ;;  %v3064_v1 = vsel %vm3023_vm8, %v4922_v4, %v4917_v6  ;;  %v3065_v60 = vsel %vm3023_vm8, %v4923_v35, %v4918_v43 }
 0x216   :  { %v3095_v42 = vpack.c.bf16 %v3041_v29, %v3040_v33  ;;  %v4933_v22 = vunpack.i.h.bf16 %v4931_v59  ;;  %v4932_v0 = vunpack.i.l.bf16 %v4931_v59  ;;  %v4926_v36 = vpop.permute.xlu0 %4925  ;;  %v3096_v38 = vpack.c.bf16 %v3065_v60, %v3064_v1 }
 0x217   :  { %v4928_v49 = vunpack.i.h.bf16 %v4926_v36  ;;  %v4927_v56 = vunpack.i.l.bf16 %v4926_v36 }
 0x218   :  { %3155 = vmatprep.subr.bf16.mxu1 %v3096_v38  ;;  %v8557_v11 = vpop.f32.mrb[8].mxu0 }
 0x219   :  { %v2727_v40 = vsel %vm2711_vm9, %v4928_v49, %v4933_v22  ;;  %v2726_v27 = vsel %vm2711_vm9, %v4927_v56, %v4932_v0  ;;  %3156 = vmatpush1.bf16.msra.mxu1 %v3095_v42  ;;  %v4941_v54 = vpop.permute.xlu1 %4940  ;;  %v2750_v14 = vsel %vm2711_vm9, %v4932_v0, %v4927_v56  ;;  %v2751_v34 = vsel %vm2711_vm9, %v4933_v22, %v4928_v49  ;;  %v8559_v8 = vpop.f32.mrb[9].mxu0 }
 0x21a   :  { %v2781_v61 = vpack.c.bf16 %v2727_v40, %v2726_v27  ;;  %v4943_v41 = vunpack.i.h.bf16 %v4941_v54  ;;  %v4942_v32 = vunpack.i.l.bf16 %v4941_v54  ;;  %v4936_v37 = vpop.permute.xlu0 %4935  ;;  %v2782_v12 = vpack.c.bf16 %v2751_v34, %v2750_v14  ;;  %v8561_v20 = vpop.f32.mrb[10].mxu0 }
 0x21b   :  { %v4938_v21 = vunpack.i.h.bf16 %v4936_v37  ;;  %v4937_v15 = vunpack.i.l.bf16 %v4936_v37  ;;  %v8563_v44 = vpop.f32.mrb[11].mxu0 }
 0x21c   :  { %2841 = vmatprep.subr.bf16.mxu0 %v2782_v12  ;;  %v9042_v12 = vlaneseq }
 0x21d   :  { %v3043_v9 = vsel %vm3023_vm8, %v4938_v21, %v4943_v41  ;;  %v3042_v57 = vsel %vm3023_vm8, %v4937_v15, %v4942_v32  ;;  %2842 = vmatpush1.bf16.msra.mxu0 %v2781_v61  ;;  %v4951_v23 = vpop.permute.xlu1 %4950  ;;  %v3066_v53 = vsel %vm3023_vm8, %v4942_v32, %v4937_v15  ;;  %v3067_v62 = vsel %vm3023_vm8, %v4943_v41, %v4938_v21 }
 0x21e   :  { %v3097_v47 = vpack.c.bf16 %v3043_v9, %v3042_v57  ;;  %v4953_v19 = vunpack.i.h.bf16 %v4951_v23  ;;  %v4952_v16 = vunpack.i.l.bf16 %v4951_v23  ;;  %v4946_v52 = vpop.permute.xlu0 %4945  ;;  %v3098_v26 = vpack.c.bf16 %v3067_v62, %v3066_v53 }
 0x21f   :  { %v4948_v28 = vunpack.i.h.bf16 %v4946_v52  ;;  %v4947_v13 = vunpack.i.l.bf16 %v4946_v52  ;;  %v1204_v21 = vshrl.u32 %v9042_v12, 7 }
 0x220   :  { %3157 = vmatprep.subr.bf16.mxu1 %v3098_v26 }
 0x221   :  { %v2729_v3 = vsel %vm2711_vm9, %v4948_v28, %v4953_v19  ;;  %v2728_v30 = vsel %vm2711_vm9, %v4947_v13, %v4952_v16  ;;  %3158 = vmatpush1.bf16.msra.mxu1 %v3097_v47  ;;  %v4961_v58 = vpop.permute.xlu1 %4960  ;;  %v2752_v17 = vsel %vm2711_vm9, %v4952_v16, %v4947_v13  ;;  %v2753_v5 = vsel %vm2711_vm9, %v4953_v19, %v4948_v28 }
 0x222   :  { %v2783_v48 = vpack.c.bf16 %v2729_v3, %v2728_v30  ;;  %v4963_v45 = vunpack.i.h.bf16 %v4961_v58  ;;  %v4962_v18 = vunpack.i.l.bf16 %v4961_v58  ;;  %v4956_v31 = vpop.permute.xlu0 %4955  ;;  %v2784_v35 = vpack.c.bf16 %v2753_v5, %v2752_v17  ;;  %v5178_v30 = vld [vmem:[%s9020_s1 + $0x150] ss:$8 sps:$4 sm:$0xff]   ;;  %v1201_v58 = vld [vmem:[%s9021_s2] sm:$0x3] }
 0x223   :  { %v4958_v4 = vunpack.i.h.bf16 %v4956_v31  ;;  %v4957_v2 = vunpack.i.l.bf16 %v4956_v31  ;;  %v8606_v13 = vsub.s32 0, %v1204_v21  ;;  %v8608_v3 = vsub.s32 1, %v1204_v21  ;;  %v3960_v31 = vld [vmem:[%s9021_s2 + $0x2] sm:$0x3] }
 0x224   :  { %2843 = vmatprep.subr.bf16.mxu0 %v2784_v35 }
 0x225   :  { %v3045_v24 = vsel %vm3023_vm8, %v4958_v4, %v4963_v45  ;;  %v3044_v43 = vsel %vm3023_vm8, %v4957_v2, %v4962_v18  ;;  %2844 = vmatpush1.bf16.msra.mxu0 %v2783_v48  ;;  %v4971_v6 = vpop.permute.xlu1 %4970  ;;  %v3068_v29 = vsel %vm3023_vm8, %v4962_v18, %v4957_v2  ;;  %v3069_v33 = vsel %vm3023_vm8, %v4963_v45, %v4958_v4 }
 0x226   :  { %v3099_v59 = vpack.c.bf16 %v3045_v24, %v3044_v43  ;;  %v4973_v1 = vunpack.i.h.bf16 %v4971_v6  ;;  %v4972_v60 = vunpack.i.l.bf16 %v4971_v6  ;;  %v4966_v42 = vpop.permute.xlu0 %4965  ;;  %v3100_v22 = vpack.c.bf16 %v3069_v33, %v3068_v29  ;;  %v5187_v6 = vld [vmem:[%s9020_s1 + $0x164] ss:$8 sps:$4 sm:$0xff]  }
 0x227   :  { %v4968_v0 = vunpack.i.h.bf16 %v4966_v42  ;;  %v4967_v36 = vunpack.i.l.bf16 %v4966_v42  ;;  %v8641_v42 = vrot.slane %v3960_v31, %v8608_v3 }
 0x228   :  { %3159 = vmatprep.subr.bf16.mxu1 %v3100_v22 }
 0x229   :  { %v2731_v38 = vsel %vm2711_vm9, %v4968_v0, %v4973_v1  ;;  %v2730_v49 = vsel %vm2711_vm9, %v4967_v36, %v4972_v60  ;;  %3160 = vmatpush1.bf16.msra.mxu1 %v3099_v59  ;;  %v4981_v56 = vpop.permute.xlu1 %4980  ;;  %v2754_v40 = vsel %vm2711_vm9, %v4972_v60, %v4967_v36  ;;  %v2755_v27 = vsel %vm2711_vm9, %v4973_v1, %v4968_v0 }
 0x22a   :  { %v2785_v54 = vpack.c.bf16 %v2731_v38, %v2730_v49  ;;  %v4983_v14 = vunpack.i.h.bf16 %v4981_v56  ;;  %v4982_v34 = vunpack.i.l.bf16 %v4981_v56  ;;  %v4976_v61 = vpop.permute.xlu0 %4975  ;;  %v2786_v41 = vpack.c.bf16 %v2755_v27, %v2754_v40 }
 0x22b   :  { %v4978_v32 = vunpack.i.h.bf16 %v4976_v61  ;;  %v4977_v37 = vunpack.i.l.bf16 %v4976_v61  ;;  %v8632_v59 = vrot.slane %v1201_v58, %v8606_v13  ;;  %v8635_v1 = vrot.slane %v1201_v58, %v8608_v3 }
 0x22c   :  { %2845 = vmatprep.subr.bf16.mxu0 %v2786_v41  ;;  %v8638_v60 = vrot.slane %v3960_v31, %v8606_v13 }
 0x22d   :  { %v3047_v15 = vsel %vm3023_vm8, %v4978_v32, %v4983_v14  ;;  %v3046_v9 = vsel %vm3023_vm8, %v4977_v37, %v4982_v34  ;;  %2846 = vmatpush1.bf16.msra.mxu0 %v2785_v54  ;;  %v4991_v57 = vpop.permute.xlu1 %4990  ;;  %v3070_v23 = vsel %vm3023_vm8, %v4982_v34, %v4977_v37  ;;  %v3071_v53 = vsel %vm3023_vm8, %v4983_v14, %v4978_v32  ;;  %v5189_v37 = vld [vmem:[%s9020_s1 + $0x160] ss:$8 sps:$4 sm:$0xff]  }
 0x22e   :  { %v3101_v62 = vpack.c.bf16 %v3047_v15, %v3046_v9  ;;  %v4993_v47 = vunpack.i.h.bf16 %v4991_v57  ;;  %v4992_v19 = vunpack.i.l.bf16 %v4991_v57  ;;  %v4986_v16 = vpop.permute.xlu0 %4985  ;;  %v3102_v52 = vpack.c.bf16 %v3071_v53, %v3070_v23 }
 0x22f   :  { %v4988_v26 = vunpack.i.h.bf16 %v4986_v16  ;;  %v4987_v28 = vunpack.i.l.bf16 %v4986_v16  ;;  %v1213_v41 = vmul.f32 %v8632_v59, %v8509_v7  ;;  %v1214_v32 = vmul.f32 %v8635_v1, %v8511_v63 }
 0x230   :  { %3161 = vmatprep.subr.bf16.mxu1 %v3102_v52  ;;  %v1215_v12 = vmul.f32 %v8632_v59, %v8513_v46  ;;  %v8665_v21 = vmul.f32 %v8635_v1, %v8515_v50  ;;  %v8669_v15 = vmul.f32 %v8632_v59, %v8533_v25  ;;  %v8673_v7 = vmul.f32 %v8635_v1, %v8535_v51 }
 0x231   :  { %v2733_v17 = vsel %vm2711_vm9, %v4988_v26, %v4993_v47  ;;  %v2732_v5 = vsel %vm2711_vm9, %v4987_v28, %v4992_v19  ;;  %3162 = vmatpush1.bf16.msra.mxu1 %v3101_v62  ;;  %v5001_v48 = vpop.permute.xlu1 %5000  ;;  %v2756_v45 = vsel %vm2711_vm9, %v4992_v19, %v4987_v28  ;;  %v2757_v18 = vsel %vm2711_vm9, %v4993_v47, %v4988_v26  ;;  %v5193_v19 = vld [vmem:[%s9020_s1 + $0x174] ss:$8 sps:$4 sm:$0xff]  }
 0x232   :  { %v2787_v35 = vpack.c.bf16 %v2733_v17, %v2732_v5  ;;  %v5003_v4 = vunpack.i.h.bf16 %v5001_v48  ;;  %v5002_v2 = vunpack.i.l.bf16 %v5001_v48  ;;  %v4996_v24 = vpop.permute.xlu0 %4995  ;;  %v2788_v43 = vpack.c.bf16 %v2757_v18, %v2756_v45  ;;  %v5181_v17 = vld [vmem:[%s9020_s1 + $0x120] ss:$8 sps:$4 sm:$0xff]  }
 0x233   :  { %v4998_v29 = vunpack.i.h.bf16 %v4996_v24  ;;  %v4997_v33 = vunpack.i.l.bf16 %v4996_v24  ;;  %v8695_v45 = vmul.f32 %v8632_v59, %v8537_v39  ;;  %v8699_v18 = vmul.f32 %v8635_v1, %v8539_v55 }
 0x234   :  { %2847 = vmatprep.subr.bf16.mxu0 %v2788_v43  ;;  %3172 = vmatmul.mubr.bf16.vlgmr.msra.gmra.mrb[36].mxu1 %v5178_v30 }
 0x235   :  { %v3337_v22 = vsel %vm3335_vm10, %v4998_v29, %v5003_v4  ;;  %v3336_v0 = vsel %vm3335_vm10, %v4997_v33, %v5002_v2  ;;  %2848 = vmatpush1.bf16.msra.mxu0 %v2787_v35  ;;  %v5011_v36 = vpop.permute.xlu1 %5010  ;;  %v3360_v38 = vsel %vm3335_vm10, %v5002_v2, %v4997_v33  ;;  %v3361_v49 = vsel %vm3335_vm10, %v5003_v4, %v4998_v29  ;;  %v5184_v33 = vld [vmem:[%s9020_s1 + $0x134] ss:$8 sps:$4 sm:$0xff]  }
 0x236   :  { %v8651_v56 = vpack.c.bf16 %v3337_v22, %v3336_v0  ;;  %v5013_v40 = vunpack.i.h.bf16 %v5011_v36  ;;  %v5012_v27 = vunpack.i.l.bf16 %v5011_v36  ;;  %v5006_v54 = vpop.permute.xlu0 %5005  ;;  %v3392_v14 = vpack.c.bf16 %v3361_v49, %v3360_v38  ;;  %4089 = vmatprep.mubr.msk.bf16.mxu1 %vm1128_vm1, %v5187_v6  ;;  %v5195_v49 = vld [vmem:[%s9020_s1 + $0x170] ss:$8 sps:$4 sm:$0xff]  }
 0x237   :  { %v5008_v34 = vunpack.i.h.bf16 %v5006_v54  ;;  %v5007_v61 = vunpack.i.l.bf16 %v5006_v54  ;;  %v8725_v54 = vmul.f32 %v8632_v59, %v8557_v11 }
 0x238   :  { %4132 = vmatprep.subr.bf16.mxu1 %v3392_v14  ;;  %v1471_v57 = vpop.f32.mrb[0].mxu1 }
 0x239   :  { %v2735_v63 = vsel %vm2711_vm9, %v5008_v34, %v5013_v40  ;;  %v2734_v9 = vsel %vm2711_vm9, %v5007_v61, %v5012_v27  ;;  %4144 = vmatpush1.bf16.msra.mxu1 %v8651_v56  ;;  %v5021_v46 = vpop.permute.xlu1 %5020  ;;  %v2758_v50 = vsel %vm2711_vm9, %v5012_v27, %v5007_v61  ;;  %v2759_v25 = vsel %vm2711_vm9, %v5013_v40, %v5008_v34  ;;  %v1473_v16 = vpop.f32.mrb[1].mxu1 }
 0x23a   :  { %v2789_v23 = vpack.c.bf16 %v2735_v63, %v2734_v9  ;;  %v5023_v53 = vunpack.i.h.bf16 %v5021_v46  ;;  %v5022_v51 = vunpack.i.l.bf16 %v5021_v46  ;;  %v5016_v62 = vpop.permute.xlu0 %5015  ;;  %v2790_v47 = vpack.c.bf16 %v2759_v25, %v2758_v50  ;;  %v1475_v58 = vpop.f32.mrb[2].mxu1 }
 0x23b   :  { %v5018_v52 = vunpack.i.h.bf16 %v5016_v62  ;;  %v5017_v26 = vunpack.i.l.bf16 %v5016_v62  ;;  %v1513_v28 = vmul.f32 %v8638_v60, %v1471_v57  ;;  %v1514_v30 = vmul.f32 %v8641_v42, %v1473_v16  ;;  %v1477_v48 = vpop.f32.mrb[3].mxu1  ;;  %v5198_v57 = vld [vmem:[%s9020_s1 + $0x194] ss:$8 sps:$4 sm:$0xff]  }
 0x23c   :  { %2849 = vmatprep.subr.bf16.mxu0 %v2790_v47  ;;  %3182 = vmatmul.mubr.bf16.gmra.mrb[40].mxu1 %v5189_v37  ;;  %v1515_v5 = vmul.f32 %v8638_v60, %v1475_v58  ;;  %v1516_v27 = vmul.f32 %v8641_v42, %v1477_v48  ;;  %v8751_v16 = vmul.f32 %v8635_v1, %v8559_v8 }
 0x23d   :  { %v3339_v31 = vsel %vm3335_vm10, %v5018_v52, %v5023_v53  ;;  %v3338_v35 = vsel %vm3335_vm10, %v5017_v26, %v5022_v51  ;;  %2850 = vmatpush1.bf16.msra.mxu0 %v2789_v23  ;;  %v5031_v4 = vpop.permute.xlu1 %5030  ;;  %v3362_v2 = vsel %vm3335_vm10, %v5022_v51, %v5017_v26  ;;  %v3363_v24 = vsel %vm3335_vm10, %v5023_v53, %v5018_v52  ;;  %v5186_v51 = vld [vmem:[%s9020_s1 + $0x130] ss:$8 sps:$4 sm:$0xff]  }
 0x23e   :  { %v3393_v39 = vpack.c.bf16 %v3339_v31, %v3338_v35  ;;  %v5033_v43 = vunpack.i.h.bf16 %v5031_v4  ;;  %v5032_v6 = vunpack.i.l.bf16 %v5031_v4  ;;  %v5026_v29 = vpop.permute.xlu0 %5025  ;;  %3451 = vmatprep.subr.bf16.mxu0 %v3392_v14  ;;  %v3394_v55 = vpack.c.bf16 %v3363_v24, %v3362_v2  ;;  %4090 = vmatprep.mubr.msk.bf16.mxu1 %vm1128_vm1, %v5193_v19  ;;  %v5190_v2 = vld [vmem:[%s9020_s1 + $0x144] ss:$8 sps:$4 sm:$0xff]  }
 0x23f   :  { %v5028_v22 = vunpack.i.h.bf16 %v5026_v29  ;;  %v5027_v0 = vunpack.i.l.bf16 %v5026_v29  ;;  %v8713_v36 = vadd.f32 %v1513_v28, %v1213_v41  ;;  %v8715_v38 = vadd.f32 %v1514_v30, %v1214_v32 }
 0x240   :  { %2860 = vmatmul.mubr.bf16.vlgmr.msra.gmra.mrb[36].mxu0 %v5181_v17  ;;  %4133 = vmatprep.subr.bf16.mxu1 %v3394_v55  ;;  %v8720_v40 = vadd.f32 %v1515_v5, %v1215_v12  ;;  %v1481_v32 = vpop.f32.mrb[4].mxu1  ;;  %v8741_v23 = vadd.f32 %v1516_v27, %v8665_v21  ;;  %v1223_v29 = vmul.f32 %v8632_v59, %v8561_v20 }
 0x241   :  { %v3341_v14 = vsel %vm3335_vm10, %v5028_v22, %v5033_v43  ;;  %v3340_v34 = vsel %vm3335_vm10, %v5027_v0, %v5032_v6  ;;  %3452 = vmatpush1.bf16.msra.mxu0 %v8651_v56  ;;  %4145 = vmatpush1.bf16.msra.mxu1 %v3393_v39  ;;  %v5041_v61 = vpop.permute.xlu1 %5040  ;;  %v3364_v41 = vsel %vm3335_vm10, %v5032_v6, %v5027_v0  ;;  %v1483_v46 = vpop.f32.mrb[5].mxu1 }
 0x242   :  { %v3395_v37 = vpack.c.bf16 %v3341_v14, %v3340_v34  ;;  %v5043_v12 = vunpack.i.h.bf16 %v5041_v61  ;;  %v5042_v63 = vunpack.i.l.bf16 %v5041_v61  ;;  %v5036_v9 = vpop.permute.xlu0 %5035  ;;  %3453 = vmatprep.subr.bf16.mxu0 %v3394_v55  ;;  %v3365_v11 = vsel %vm3335_vm10, %v5033_v43, %v5028_v22  ;;  %4073 = vmatprep.mubr.msk.bf16.mxu0 %vm1128_vm1, %v5184_v33  ;;  %v1485_v53 = vpop.f32.mrb[6].mxu1 }
 0x243   :  { %v5038_v50 = vunpack.i.h.bf16 %v5036_v9  ;;  %v5037_v25 = vunpack.i.l.bf16 %v5036_v9  ;;  %v3396_v56 = vpack.c.bf16 %v3365_v11, %v3364_v41  ;;  %v1517_v62 = vmul.f32 %v8638_v60, %v1481_v32  ;;  %v1487_v52 = vpop.f32.mrb[7].mxu1 }
 0x244   :  { %3192 = vmatmul.mubr.bf16.gmra.mrb[44].mxu1 %v5195_v49  ;;  %v1518_v47 = vmul.f32 %v8641_v42, %v1483_v46  ;;  %v1519_v19 = vmul.f32 %v8638_v60, %v1485_v53  ;;  %v1520_v6 = vmul.f32 %v8641_v42, %v1487_v52 }
 0x245   :  { %v3343_v21 = vsel %vm3335_vm10, %v5038_v50, %v5043_v12  ;;  %v3342_v26 = vsel %vm3335_vm10, %v5037_v25, %v5042_v63  ;;  %4134 = vmatprep.subr.bf16.mxu1 %v3396_v56  ;;  %3454 = vmatpush1.bf16.msra.mxu0 %v3393_v39  ;;  %v5051_v28 = vpop.permute.xlu1 %5050  ;;  %v3366_v30 = vsel %vm3335_vm10, %v5042_v63, %v5037_v25 }
 0x246   :  { %v3397_v58 = vpack.c.bf16 %v3343_v21, %v3342_v26  ;;  %4146 = vmatpush1.bf16.msra.mxu1 %v3395_v37  ;;  %v5053_v17 = vunpack.i.h.bf16 %v5051_v28  ;;  %v5052_v5 = vunpack.i.l.bf16 %v5051_v28  ;;  %v5046_v48 = vpop.permute.xlu0 %5045  ;;  %3455 = vmatprep.subr.bf16.mxu0 %v3396_v56  ;;  %v3367_v8 = vsel %vm3335_vm10, %v5043_v12, %v5038_v50 }
 0x247   :  { %v5048_v31 = vunpack.i.h.bf16 %v5046_v48  ;;  %v5047_v35 = vunpack.i.l.bf16 %v5046_v48  ;;  %v3398_v4 = vpack.c.bf16 %v3367_v8, %v3366_v30  ;;  %4105 = vmatprep.mubr.msk.bf16.mxu1 %vm1128_vm1, %v5198_v57  ;;  %v8766_v24 = vadd.f32 %v1517_v62, %v8669_v15 }
 0x248   :  { %2870 = vmatmul.mubr.bf16.gmra.mrb[40].mxu0 %v5186_v51  ;;  %v8769_v39 = vadd.f32 %v1518_v47, %v8673_v7  ;;  %v8772_v43 = vadd.f32 %v1519_v19, %v8695_v45  ;;  %v8787_v41 = vadd.f32 %v1520_v6, %v8699_v18  ;;  %v1224_v63 = vmul.f32 %v8635_v1, %v8563_v44  ;;  %v5201_v19 = vld [vmem:[%s9020_s1 + $0x184] ss:$8 sps:$4 sm:$0xff]  }
 0x249   :  { %v3345_v55 = vsel %vm3335_vm10, %v5048_v31, %v5053_v17  ;;  %v3344_v33 = vsel %vm3335_vm10, %v5047_v35, %v5052_v5  ;;  %4135 = vmatprep.subr.bf16.mxu1 %v3398_v4  ;;  %3456 = vmatpush1.bf16.msra.mxu0 %v3395_v37  ;;  %v5061_v15 = vpop.permute.xlu1 %5060  ;;  %v3368_v7 = vsel %vm3335_vm10, %v5052_v5, %v5047_v35  ;;  %v1491_v22 = vpop.f32.mrb[8].mxu1  ;;  %v5192_v37 = vld [vmem:[%s9020_s1 + $0x140] ss:$8 sps:$4 sm:$0xff]  }
 0x24a   :  { %v3399_v45 = vpack.c.bf16 %v3345_v55, %v3344_v33  ;;  %4147 = vmatpush1.bf16.msra.mxu1 %v3397_v58  ;;  %v5063_v0 = vunpack.i.h.bf16 %v5061_v15  ;;  %v5062_v49 = vunpack.i.l.bf16 %v5061_v15  ;;  %v5056_v27 = vpop.permute.xlu0 %5055  ;;  %3457 = vmatprep.subr.bf16.mxu0 %v3398_v4  ;;  %v3369_v20 = vsel %vm3335_vm10, %v5053_v17, %v5048_v31  ;;  %v1493_v59 = vpop.f32.mrb[9].mxu1 }
 0x24b   :  { %v5058_v14 = vunpack.i.h.bf16 %v5056_v27  ;;  %v5057_v34 = vunpack.i.l.bf16 %v5056_v27  ;;  %v3400_v61 = vpack.c.bf16 %v3369_v20, %v3368_v7  ;;  %4074 = vmatprep.mubr.msk.bf16.mxu0 %vm1128_vm1, %v5190_v2  ;;  %v1495_v32 = vpop.f32.mrb[10].mxu1  ;;  %v1521_v12 = vmul.f32 %v8638_v60, %v1491_v22 }
 0x24c   :  { %v1522_v9 = vmul.f32 %v8641_v42, %v1493_v59  ;;  %v1523_v11 = vmul.f32 %v8638_v60, %v1495_v32  ;;  %v1497_v46 = vpop.f32.mrb[11].mxu1 }
 0x24d   :  { %v3347_v50 = vsel %vm3335_vm10, %v5058_v14, %v5063_v0  ;;  %v3346_v18 = vsel %vm3335_vm10, %v5057_v34, %v5062_v49  ;;  %4136 = vmatprep.subr.bf16.mxu1 %v3400_v61  ;;  %3458 = vmatpush1.bf16.msra.mxu0 %v3397_v58  ;;  %v5071_v25 = vpop.permute.xlu1 %5070  ;;  %v3370_v56 = vsel %vm3335_vm10, %v5062_v49, %v5057_v34 }
 0x24e   :  { %v3401_v57 = vpack.c.bf16 %v3347_v50, %v3346_v18  ;;  %4148 = vmatpush1.bf16.msra.mxu1 %v3399_v45  ;;  %v5073_v44 = vunpack.i.h.bf16 %v5071_v25  ;;  %v5072_v1 = vunpack.i.l.bf16 %v5071_v25  ;;  %v5066_v53 = vpop.permute.xlu0 %5065  ;;  %3459 = vmatprep.subr.bf16.mxu0 %v3400_v61  ;;  %v3371_v60 = vsel %vm3335_vm10, %v5063_v0, %v5058_v14 }
 0x24f   :  { %v5068_v51 = vunpack.i.h.bf16 %v5066_v53  ;;  %v5067_v62 = vunpack.i.l.bf16 %v5066_v53  ;;  %v3402_v47 = vpack.c.bf16 %v3371_v60, %v3370_v56  ;;  %v8809_v52 = vadd.f32 %v1521_v12, %v8725_v54 }
 0x250   :  { %2880 = vmatmul.mubr.bf16.gmra.mrb[44].mxu0 %v5192_v37  ;;  %v8812_v21 = vadd.f32 %v1522_v9, %v8751_v16  ;;  %v8814_v26 = vadd.f32 %v1523_v11, %v1223_v29  ;;  %v1524_v28 = vmul.f32 %v8641_v42, %v1497_v46 }
 0x251   :  { %v3349_v30 = vsel %vm3335_vm10, %v5068_v51, %v5073_v44  ;;  %v3348_v58 = vsel %vm3335_vm10, %v5067_v62, %v5072_v1  ;;  %4137 = vmatprep.subr.bf16.mxu1 %v3402_v47  ;;  %3460 = vmatpush1.bf16.msra.mxu0 %v3399_v45  ;;  %v5081_v17 = vpop.permute.xlu1 %5080  ;;  %v3372_v54 = vsel %vm3335_vm10, %v5072_v1, %v5067_v62 }
 0x252   :  { %v3403_v5 = vpack.c.bf16 %v3349_v30, %v3348_v58  ;;  %4149 = vmatpush1.bf16.msra.mxu1 %v3401_v57  ;;  %v5083_v16 = vunpack.i.h.bf16 %v5081_v17  ;;  %v5082_v48 = vunpack.i.l.bf16 %v5081_v17  ;;  %v5076_v8 = vpop.permute.xlu0 %5075  ;;  %3461 = vmatprep.subr.bf16.mxu0 %v3402_v47  ;;  %v3373_v42 = vsel %vm3335_vm10, %v5073_v44, %v5068_v51 }
 0x253   :  { %v5078_v31 = vunpack.i.h.bf16 %v5076_v8  ;;  %v5077_v35 = vunpack.i.l.bf16 %v5076_v8  ;;  %v3404_v4 = vpack.c.bf16 %v3373_v42, %v3372_v54  ;;  %4104 = vmatprep.mubr.msk.bf16.mxu0 %vm1128_vm1, %v5201_v19  ;;  %v8826_v2 = vadd.f32 %v1524_v28, %v1224_v63 }
 0x255   :  { %v3351_v6 = vsel %vm3335_vm10, %v5078_v31, %v5083_v16  ;;  %v3350_v29 = vsel %vm3335_vm10, %v5077_v35, %v5082_v48  ;;  %4138 = vmatprep.subr.bf16.mxu1 %v3404_v4  ;;  %3462 = vmatpush1.bf16.msra.mxu0 %v3401_v57  ;;  %v5091_v55 = vpop.permute.xlu1 %5090  ;;  %v3374_v33 = vsel %vm3335_vm10, %v5082_v48, %v5077_v35 }
 0x256   :  { %v3405_v15 = vpack.c.bf16 %v3351_v6, %v3350_v29  ;;  %4150 = vmatpush1.bf16.msra.mxu1 %v3403_v5  ;;  %v5093_v7 = vunpack.i.h.bf16 %v5091_v55  ;;  %v5092_v22 = vunpack.i.l.bf16 %v5091_v55  ;;  %v5086_v45 = vpop.permute.xlu0 %5085  ;;  %3463 = vmatprep.subr.bf16.mxu0 %v3404_v4  ;;  %v3375_v0 = vsel %vm3335_vm10, %v5083_v16, %v5078_v31 }
 0x257   :  { %v5088_v49 = vunpack.i.h.bf16 %v5086_v45  ;;  %v5087_v27 = vunpack.i.l.bf16 %v5086_v45  ;;  %v3406_v20 = vpack.c.bf16 %v3375_v0, %v3374_v33  ;;  %v5199_v45 = vld [vmem:[%s9020_s1 + $0x180] ss:$8 sps:$4 sm:$0xff]   ;;  %v3976_v0 = vld [vmem:[%s9021_s2 + $0x4] sm:$0x3] }
 0x259   :  { %v3353_v59 = vsel %vm3335_vm10, %v5088_v49, %v5093_v7  ;;  %v3352_v14 = vsel %vm3335_vm10, %v5087_v27, %v5092_v22  ;;  %4139 = vmatprep.subr.bf16.mxu1 %v3406_v20  ;;  %3464 = vmatpush1.bf16.msra.mxu0 %v3403_v5  ;;  %v5101_v34 = vpop.permute.xlu1 %5100  ;;  %v3376_v61 = vsel %vm3335_vm10, %v5092_v22, %v5087_v27  ;;  %v5202_v22 = vld [vmem:[%s9020_s1 + $0x1a4] ss:$8 sps:$4 sm:$0xff]  }
 0x25a   :  { %v3407_v32 = vpack.c.bf16 %v3353_v59, %v3352_v14  ;;  %4151 = vmatpush1.bf16.msra.mxu1 %v3405_v15  ;;  %v5103_v37 = vunpack.i.h.bf16 %v5101_v34  ;;  %v5102_v12 = vunpack.i.l.bf16 %v5101_v34  ;;  %v5096_v63 = vpop.permute.xlu0 %5095  ;;  %3465 = vmatprep.subr.bf16.mxu0 %v3406_v20  ;;  %v3377_v9 = vsel %vm3335_vm10, %v5093_v7, %v5088_v49  ;;  %v5196_v7 = vld [vmem:[%s9020_s1 + $0x190] ss:$8 sps:$4 sm:$0xff]   ;;  %v3992_v27 = vld [vmem:[%s9021_s2 + $0x6] sm:$0x3] }
 0x25b   :  { %v5098_v11 = vunpack.i.h.bf16 %v5096_v63  ;;  %v5097_v46 = vunpack.i.l.bf16 %v5096_v63  ;;  %v3408_v50 = vpack.c.bf16 %v3377_v9, %v3376_v61  ;;  %v1818_v14 = vrot.slane %v3976_v0, %v8606_v13 }
 0x25c   :  { %v2130_v34 = vrot.slane %v3992_v27, %v8606_v13 }
 0x25d   :  { %v3355_v18 = vsel %vm3335_vm10, %v5098_v11, %v5103_v37  ;;  %v3354_v25 = vsel %vm3335_vm10, %v5097_v46, %v5102_v12  ;;  %4140 = vmatprep.subr.bf16.mxu1 %v3408_v50  ;;  %3466 = vmatpush1.bf16.msra.mxu0 %v3405_v15  ;;  %v5111_v56 = vpop.permute.xlu1 %5110  ;;  %v3378_v57 = vsel %vm3335_vm10, %v5102_v12, %v5097_v46 }
 0x25e   :  { %v3409_v44 = vpack.c.bf16 %v3355_v18, %v3354_v25  ;;  %4152 = vmatpush1.bf16.msra.mxu1 %v3407_v32  ;;  %v5113_v1 = vunpack.i.h.bf16 %v5111_v56  ;;  %v5112_v53 = vunpack.i.l.bf16 %v5111_v56  ;;  %v5106_v60 = vpop.permute.xlu0 %5105  ;;  %3467 = vmatprep.subr.bf16.mxu0 %v3408_v50  ;;  %v3379_v51 = vsel %vm3335_vm10, %v5103_v37, %v5098_v11 }
 0x25f   :  { %v5108_v62 = vunpack.i.h.bf16 %v5106_v60  ;;  %v5107_v47 = vunpack.i.l.bf16 %v5106_v60  ;;  %v3410_v19 = vpack.c.bf16 %v3379_v51, %v3378_v57  ;;  %v2134_v37 = vrot.slane %v3992_v27, %v8608_v3 }
 0x261   :  { %v3357_v28 = vsel %vm3335_vm10, %v5108_v62, %v5113_v1  ;;  %v3356_v30 = vsel %vm3335_vm10, %v5107_v47, %v5112_v53  ;;  %4141 = vmatprep.subr.bf16.mxu1 %v3410_v19  ;;  %3468 = vmatpush1.bf16.msra.mxu0 %v3407_v32  ;;  %v5121_v58 = vpop.permute.xlu1 %5120  ;;  %v3380_v17 = vsel %vm3335_vm10, %v5112_v53, %v5107_v47 }
 0x262   :  { %v3411_v54 = vpack.c.bf16 %v3357_v28, %v3356_v30  ;;  %4153 = vmatpush1.bf16.msra.mxu1 %v3409_v44  ;;  %v5123_v5 = vunpack.i.h.bf16 %v5121_v58  ;;  %v5122_v16 = vunpack.i.l.bf16 %v5121_v58  ;;  %v5116_v48 = vpop.permute.xlu0 %5115  ;;  %3469 = vmatprep.subr.bf16.mxu0 %v3410_v19  ;;  %v3381_v8 = vsel %vm3335_vm10, %v5113_v1, %v5108_v62 }
 0x263   :  { %v5118_v42 = vunpack.i.h.bf16 %v5116_v48  ;;  %v5117_v31 = vunpack.i.l.bf16 %v5116_v48  ;;  %v3412_v35 = vpack.c.bf16 %v3381_v8, %v3380_v17  ;;  %v1822_v32 = vrot.slane %v3976_v0, %v8608_v3 }
 0x265   :  { %v3359_v4 = vsel %vm3335_vm10, %v5118_v42, %v5123_v5  ;;  %v3358_v6 = vsel %vm3335_vm10, %v5117_v31, %v5122_v16  ;;  %4142 = vmatprep.subr.bf16.mxu1 %v3412_v35  ;;  %3470 = vmatpush1.bf16.msra.mxu0 %v3409_v44  ;;  %v3382_v29 = vsel %vm3335_vm10, %v5122_v16, %v5117_v31 }
 0x266   :  { %v3413_v55 = vpack.c.bf16 %v3359_v4, %v3358_v6  ;;  %4154 = vmatpush1.bf16.msra.mxu1 %v3411_v54  ;;  %3471 = vmatprep.subr.bf16.mxu0 %v3412_v35  ;;  %v3383_v33 = vsel %vm3335_vm10, %v5123_v5, %v5118_v42 }
 0x267   :  { %v3414_v15 = vpack.c.bf16 %v3383_v33, %v3382_v29 }
 0x269   :  { %4143 = vmatprep.subr.bf16.mxu1 %v3414_v15  ;;  %3472 = vmatpush1.bf16.msra.mxu0 %v3411_v54 }
 0x26a   :  { %4155 = vmatpush1.bf16.msra.mxu1 %v3413_v55  ;;  %3473 = vmatprep.subr.bf16.mxu0 %v3414_v15 }
 0x26d   :  { %3494 = vmatmul.mubr.bf16.vlgmr.msra.gmra.mrb[48].mxu1 %v5196_v7  ;;  %3474 = vmatpush1.bf16.msra.mxu0 %v3413_v55 }
 0x26e   :  { %4106 = vmatprep.mubr.msk.bf16.mxu1 %vm1128_vm1, %v5202_v22 }
 0x270   :  { %3484 = vmatmul.mubr.bf16.vlgmr.msra.gmra.mrb[48].mxu0 %v5199_v45 }
 0x275   :  { %3504 = vmatmul.mubr.bf16.gmra.mrb[52].mxu1 %v5204_v10 }
 0x27d   :  { %v2095_v49 = vpop.f32.mrb[12].mxu1 }
 0x27e   :  { %v2097_v20 = vpop.f32.mrb[13].mxu1  ;;  %v2137_v11 = vmul.f32 %v2130_v34, %v2095_v49 }
 0x27f   :  { %v2099_v59 = vpop.f32.mrb[14].mxu1  ;;  %v2138_v18 = vmul.f32 %v2134_v37, %v2097_v20 }
 0x280   :  { %v2101_v61 = vpop.f32.mrb[15].mxu1  ;;  %v2139_v44 = vmul.f32 %v2130_v34, %v2099_v59 }
 0x281   :  { %v2140_v60 = vmul.f32 %v2134_v37, %v2101_v61 }
 0x283   :  { %v1783_v12 = vpop.f32.mrb[12].mxu0 }
 0x284   :  { %v1825_v63 = vmul.f32 %v1818_v14, %v1783_v12  ;;  %v1785_v9 = vpop.f32.mrb[13].mxu0 }
 0x285   :  { %v1826_v46 = vmul.f32 %v1822_v32, %v1785_v9  ;;  %v1787_v50 = vpop.f32.mrb[14].mxu0 }
 0x286   :  { %v1837_v25 = vadd.f32 %v1825_v63, %v8713_v36  ;;  %v1827_v56 = vmul.f32 %v1818_v14, %v1787_v50  ;;  %v1789_v57 = vpop.f32.mrb[15].mxu0 }
 0x287   :  { %v1838_v1 = vadd.f32 %v1826_v46, %v8715_v38  ;;  %v1828_v53 = vmul.f32 %v1822_v32, %v1789_v57  ;;  %v2105_v51 = vpop.f32.mrb[16].mxu1 }
 0x288   :  { %v1839_v62 = vadd.f32 %v1827_v56, %v8720_v40  ;;  %v2107_v47 = vpop.f32.mrb[17].mxu1  ;;  %v2149_v19 = vadd.f32 %v2137_v11, %v1837_v25  ;;  %v2141_v38 = vmul.f32 %v2130_v34, %v2105_v51  ;;  %v4059_v51 = vld [vmem:[%s9021_s2 + $0xa] sm:$0x3] }
 0x289   :  { %v1840_v28 = vadd.f32 %v1828_v53, %v8741_v23  ;;  %v2109_v30 = vpop.f32.mrb[18].mxu1  ;;  %v2150_v58 = vadd.f32 %v2138_v18, %v1838_v1  ;;  %v2142_v31 = vmul.f32 %v2134_v37, %v2107_v47 }
 0x28a   :  { %v2111_v17 = vpop.f32.mrb[19].mxu1  ;;  %v8895_v54 = vadd.f32 %v2139_v44, %v1839_v62  ;;  %v2143_v6 = vmul.f32 %v2130_v34, %v2109_v30 }
 0x28b   :  { %v1793_v36 = vpop.f32.mrb[16].mxu0  ;;  %v8897_v5 = vadd.f32 %v2140_v60, %v1840_v28  ;;  %v2144_v55 = vmul.f32 %v2134_v37, %v2111_v17 }
 0x28c   :  { %v1829_v16 = vmul.f32 %v1818_v14, %v1793_v36  ;;  %v1795_v48 = vpop.f32.mrb[17].mxu0 }
 0x28d   :  { %v1830_v8 = vmul.f32 %v1822_v32, %v1795_v48  ;;  %v1797_v42 = vpop.f32.mrb[18].mxu0 }
 0x28e   :  { %v1841_v40 = vadd.f32 %v1829_v16, %v8766_v24  ;;  %v1831_v35 = vmul.f32 %v1818_v14, %v1797_v42  ;;  %v1799_v4 = vpop.f32.mrb[19].mxu0 }
 0x28f   :  { %v1842_v23 = vadd.f32 %v1830_v8, %v8769_v39  ;;  %v1832_v29 = vmul.f32 %v1822_v32, %v1799_v4  ;;  %v2115_v33 = vpop.f32.mrb[20].mxu1 }
 0x290   :  { %v1843_v15 = vadd.f32 %v1831_v35, %v8772_v43  ;;  %v2117_v7 = vpop.f32.mrb[21].mxu1  ;;  %v2153_v22 = vadd.f32 %v2141_v38, %v1841_v40  ;;  %v2145_v12 = vmul.f32 %v2130_v34, %v2115_v33 }
 0x291   :  { %v1844_v45 = vadd.f32 %v1832_v29, %v8787_v41  ;;  %v2119_v10 = vpop.f32.mrb[22].mxu1  ;;  %v2154_v0 = vadd.f32 %v2142_v31, %v1842_v23  ;;  %v2146_v9 = vmul.f32 %v2134_v37, %v2117_v7 }
 0x292   :  { %v2121_v49 = vpop.f32.mrb[23].mxu1  ;;  %v2155_v27 = vadd.f32 %v2143_v6, %v1843_v15  ;;  %v2147_v50 = vmul.f32 %v2130_v34, %v2119_v10 }
 0x293   :  { %v1803_v20 = vpop.f32.mrb[20].mxu0  ;;  %v2156_v24 = vadd.f32 %v2144_v55, %v1844_v45  ;;  %v2148_v25 = vmul.f32 %v2134_v37, %v2121_v49 }
 0x294   :  { %v1833_v59 = vmul.f32 %v1818_v14, %v1803_v20  ;;  %v1805_v61 = vpop.f32.mrb[21].mxu0 }
 0x295   :  { %v1834_v63 = vmul.f32 %v1822_v32, %v1805_v61  ;;  %v1807_v39 = vpop.f32.mrb[22].mxu0 }
 0x296   :  { %v1845_v11 = vadd.f32 %v1833_v59, %v8809_v52  ;;  %v1835_v46 = vmul.f32 %v1818_v14, %v1807_v39  ;;  %v1809_v43 = vpop.f32.mrb[23].mxu0  ;;  %v2584_v52 = vrot.slane %v4059_v51, %v8606_v13  ;;  %v2588_v14 = vrot.slane %v4059_v51, %v8608_v3 }
 0x297   :  { %v1846_v18 = vadd.f32 %v1834_v63, %v8812_v21  ;;  %v1836_v41 = vmul.f32 %v1822_v32, %v1809_v43 }
 0x298   :  { %v1847_v56 = vadd.f32 %v1835_v46, %v8814_v26  ;;  %v2157_v57 = vadd.f32 %v2145_v12, %v1845_v11 }
 0x299   :  { %v1848_v44 = vadd.f32 %v1836_v41, %v8826_v2  ;;  %v2158_v1 = vadd.f32 %v2146_v9, %v1846_v18 }
 0x29a   :  { %v2159_v53 = vadd.f32 %v2147_v50, %v1847_v56 }
 0x29b   :  { %v2160_v60 = vadd.f32 %v2148_v25, %v1848_v44 }
 0x2b1   :  { %v2549_v34 = vpop.f32.mrb[24].mxu1 }
 0x2b2   :  { %v2591_v21 = vmul.f32 %v2584_v52, %v2549_v34  ;;  %v2551_v32 = vpop.f32.mrb[25].mxu1 }
 0x2b3   :  { %v2262_v37 = vpop.f32.mrb[24].mxu0  ;;  %v2592_v62 = vmul.f32 %v2588_v14, %v2551_v32  ;;  %v2553_v26 = vpop.f32.mrb[26].mxu1 }
 0x2b4   :  { %v2291_v47 = vadd.f32 %v2262_v37, %v2149_v19  ;;  %v2264_v28 = vpop.f32.mrb[25].mxu0  ;;  %v2593_v2 = vmul.f32 %v2584_v52, %v2553_v26  ;;  %v2555_v30 = vpop.f32.mrb[27].mxu1 }
 0x2b5   :  { %v2292_v17 = vadd.f32 %v2264_v28, %v2150_v58  ;;  %v2266_v36 = vpop.f32.mrb[26].mxu0  ;;  %v2594_v16 = vmul.f32 %v2588_v14, %v2555_v30 }
 0x2b6   :  { %v8912_v48 = vadd.f32 %v2591_v21, %v2291_v47  ;;  %v2293_v38 = vadd.f32 %v2266_v36, %v8895_v54  ;;  %v2268_v8 = vpop.f32.mrb[27].mxu0 }
 0x2b7   :  { %v8915_v42 = vadd.f32 %v2592_v62, %v2292_v17  ;;  %v2294_v31 = vadd.f32 %v2268_v8, %v8897_v5 }
 0x2b8   :  { %v8918_v40 = vadd.f32 %v2593_v2, %v2293_v38 }
 0x2b9   :  { %v8920_v35 = vadd.f32 %v2594_v16, %v2294_v31  ;;  %v2559_v19 = vpop.f32.mrb[28].mxu1 }
 0x2ba   :  { %v2595_v4 = vmul.f32 %v2584_v52, %v2559_v19  ;;  %v2561_v6 = vpop.f32.mrb[29].mxu1 }
 0x2bb   :  { %v2272_v23 = vpop.f32.mrb[28].mxu0  ;;  %v2596_v58 = vmul.f32 %v2588_v14, %v2561_v6  ;;  %v2563_v29 = vpop.f32.mrb[30].mxu1 }
 0x2bc   :  { %v2295_v55 = vadd.f32 %v2272_v23, %v2153_v22  ;;  %v2274_v33 = vpop.f32.mrb[29].mxu0  ;;  %v2597_v15 = vmul.f32 %v2584_v52, %v2563_v29  ;;  %v2565_v7 = vpop.f32.mrb[31].mxu1 }
 0x2bd   :  { %v2296_v54 = vadd.f32 %v2274_v33, %v2154_v0  ;;  %v2276_v45 = vpop.f32.mrb[30].mxu0  ;;  %v2598_v10 = vmul.f32 %v2588_v14, %v2565_v7 }
 0x2be   :  { %v8922_v49 = vadd.f32 %v2595_v4, %v2295_v55  ;;  %v2297_v5 = vadd.f32 %v2276_v45, %v2155_v27  ;;  %v2278_v20 = vpop.f32.mrb[31].mxu0 }
 0x2bf   :  { %v8924_v59 = vadd.f32 %v2596_v58, %v2296_v54  ;;  %v2298_v61 = vadd.f32 %v2278_v20, %v2156_v24 }
 0x2c0   :  { %v8926_v12 = vadd.f32 %v2597_v15, %v2297_v5 }
 0x2c1   :  { %v8928_v63 = vadd.f32 %v2598_v10, %v2298_v61  ;;  %v2569_v39 = vpop.f32.mrb[32].mxu1 }
 0x2c2   :  { %v2599_v9 = vmul.f32 %v2584_v52, %v2569_v39  ;;  %v2571_v22 = vpop.f32.mrb[33].mxu1 }
 0x2c3   :  { %v2282_v11 = vpop.f32.mrb[32].mxu0  ;;  %v2600_v46 = vmul.f32 %v2588_v14, %v2571_v22  ;;  %v2573_v43 = vpop.f32.mrb[34].mxu1 }
 0x2c4   :  { %v2299_v0 = vadd.f32 %v2282_v11, %v2157_v57  ;;  %v2284_v50 = vpop.f32.mrb[33].mxu0  ;;  %v2601_v18 = vmul.f32 %v2584_v52, %v2573_v43  ;;  %v2575_v41 = vpop.f32.mrb[35].mxu1 }
 0x2c5   :  { %v2300_v25 = vadd.f32 %v2284_v50, %v2158_v1  ;;  %v2286_v27 = vpop.f32.mrb[34].mxu0  ;;  %v2602_v56 = vmul.f32 %v2588_v14, %v2575_v41  ;;  %v4075_v1 = vld [vmem:[%s9021_s2 + $0xc] sm:$0x3] }
 0x2c6   :  { %v8930_v44 = vadd.f32 %v2599_v9, %v2299_v0  ;;  %v2301_v24 = vadd.f32 %v2286_v27, %v2159_v53  ;;  %v2288_v51 = vpop.f32.mrb[35].mxu0  ;;  %v4091_v53 = vld [vmem:[%s9021_s2 + $0xe] sm:$0x3]  ;;  %v2896_v14 = vrot.slane %v4075_v1, %v8606_v13  ;;  %v2900_v28 = vrot.slane %v4075_v1, %v8608_v3 }
 0x2c7   :  { %v8932_v34 = vadd.f32 %v2600_v46, %v2300_v25  ;;  %v2302_v21 = vadd.f32 %v2288_v51, %v2160_v60  ;;  %v3208_v30 = vrot.slane %v4091_v53, %v8606_v13  ;;  %v3212_v36 = vrot.slane %v4091_v53, %v8608_v3 }
 0x2c8   :  { %v8934_v32 = vadd.f32 %v2601_v18, %v2301_v24 }
 0x2c9   :  { %v8936_v37 = vadd.f32 %v2602_v56, %v2302_v21 }
 0x307   :  { %v3173_v62 = vpop.f32.mrb[36].mxu1 }
 0x308   :  { %v3175_v26 = vpop.f32.mrb[37].mxu1  ;;  %v3215_v4 = vmul.f32 %v3208_v30, %v3173_v62 }
 0x309   :  { %v3177_v57 = vpop.f32.mrb[38].mxu1  ;;  %v3216_v29 = vmul.f32 %v3212_v36, %v3175_v26 }
 0x30a   :  { %v3179_v47 = vpop.f32.mrb[39].mxu1  ;;  %v3217_v7 = vmul.f32 %v3208_v30, %v3177_v57 }
 0x30b   :  { %v3218_v5 = vmul.f32 %v3212_v36, %v3179_v47 }
 0x30f   :  { %v3183_v52 = vpop.f32.mrb[40].mxu1 }
 0x310   :  { %v3185_v60 = vpop.f32.mrb[41].mxu1  ;;  %v3219_v43 = vmul.f32 %v3208_v30, %v3183_v52 }
 0x311   :  { %v3187_v2 = vpop.f32.mrb[42].mxu1  ;;  %v3220_v50 = vmul.f32 %v3212_v36, %v3185_v60 }
 0x312   :  { %v3189_v17 = vpop.f32.mrb[43].mxu1 }
 0x313   :  { %v2861_v16 = vpop.f32.mrb[36].mxu0  ;;  %v3222_v24 = vmul.f32 %v3212_v36, %v3189_v17 }
 0x314   :  { %v2903_v38 = vmul.f32 %v2896_v14, %v2861_v16  ;;  %v2863_v8 = vpop.f32.mrb[37].mxu0 }
 0x315   :  { %v2904_v31 = vmul.f32 %v2900_v28, %v2863_v8  ;;  %v2865_v19 = vpop.f32.mrb[38].mxu0 }
 0x316   :  { %v2915_v6 = vadd.f32 %v2903_v38, %v8912_v48  ;;  %v2905_v23 = vmul.f32 %v2896_v14, %v2865_v19  ;;  %v2867_v58 = vpop.f32.mrb[39].mxu0 }
 0x317   :  { %v2916_v55 = vadd.f32 %v2904_v31, %v8915_v42  ;;  %v2906_v33 = vmul.f32 %v2900_v28, %v2867_v58  ;;  %v3193_v15 = vpop.f32.mrb[44].mxu1 }
 0x318   :  { %v2917_v54 = vadd.f32 %v2905_v23, %v8918_v40  ;;  %v3195_v45 = vpop.f32.mrb[45].mxu1  ;;  %v8951_v10 = vadd.f32 %v3215_v4, %v2915_v6  ;;  %v3223_v60 = vmul.f32 %v3208_v30, %v3193_v15 }
 0x319   :  { %v2918_v20 = vadd.f32 %v2906_v33, %v8920_v35  ;;  %v3197_v61 = vpop.f32.mrb[46].mxu1  ;;  %v8954_v39 = vadd.f32 %v3216_v29, %v2916_v55  ;;  %v3221_v35 = vmul.f32 %v3208_v30, %v3187_v2  ;;  %v3224_v38 = vmul.f32 %v3212_v36, %v3195_v45  ;;  %v4107_v55 = vld [vmem:[%s9021_s2 + $0x10] sm:$0x3] }
 0x31a   :  { %v3199_v48 = vpop.f32.mrb[47].mxu1  ;;  %v8956_v9 = vadd.f32 %v3217_v7, %v2917_v54  ;;  %v3225_v17 = vmul.f32 %v3208_v30, %v3197_v61 }
 0x31b   :  { %v2871_v22 = vpop.f32.mrb[40].mxu0  ;;  %v8958_v11 = vadd.f32 %v3218_v5, %v2918_v20  ;;  %v3226_v19 = vmul.f32 %v3212_v36, %v3199_v48 }
 0x31c   :  { %v2907_v42 = vmul.f32 %v2896_v14, %v2871_v22  ;;  %v2873_v46 = vpop.f32.mrb[41].mxu0 }
 0x31d   :  { %v2908_v0 = vmul.f32 %v2900_v28, %v2873_v46  ;;  %v2875_v40 = vpop.f32.mrb[42].mxu0 }
 0x31e   :  { %v2919_v18 = vadd.f32 %v2907_v42, %v8922_v49  ;;  %v2909_v41 = vmul.f32 %v2896_v14, %v2875_v40  ;;  %v2877_v25 = vpop.f32.mrb[43].mxu0 }
 0x31f   :  { %v2920_v27 = vadd.f32 %v2908_v0, %v8924_v59  ;;  %v2910_v56 = vmul.f32 %v2900_v28, %v2877_v25 }
 0x320   :  { %v2921_v51 = vadd.f32 %v2909_v41, %v8926_v12  ;;  %v3231_v21 = vadd.f32 %v3219_v43, %v2919_v18 }
 0x321   :  { %v2922_v62 = vadd.f32 %v2910_v56, %v8928_v63  ;;  %v3232_v26 = vadd.f32 %v3220_v50, %v2920_v27 }
 0x322   :  { %v3233_v57 = vadd.f32 %v3221_v35, %v2921_v51 }
 0x323   :  { %v3234_v47 = vadd.f32 %v3222_v24, %v2922_v62  ;;  %v2881_v1 = vpop.f32.mrb[44].mxu0 }
 0x324   :  { %v2911_v53 = vmul.f32 %v2896_v14, %v2881_v1  ;;  %v2883_v52 = vpop.f32.mrb[45].mxu0 }
 0x325   :  { %v2912_v49 = vmul.f32 %v2900_v28, %v2883_v52  ;;  %v2885_v16 = vpop.f32.mrb[46].mxu0 }
 0x326   :  { %v2923_v2 = vadd.f32 %v2911_v53, %v8930_v44  ;;  %v2913_v59 = vmul.f32 %v2896_v14, %v2885_v16  ;;  %v2887_v8 = vpop.f32.mrb[47].mxu0  ;;  %v3520_v44 = vrot.slane %v4107_v55, %v8606_v13  ;;  %v3524_v14 = vrot.slane %v4107_v55, %v8608_v3 }
 0x327   :  { %v2924_v12 = vadd.f32 %v2912_v49, %v8932_v34  ;;  %v2914_v31 = vmul.f32 %v2900_v28, %v2887_v8 }
 0x328   :  { %v2925_v63 = vadd.f32 %v2913_v59, %v8934_v32  ;;  %v3235_v4 = vadd.f32 %v3223_v60, %v2923_v2 }
 0x329   :  { %v2926_v6 = vadd.f32 %v2914_v31, %v8936_v37  ;;  %v3236_v23 = vadd.f32 %v3224_v38, %v2924_v12 }
 0x32a   :  { %v3237_v58 = vadd.f32 %v3225_v17, %v2925_v63 }
 0x32b   :  { %v3238_v29 = vadd.f32 %v3226_v19, %v2926_v6 }
 0x340   :  { %v3495_v30 = vpop.f32.mrb[48].mxu1 }
 0x341   :  { %v3531_v34 = vmul.f32 %v3520_v44, %v3495_v30  ;;  %v3497_v28 = vpop.f32.mrb[49].mxu1 }
 0x342   :  { %v3532_v36 = vmul.f32 %v3524_v14, %v3497_v28  ;;  %v3499_v33 = vpop.f32.mrb[50].mxu1 }
 0x343   :  { %v3543_v32 = vadd.f32 %v3531_v34, %v3231_v21  ;;  %v3533_v15 = vmul.f32 %v3520_v44, %v3499_v33  ;;  %v3501_v7 = vpop.f32.mrb[51].mxu1  ;;  %v3485_v37 = vpop.f32.mrb[48].mxu0 }
 0x344   :  { %v3544_v54 = vadd.f32 %v3532_v36, %v3232_v26  ;;  %v3534_v45 = vmul.f32 %v3524_v14, %v3501_v7  ;;  %v3527_v5 = vmul.f32 %v3520_v44, %v3485_v37  ;;  %v3487_v20 = vpop.f32.mrb[49].mxu0 }
 0x345   :  { %4112 = vst [vmem:[%s9032_s13 + $0x620] sm:$0xff] %v3543_v32  ;;  %v3545_v13 = vadd.f32 %v3533_v15, %v3233_v57  ;;  %v3528_v61 = vmul.f32 %v3524_v14, %v3487_v20  ;;  %v3489_v3 = vpop.f32.mrb[50].mxu0 }
 0x346   :  { %3556 = vst.msk [vmem:[#allocation2 + $0x28] sm:$0xff] %vm899_vm0, %v3544_v54  ;;  %v3546_v48 = vadd.f32 %v3534_v45, %v3234_v47  ;;  %v3539_v22 = vadd.f32 %v3527_v5, %v8951_v10  ;;  %v3529_v42 = vmul.f32 %v3520_v44, %v3489_v3  ;;  %v3491_v46 = vpop.f32.mrb[51].mxu0 }
 0x347   :  { %4114 = vst [vmem:[%s9032_s13 + $0x630] sm:$0xff] %v3545_v13  ;;  %v3540_v43 = vadd.f32 %v3528_v61, %v8954_v39  ;;  %v3530_v0 = vmul.f32 %v3524_v14, %v3491_v46 }
 0x348   :  { %3558 = vst.msk [vmem:[#allocation2 + $0x38] sm:$0xff] %vm899_vm0, %v3546_v48  ;;  %4108 = vst [vmem:[%s9032_s13 + $0x600] sm:$0xff] %v3539_v22  ;;  %v3541_v40 = vadd.f32 %v3529_v42, %v8956_v9  ;;  %v3505_v50 = vpop.f32.mrb[52].mxu1 }
 0x349   :  { %3552 = vst.msk [vmem:[#allocation2 + $0x8] sm:$0xff] %vm899_vm0, %v3540_v43  ;;  %v3542_v10 = vadd.f32 %v3530_v0, %v8958_v11  ;;  %v3535_v18 = vmul.f32 %v3520_v44, %v3505_v50  ;;  %v3507_v41 = vpop.f32.mrb[53].mxu1 }
 0x34a   :  { %4110 = vst [vmem:[%s9032_s13 + $0x610] sm:$0xff] %v3541_v40  ;;  %v3536_v39 = vmul.f32 %v3524_v14, %v3507_v41  ;;  %v3509_v25 = vpop.f32.mrb[54].mxu1 }
 0x34b   :  { %3554 = vst.msk [vmem:[#allocation2 + $0x18] sm:$0xff] %vm899_vm0, %v3542_v10  ;;  %v3547_v35 = vadd.f32 %v3535_v18, %v3235_v4  ;;  %v3537_v27 = vmul.f32 %v3520_v44, %v3509_v25  ;;  %v3511_v56 = vpop.f32.mrb[55].mxu1 }
 0x34c   :  { %v3548_v24 = vadd.f32 %v3536_v39, %v3236_v23  ;;  %v3538_v9 = vmul.f32 %v3524_v14, %v3511_v56 }
 0x34d   :  { %v3607_v51 = vld [vmem:[#allocation2 + $0x28] sm:$0xff]  ;;  %4116 = vst [vmem:[%s9032_s13 + $0x640] sm:$0xff] %v3547_v35  ;;  %v3549_v11 = vadd.f32 %v3537_v27, %v3237_v58 }
 0x34e   :  { %4113 = vst [vmem:[%s9032_s13 + $0x628] sm:$0xff] %v3607_v51  ;;  %3560 = vst.msk [vmem:[#allocation2 + $0x48] sm:$0xff] %vm899_vm0, %v3548_v24  ;;  %v3550_v21 = vadd.f32 %v3538_v9, %v3238_v29 }
 0x34f   :  { %v3611_v62 = vld [vmem:[#allocation2 + $0x38] sm:$0xff]  ;;  %4118 = vst [vmem:[%s9032_s13 + $0x650] sm:$0xff] %v3549_v11 }
 0x350   :  { %4115 = vst [vmem:[%s9032_s13 + $0x638] sm:$0xff] %v3611_v62  ;;  %v3599_v26 = vld [vmem:[#allocation2 + $0x8] sm:$0xff]  ;;  %3562 = vst.msk [vmem:[#allocation2 + $0x58] sm:$0xff] %vm899_vm0, %v3550_v21 }
 0x351   :  { %4109 = vst [vmem:[%s9032_s13 + $0x608] sm:$0xff] %v3599_v26 }
 0x352   :  { %v3603_v57 = vld [vmem:[#allocation2 + $0x18] sm:$0xff] }
 0x353   :  { %4111 = vst [vmem:[%s9032_s13 + $0x618] sm:$0xff] %v3603_v57 }
 0x355   :  { %v3615_v47 = vld [vmem:[#allocation2 + $0x48] sm:$0xff] }
 0x356   :  { %4117 = vst [vmem:[%s9032_s13 + $0x648] sm:$0xff] %v3615_v47 }
 0x357   :  { %v3619_v1 = vld [vmem:[#allocation2 + $0x58] sm:$0xff] }
 0x358   :  { %4119 = vst [vmem:[%s9032_s13 + $0x658] sm:$0xff] %v3619_v1 }
 0x359   :  { %3628 = vsyncadd [#allocation3 + $0xa], 1536 }
 0x35a   :  { %5277 = dma.done.wait [#allocation3], 12288 }
 0x35b   :  { %5278 = vsyncadd [#allocation3], 4294955008 }
 0x35c   :  { %5279 = dma.done.wait [#allocation3 + $0x1], 1536 }
 0x35d   :  { %5280 = vsyncadd [#allocation3 + $0x1], 4294965760 }
 0x35e   :  { %5281 = dma.done.wait [#allocation3 + $0x2], 1536 }
 0x35f   :  { %5282 = vsyncadd [#allocation3 + $0x2], 4294965760 }
 0x360   :  { %5283 = dma.done.wait [#allocation3 + $0x3], 1536 }
 0x361   :  { %5284 = vsyncadd [#allocation3 + $0x3], 4294965760 }
 0x362   :  { %5285 = dma.done.wait [#allocation3 + $0x4], 1536 }
 0x363   :  { %5286 = vsyncadd [#allocation3 + $0x4], 4294965760 }
 0x364   :  { %5287 = dma.done.wait [#allocation3 + $0x5], 1536 }
 0x365   :  { %5288 = vsyncadd [#allocation3 + $0x5], 4294965760 }
 0x366   :  { %5289 = dma.done.wait [#allocation3 + $0x6], 1536 }
 0x367   :  { %5290 = vsyncadd [#allocation3 + $0x6], 4294965760 }
 0x368   :  { %5291 = dma.done.wait [#allocation3 + $0x7], 1536 }
 0x369   :  { %5292 = vsyncadd [#allocation3 + $0x7], 4294965760 }
 0x36a   :  { %5293 = dma.done.wait [#allocation3 + $0x8], 1536 }
 0x36b   :  { %5294 = vsyncadd [#allocation3 + $0x8], 4294965760 }
 0x36c   :  { %5295 = dma.done.wait [#allocation3 + $0x9], 1536 }
 0x36d   :  { %5296 = vsyncadd [#allocation3 + $0x9], 4294965760 }
 0x36e   :  { %5297 = dma.done.wait [#allocation3 + $0xa], 1536 }
 0x36f   :  { %5298 = vsyncadd [#allocation3 + $0xa], 4294965760 }
 0x370   :  { %3655 = vsyncmov [#allocation3] }
 0x373   :  { %s3656_s13 = vpop.sfrf %3655 }
 0x374   :  { %p4121_p0 = scmp.ne.s32.totalorder %s3656_s13, 0 }
 0x376   :  { %3660 = shalt.err (%p4121_p0)  }
 0x377   :  { %3662 = vsyncmov [#allocation3 + $0x1] }
 0x37a   :  { %s3663_s27 = vpop.sfrf %3662 }
 0x37b   :  { %p4122_p1 = scmp.ne.s32.totalorder %s3663_s27, 0 }
 0x37d   :  { %3667 = shalt.err (%p4122_p1)  }
 0x37e   :  { %3669 = vsyncmov [#allocation3 + $0x2] }
 0x381   :  { %s3670_s5 = vpop.sfrf %3669 }
 0x382   :  { %p4123_p2 = scmp.ne.s32.totalorder %s3670_s5, 0 }
 0x384   :  { %3674 = shalt.err (%p4123_p2)  }
 0x385   :  { %3676 = vsyncmov [#allocation3 + $0x3] }
 0x388   :  { %s3677_s28 = vpop.sfrf %3676 }
 0x389   :  { %p4124_p3 = scmp.ne.s32.totalorder %s3677_s28, 0 }
 0x38b   :  { %3681 = shalt.err (%p4124_p3)  }
 0x38c   :  { %3683 = vsyncmov [#allocation3 + $0x4] }
 0x38f   :  { %s3684_s29 = vpop.sfrf %3683 }
 0x390   :  { %p4125_p4 = scmp.ne.s32.totalorder %s3684_s29, 0 }
 0x392   :  { %3688 = shalt.err (%p4125_p4)  }
 0x393   :  { %3690 = vsyncmov [#allocation3 + $0x5] }
 0x396   :  { %s3691_s30 = vpop.sfrf %3690 }
 0x397   :  { %p4126_p5 = scmp.ne.s32.totalorder %s3691_s30, 0 }
 0x399   :  { %3695 = shalt.err (%p4126_p5)  }
 0x39a   :  { %3697 = vsyncmov [#allocation3 + $0x6] }
 0x39d   :  { %s3698_s15 = vpop.sfrf %3697 }
 0x39e   :  { %p4127_p6 = scmp.ne.s32.totalorder %s3698_s15, 0 }
 0x3a0   :  { %3702 = shalt.err (%p4127_p6)  }
 0x3a1   :  { %3704 = vsyncmov [#allocation3 + $0x7] }
 0x3a4   :  { %s3705_s16 = vpop.sfrf %3704 }
 0x3a5   :  { %p4128_p7 = scmp.ne.s32.totalorder %s3705_s16, 0 }
 0x3a7   :  { %3709 = shalt.err (%p4128_p7)  }
 0x3a8   :  { %3711 = vsyncmov [#allocation3 + $0x8] }
 0x3ab   :  { %s3712_s17 = vpop.sfrf %3711 }
 0x3ac   :  { %p4129_p8 = scmp.ne.s32.totalorder %s3712_s17, 0 }
 0x3ae   :  { %3716 = shalt.err (%p4129_p8)  }
 0x3af   :  { %3718 = vsyncmov [#allocation3 + $0x9] }
 0x3b2   :  { %s3719_s2 = vpop.sfrf %3718 }
 0x3b3   :  { %p4130_p9 = scmp.ne.s32.totalorder %s3719_s2, 0 }
 0x3b5   :  { %3723 = shalt.err (%p4130_p9)  }
 0x3b6   :  { %3725 = vsyncmov [#allocation3 + $0xa] }
 0x3b9   :  { %s3726_s6 = vpop.sfrf %3725 }
 0x3ba   :  { %p4131_p10 = scmp.ne.s32.totalorder %s3726_s6, 0 }
 0x3bc   :  { %3730 = shalt.err (%p4131_p10)  }

</bundles_post_ra>
